<compile_context>
chip_gen: v6e
topology: v6e:2x2x1
jax: 0.10.0
libtpu: 0.0.40
codegen_flags: <defaults>
</compile_context>

<pallas_src>
import functools

import jax
import jax.numpy as jnp
from jax import tree_util
from jax.experimental import pallas as pl
from jax.experimental.pallas import tpu as pltpu


# ----------------------------------------------------------------------------
# small helpers
# ----------------------------------------------------------------------------
def _round_up(a, b):
    return (a + b - 1) // b * b


def _cdiv(a, b):
    return -(-a // b)


def _pick_divisor(d, candidates):
    for c in candidates:
        if d % c == 0:
            return c
    return 128


def _pad_dims(K, N):
    """Padded (Kp, Np) shared by weight packing and the pallas_call plan."""
    if K % 128 == 0:
        Kp = K
    elif K <= 1024:
        # Small unaligned K (27, 288, 576, 32, 64, ...): use ONE full-K tile,
        # which is exempt from the 128-lane rule; pad only to the bf16
        # sublane quantum (16) -> near-zero padding instead of padding the
        # whole im2col matrix to a multiple of 128.
        Kp = _round_up(K, 16)
    else:
        Kp = _round_up(K, 128)
    Np = _round_up(N, 128)
    return Kp, Np


# ----------------------------------------------------------------------------
# Fused Pallas kernel:  out = leaky_relu(X @ W + bias, slope) [+ shortcut]
#   X: (M, K) bf16   W: (K, N) bf16 (BN scale pre-folded)   bias: (1, N) f32
# Accumulation is f32 in a VMEM scratch; epilogue (bias, LeakyReLU, optional
# residual add) in f32.  slope=1.0 -> plain conv+bias (no activation).
# ----------------------------------------------------------------------------
def _make_kernel(slope, has_residual):
    def epilogue(acc, b):
        z = acc + b
        if slope != 1.0:
            z = jnp.where(z >= 0.0, z, slope * z)
        return z

    if has_residual:
        def kernel(x_ref, w_ref, b_ref, s_ref, o_ref, acc_ref):
            @pl.when(pl.program_id(2) == 0)
            def _():
                acc_ref[...] = jnp.zeros_like(acc_ref)

            acc_ref[...] += jnp.dot(x_ref[...], w_ref[...],
                                    preferred_element_type=jnp.float32)

            @pl.when(pl.program_id(2) == pl.num_programs(2) - 1)
            def _():
                z = epilogue(acc_ref[...], b_ref[...])
                o_ref[...] = (z + s_ref[...].astype(jnp.float32)).astype(o_ref.dtype)
    else:
        def kernel(x_ref, w_ref, b_ref, o_ref, acc_ref):
            @pl.when(pl.program_id(2) == 0)
            def _():
                acc_ref[...] = jnp.zeros_like(acc_ref)

            acc_ref[...] += jnp.dot(x_ref[...], w_ref[...],
                                    preferred_element_type=jnp.float32)

            @pl.when(pl.program_id(2) == pl.num_programs(2) - 1)
            def _():
                o_ref[...] = epilogue(acc_ref[...], b_ref[...]).astype(o_ref.dtype)

    return kernel


@functools.lru_cache(maxsize=None)
def _get_fused_matmul(M, K, N, slope, out_dtype, has_residual):
    """Build (and cache per shape) the pallas_call wrapper for one conv shape."""
    Kp, Np = _pad_dims(K, N)

    # K tiling: multiple-of-128 K values (all the deep layers) pick the
    # largest divisor <= 1536 (few K steps keeps the weight stream ahead of
    # the MXU on the small-spatial late layers); unaligned small K uses a
    # single full-K tile.
    if Kp % 128 == 0:
        tk = _pick_divisor(Kp, (1536, 1152, 1024, 896, 768, 640, 512, 384, 256, 128))
    else:
        tk = Kp

    # N tiling: lane-dense, up to 512 (feeds the 256-wide MXU on v6e/v7x).
    tn = _pick_divisor(Np, (512, 384, 256, 128))

    # M tiling: large tiles amortize the ~0.35us/grid-step overhead while the
    # double-buffered working set stays <= ~10 MB.
    if tk <= 128:
        tm_max = 4096
    elif tk <= 384:
        tm_max = 2048
    elif tk <= 768:
        tm_max = 1024
    else:
        tm_max = 512
    if M <= tm_max:
        tm = _round_up(M, 16)
    else:
        tm = _round_up(_cdiv(M, _cdiv(M, tm_max)), 16)
    Mp = _round_up(M, tm)

    # Guarantee >=2 parallel (i, j) tiles where possible so both TensorCores
    # on v7x get work for the small-spatial head / deep-layer shapes.
    if (Mp // tm) * (Np // tn) < 2 and Np >= 256:
        tn = Np // 2 if (Np // 2) % 128 == 0 else 128

    grid = (Mp // tm, Np // tn, Kp // tk)
    kernel = _make_kernel(slope, has_residual)

    in_specs = [
        pl.BlockSpec((tm, tk), lambda i, j, k: (i, k)),
        pl.BlockSpec((tk, tn), lambda i, j, k: (k, j)),
        pl.BlockSpec((1, tn), lambda i, j, k: (0, j)),
    ]
    if has_residual:
        in_specs.append(pl.BlockSpec((tm, tn), lambda i, j, k: (i, j)))

    out_bytes = jnp.dtype(out_dtype).itemsize
    cost = pl.CostEstimate(
        flops=2 * Mp * Kp * Np,
        transcendentals=0,
        bytes_accessed=(Mp * Kp * 2 + Kp * Np * 2 + Np * 4
                        + Mp * Np * out_bytes
                        + (Mp * Np * 2 if has_residual else 0)),
    )

    call = pl.pallas_call(
        kernel,
        out_shape=jax.ShapeDtypeStruct((Mp, Np), out_dtype),
        grid_spec=pltpu.PrefetchScalarGridSpec(
            num_scalar_prefetch=0,
            grid=grid,
            in_specs=in_specs,
            out_specs=pl.BlockSpec((tm, tn), lambda i, j, k: (i, j)),
            scratch_shapes=[pltpu.VMEM((tm, tn), jnp.float32)],
        ),
        compiler_params=pltpu.CompilerParams(
            dimension_semantics=("parallel", "parallel", "arbitrary"),
            vmem_limit_bytes=32 * 1024 * 1024),
        cost_estimate=cost,
    )

    # Inner jit kept so identical-shape convolutions share one traced
    # sub-computation inside the single outer jit of the whole forward pass.
    @jax.jit
    def run(x, w, bias, *maybe_shortcut):
        x = x.astype(jnp.bfloat16)
        if Mp != M or Kp != K:
            x = jnp.pad(x, ((0, Mp - M), (0, Kp - K)))
        args = [x, w, bias]
        if has_residual:
            s = maybe_shortcut[0].astype(jnp.bfloat16)
            if Mp != M or Np != N:
                s = jnp.pad(s, ((0, Mp - M), (0, Np - N)))
            args.append(s)
        out = call(*args)
        if Mp != M or Np != N:
            out = out[:M, :N]
        return out

    return run


def fused_conv_matmul(x2d, p, slope, out_dtype, shortcut2d=None):
    M, K = x2d.shape
    run = _get_fused_matmul(int(M), int(K), int(p.N), float(slope), out_dtype,
                            shortcut2d is not None)
    if shortcut2d is None:
        return run(x2d, p.w, p.b)
    return run(x2d, p.w, p.b, shortcut2d)


# ----------------------------------------------------------------------------
# Parameter container: arrays are pytree children (traced), k/K/N stay static.
# ----------------------------------------------------------------------------
@tree_util.register_pytree_node_class
class ConvParams:
    def __init__(self, w, b, k, K, N):
        self.w, self.b, self.k, self.K, self.N = w, b, k, K, N

    def tree_flatten(self):
        return (self.w, self.b), (self.k, self.K, self.N)

    @classmethod
    def tree_unflatten(cls, aux, children):
        return cls(children[0], children[1], *aux)


# ----------------------------------------------------------------------------
# Convolution helpers (im2col glue in plain JAX, matmul hot path in Pallas)
# ----------------------------------------------------------------------------
def _im2col(x, k, stride):
    """x: NHWC -> (N, Ho, Wo, k*k*C) patches, 'same' padding (pad=(k-1)//2)."""
    if k == 1 and stride == 1:
        return x
    pad = (k - 1) // 2
    n, h, w, c = x.shape
    xp = jnp.pad(x, ((0, 0), (pad, pad), (pad, pad), (0, 0)))
    ho = (h + 2 * pad - k) // stride + 1
    wo = (w + 2 * pad - k) // stride + 1
    patches = []
    for dy in range(k):
        for dx in range(k):
            patches.append(
                xp[:, dy:dy + stride * ho:stride, dx:dx + stride * wo:stride, :])
    return jnp.concatenate(patches, axis=-1)


def apply_conv_bn_leaky(p, x, stride=1, residual=None):
    """conv (no bias) + BatchNorm (folded, eval) + LeakyReLU(0.1) [+ residual]."""
    cols = _im2col(x, p.k, stride)
    n, ho, wo, kk = cols.shape
    s2d = None if residual is None else residual.reshape(n * ho * wo, p.N)
    y = fused_conv_matmul(cols.reshape(n * ho * wo, kk), p, 0.1, jnp.bfloat16, s2d)
    return y.reshape(n, ho, wo, p.N)


def apply_conv_bias(p, x, out_dtype=jnp.bfloat16):
    """plain 1x1 conv with bias, no BN, no activation."""
    n, h, w, c = x.shape
    y = fused_conv_matmul(x.reshape(n * h * w, c), p, 1.0, out_dtype)
    return y.reshape(n, h, w, p.N)


def upsample2_nearest(x):  # NHWC, scale_factor=2, mode='nearest'
    return jnp.repeat(jnp.repeat(x, 2, axis=1), 2, axis=2)


# ----------------------------------------------------------------------------
# Deterministic parameter initialization (mirrors the PyTorch module __init__)
# ----------------------------------------------------------------------------
class _KeyGen:
    def __init__(self, key):
        self._key = key

    def __call__(self):
        self._key, sub = jax.random.split(self._key)
        return sub


def _pack_conv(w, bias, k, scale=None):
    """Fold BN scale into W, pad to the tile plan, cast W to bf16 (once)."""
    K, N = int(w.shape[0]), int(w.shape[1])
    if scale is not None:
        w = w * scale[None, :]
    Kp, Np = _pad_dims(K, N)
    wp = jnp.zeros((Kp, Np), jnp.bfloat16).at[:K, :N].set(w.astype(jnp.bfloat16))
    bp = jnp.zeros((1, Np), jnp.float32).at[0, :N].set(bias.astype(jnp.float32))
    return ConvParams(wp, bp, int(k), K, N)


def init_conv(kg, cin, cout, k, bias=False):
    fan_in = float(cin * k * k)
    w = jax.random.normal(kg(), (k * k * cin, cout), jnp.float32) / jnp.sqrt(fan_in)
    if bias:
        b = jax.random.normal(kg(), (cout,), jnp.float32) * 0.01
    else:
        b = jnp.zeros((cout,), jnp.float32)
    return _pack_conv(w, b, k, scale=None)


def init_conv_bn(kg, cin, cout, k):
    fan_in = float(cin * k * k)
    w = jax.random.normal(kg(), (k * k * cin, cout), jnp.float32) / jnp.sqrt(fan_in)
    eps = 1e-5
    gamma = jnp.ones((cout,), jnp.float32)
    beta = jnp.zeros((cout,), jnp.float32)
    running_mean = jnp.zeros((cout,), jnp.float32)
    running_var = jnp.ones((cout,), jnp.float32)
    scale = gamma / jnp.sqrt(running_var + eps)
    bias = beta - running_mean * scale
    return _pack_conv(w, bias, k, scale=scale)


def init_basic_block(kg, input_channel, channel):
    return {'conv1': init_conv_bn(kg, input_channel, channel[0], 1),
            'conv2': init_conv_bn(kg, channel[0], channel[1], 3)}


def apply_basic_block(p, x):
    out = apply_conv_bn_leaky(p['conv1'], x)
    # residual add fused into conv2's matmul epilogue (saves an HBM round trip)
    return apply_conv_bn_leaky(p['conv2'], out, residual=x)


def init_residual_layer(kg, channel, blocks):
    return {'ds': init_conv_bn(kg, channel[0], channel[1], 3),
            'blocks': [init_basic_block(kg, channel[1], channel)
                       for _ in range(blocks)]}


def apply_residual_layer(p, x):
    x = apply_conv_bn_leaky(p['ds'], x, stride=2)
    for bp in p['blocks']:
        x = apply_basic_block(bp, x)
    return x


def init_darknet(kg):
    return {'conv1': init_conv_bn(kg, 3, 32, 3),
            'layer1': init_residual_layer(kg, [32, 64], 1),
            'layer2': init_residual_layer(kg, [64, 128], 2),
            'layer3': init_residual_layer(kg, [128, 256], 8),
            'layer4': init_residual_layer(kg, [256, 512], 8),
            'layer5': init_residual_layer(kg, [512, 1024], 4)}


def apply_darknet(p, x):
    x = apply_conv_bn_leaky(p['conv1'], x)
    x = apply_residual_layer(p['layer1'], x)
    x = apply_residual_layer(p['layer2'], x)
    x_third = apply_residual_layer(p['layer3'], x)
    x_second = apply_residual_layer(p['layer4'], x_third)
    x_first = apply_residual_layer(p['layer5'], x_second)
    return x_third, x_second, x_first


def init_last_layers(kg, channel_list, input_channel, output_channel):
    c0, c1 = channel_list
    return {'branch1': [init_conv_bn(kg, input_channel, c0, 1),
                        init_conv_bn(kg, c0, c1, 3),
                        init_conv_bn(kg, c1, c0, 1),
                        init_conv_bn(kg, c0, c1, 3),
                        init_conv_bn(kg, c1, c0, 1)],
            'branch2_conv': init_conv_bn(kg, c0, c1, 3),
            'branch2_out': init_conv(kg, c1, output_channel, 1, bias=True)}


def apply_last_layers(p, x):
    for cp in p['branch1']:
        x = apply_conv_bn_leaky(cp, x)
    out_branch = x
    y = apply_conv_bn_leaky(p['branch2_conv'], x)
    output = apply_conv_bias(p['branch2_out'], y, out_dtype=jnp.float32)
    return out_branch, output


def init_yolobody(key):
    kg = _KeyGen(key)
    output_channel = (20 + 4 + 1) * 3  # 75
    return {'backbone': init_darknet(kg),
            'last_layer_first': init_last_layers(kg, [512, 1024], 1024, output_channel),
            'last_layer_second_conv': init_conv(kg, 512, 256, 1, bias=True),
            'last_layer_second': init_last_layers(kg, [256, 512], 512 + 256, output_channel),
            'last_layer_third_conv': init_conv(kg, 256, 128, 1, bias=True),
            'last_layer_third': init_last_layers(kg, [128, 256], 256 + 128, output_channel)}


def apply_yolobody(p, x_nchw):
    # NCHW -> NHWC, activations kept in bf16 between kernels.
    x = jnp.transpose(x_nchw, (0, 2, 3, 1)).astype(jnp.bfloat16)

    x_third, x_second, x_first = apply_darknet(p['backbone'], x)

    out_first_branch, out_first = apply_last_layers(p['last_layer_first'], x_first)

    x_second_in = apply_conv_bias(p['last_layer_second_conv'], out_first_branch)
    x_second_in = upsample2_nearest(x_second_in)
    x_second_in = jnp.concatenate([x_second_in, x_second], axis=-1)

    out_second_branch, out_second = apply_last_layers(p['last_layer_second'], x_second_in)

    x_third_in = apply_conv_bias(p['last_layer_third_conv'], out_second_branch)
    x_third_in = upsample2_nearest(x_third_in)
    x_third_in = jnp.concatenate([x_third_in, x_third], axis=-1)

    _, out_third = apply_last_layers(p['last_layer_third'], x_third_in)

    to_nchw = lambda t: jnp.transpose(t, (0, 3, 1, 2))
    return to_nchw(out_first), to_nchw(out_second), to_nchw(out_third)


# ----------------------------------------------------------------------------
if __name__ == "__main__":
    key = jax.random.PRNGKey(0)
    pkey, xkey = jax.random.split(key)

    params = init_yolobody(pkey)

    # Small input consistent with the module: NCHW, 3 channels, spatial must be
    # a multiple of 32 (five stride-2 downsamples).
    batch, in_ch, spatial = 2, 3, 64
    x = jax.random.normal(xkey, (batch, in_ch, spatial, spatial), jnp.float32)

    # Single outer jit over the whole forward pass (glue fuses; one dispatch).
    forward = jax.jit(apply_yolobody)
    out_first, out_second, out_third = forward(params, x)
    jax.block_until_ready((out_first, out_second, out_third))

    s = spatial // 32
    assert out_first.shape == (batch, 75, s, s), out_first.shape
    assert out_second.shape == (batch, 75, 2 * s, 2 * s), out_second.shape
    assert out_third.shape == (batch, 75, 4 * s, 4 * s), out_third.shape
    assert out_first.dtype == jnp.float32
    assert bool(jnp.all(jnp.isfinite(out_first)))
    assert bool(jnp.all(jnp.isfinite(out_second)))
    assert bool(jnp.all(jnp.isfinite(out_third)))

    print("KERNEL_OK")
</pallas_src>

<mosaic_0001>
module attributes {stable_mosaic.version = 11 : i64} {
  func.func @kernel(%arg0: i32, %arg1: i32, %arg2: i32, %arg3: memref<4096x32xbf16, #tpu.memory_space<vmem>>, %arg4: memref<32x128xbf16, #tpu.memory_space<vmem>>, %arg5: memref<1x128xf32, #tpu.memory_space<vmem>>, %arg6: memref<4096x128xbf16, #tpu.memory_space<vmem>>, %arg7: memref<4096x128xf32, #tpu.memory_space<vmem>>) attributes {dimension_semantics = [#tpu.dimension_semantics<parallel>, #tpu.dimension_semantics<parallel>, #tpu.dimension_semantics<arbitrary>], iteration_bounds = array<i64: 2, 1, 1>, scalar_prefetch = 0 : i64, scratch_operands = 1 : i64, tpu.core_type = #tpu.core_type<tc>, window_params = [{transform_indices = @transform_0, window_bounds = array<i64: 4096, 32>}, {transform_indices = @transform_1, window_bounds = array<i64: 32, 128>}, {transform_indices = @transform_2, window_bounds = array<i64: 1, 128>}, {transform_indices = @transform_3, window_bounds = array<i64: 4096, 128>}]} {
    %c0_i32 = arith.constant 0 : i32
    %0 = arith.cmpi eq, %arg2, %c0_i32 : i32
    %1 = arith.extui %0 : i1 to i32
    %c0_i32_0 = arith.constant 0 : i32
    %2 = arith.cmpi ne, %1, %c0_i32_0 : i32
    scf.if %2 {
      %cst_10 = arith.constant 0.000000e+00 : f32
      %12 = vector.broadcast %cst_10 : f32 to vector<4096x128xf32>
      %c0_11 = arith.constant 0 : index
      %c0_12 = arith.constant 0 : index
      %13 = vector.load %arg7[%c0_11, %c0_12] : memref<4096x128xf32, #tpu.memory_space<vmem>>, vector<4096x128xf32>
      tpu.vector_store %arg7[%c0_11, %c0_12], %12 {strides = array<i32>} : memref<4096x128xf32, #tpu.memory_space<vmem>>, vector<4096x128xf32>,
    } else {
    }
    %c0 = arith.constant 0 : index
    %c0_1 = arith.constant 0 : index
    %3 = vector.load %arg7[%c0, %c0_1] : memref<4096x128xf32, #tpu.memory_space<vmem>>, vector<4096x128xf32>
    %c0_2 = arith.constant 0 : index
    %c0_3 = arith.constant 0 : index
    %4 = vector.load %arg3[%c0_2, %c0_3] : memref<4096x32xbf16, #tpu.memory_space<vmem>>, vector<4096x32xbf16>
    %c0_4 = arith.constant 0 : index
    %c0_5 = arith.constant 0 : index
    %5 = vector.load %arg4[%c0_4, %c0_5] : memref<32x128xbf16, #tpu.memory_space<vmem>>, vector<32x128xbf16>
    %cst = arith.constant dense<0.000000e+00> : vector<4096x128xf32>
    %6 = tpu.matmul %4, %5, %cst {dimension_numbers = #tpu.dot_dimension_numbers<[1], [0], [0], [1], [0, 0, 1, 1], [], []>} : vector<4096x32xbf16>, vector<32x128xbf16>, vector<4096x128xf32> -> vector<4096x128xf32>
    %7 = arith.addf %3, %6 : vector<4096x128xf32>
    %c0_6 = arith.constant 0 : index
    %c0_7 = arith.constant 0 : index
    %8 = vector.load %arg7[%c0_6, %c0_7] : memref<4096x128xf32, #tpu.memory_space<vmem>>, vector<4096x128xf32>
    tpu.vector_store %arg7[%c0_6, %c0_7], %7 {strides = array<i32>} : memref<4096x128xf32, #tpu.memory_space<vmem>>, vector<4096x128xf32>,
    %c0_i32_8 = arith.constant 0 : i32
    %9 = arith.cmpi eq, %arg2, %c0_i32_8 : i32
    %10 = arith.extui %9 : i1 to i32
    %c0_i32_9 = arith.constant 0 : i32
    %11 = arith.cmpi ne, %10, %c0_i32_9 : i32
    scf.if %11 {
      %c0_10 = arith.constant 0 : index
      %c0_11 = arith.constant 0 : index
      %12 = vector.load %arg7[%c0_10, %c0_11] : memref<4096x128xf32, #tpu.memory_space<vmem>>, vector<4096x128xf32>
      %c0_12 = arith.constant 0 : index
      %c0_13 = arith.constant 0 : index
      %13 = vector.load %arg5[%c0_12, %c0_13] : memref<1x128xf32, #tpu.memory_space<vmem>>, vector<1x128xf32>
      %14 = vector.broadcast %13 : vector<1x128xf32> to vector<4096x128xf32>
      %15 = arith.addf %12, %14 : vector<4096x128xf32>
      %cst_14 = arith.constant 0.000000e+00 : f32
      %16 = vector.broadcast %cst_14 : f32 to vector<4096x128xf32>
      %17 = arith.cmpf oge, %15, %16 : vector<4096x128xf32>
      %cst_15 = arith.constant 1.000000e-01 : f32
      %18 = vector.broadcast %cst_15 : f32 to vector<4096x128xf32>
      %19 = arith.mulf %18, %15 : vector<4096x128xf32>
      %20 = arith.select %17, %15, %19 : vector<4096x128xi1>, vector<4096x128xf32>
      %21 = arith.truncf %20 : vector<4096x128xf32> to vector<4096x128xbf16>
      %c0_16 = arith.constant 0 : index
      %c0_17 = arith.constant 0 : index
      %22 = vector.load %arg6[%c0_16, %c0_17] : memref<4096x128xbf16, #tpu.memory_space<vmem>>, vector<4096x128xbf16>
      tpu.vector_store %arg6[%c0_16, %c0_17], %21 {strides = array<i32>} : memref<4096x128xbf16, #tpu.memory_space<vmem>>, vector<4096x128xbf16>,
    } else {
    }
    return
  }
  func.func @transform_0(%arg0: i32, %arg1: i32, %arg2: i32) -> (i32, i32) {
    %c0_i32 = arith.constant 0 : i32
    return %arg0, %arg2 : i32, i32
  }
  func.func @transform_1(%arg0: i32, %arg1: i32, %arg2: i32) -> (i32, i32) {
    %c0_i32 = arith.constant 0 : i32
    return %arg2, %arg1 : i32, i32
  }
  func.func @transform_2(%arg0: i32, %arg1: i32, %arg2: i32) -> (i32, i32) {
    %c0_i32 = arith.constant 0 : i32
    %c0_i32_0 = arith.constant 0 : i32
    return %c0_i32, %arg1 : i32, i32
  }
  func.func @transform_3(%arg0: i32, %arg1: i32, %arg2: i32) -> (i32, i32) {
    %c0_i32 = arith.constant 0 : i32
    return %arg0, %arg1 : i32, i32
  }
}

</mosaic_0001>

<bundles_post_ra>
// kernel: run.1
= control target key start
LH: loop header
LB: loop body
LE: loop exit
PB: predicated region body
PF: predicated region fallthrough
CT: control target
= control target key end

     0   :  { %s16408_s12 = smov 0   ;;  %s16410_s13 = smov 0   ;;  %s19102_s0 = inlined_call_operand.vmem [shape: bf16[8192,32], index: 0, kind: input, shape index: {}]   ;;  %s19103_s1 = inlined_call_operand.vmem [shape: bf16[32,128], index: 1, kind: input, shape index: {}]   ;;  %s19104_s2 = inlined_call_operand.vmem [shape: f32[1,128], index: 2, kind: input, shape index: {}]   ;;  %s19105_s3 = inlined_call_operand.vmem [shape: bf16[8192,128], index: 3, kind: output, shape index: {}]  }
   0x1   :  { %s16412_s14 = smov 0  }
   0x2 LB: > { %s32_s15 = sadd.s32 1, %s16382_s13  ;;  %p12217_p0 = scmp.ge.s32.totalorder %s16386_s14, 1  ;;  %s16386_s14 = sphi %s16412_s14, %s13_s14   ;;  %s16382_s13 = sphi %s16410_s13, %s19141_s13   ;;  %s16378_s12 = sphi %s16408_s12, %s19140_s12  }
   0x3   : > { %p34_p1 = scmp.ge.s32.totalorder %s32_s15, 2  ;;  %p188_p2 = scmp.lt.s32.totalorder %s16386_s14, 3 }
   0x5   : > { %s19143_s15 = smov (%p34_p1, %s32_s15), 0  ;;  %p189_p3 = pnand %p12217_p0, %p188_p2 }
   0x7   : > { %192 = sbr.rel (%p189_p3) target bundleno = 800 (0x320), region = 32 }
   0xc   : > { %v16100_v0 = vld [vmem:[%s19103_s1 + $0x8] sm:$0xff]   ;;  %s12218_s18 = sshll.u32 %s16378_s12, 9  ;;  %v16101_v1 = vld [vmem:[%s19103_s1] sm:$0xff]   ;;  %vm3096_vm0 = vcmask 261120  }
   0xd   : > { %p230_p4 = scmp.lt.s32.totalorder %s12218_s18, 1023  ;;  %15556 = vmatprep.subr.bf16.mxu0 %v16100_v0  ;;  %16072 = vmatprep.subr.bf16.mxu1 %v16100_v0 }
   0xe   : > { %15557 = vmatpush3.bf16.msra.mxu0 %v16100_v0  ;;  %16074 = vmatpush3.bf16.msra.mxu1 %v16100_v0 }
   0xf   : > { %s19145_s18 = smov (!%p230_p4, %s12218_s18), 1023  ;;  %15558 = vmatprep.subr.bf16.mxu0 %v16101_v1  ;;  %16073 = vmatprep.subr.bf16.mxu1 %v16101_v1 }
  0x10   : > { %s12219_s21 = sshll.u32 %s19145_s18, 2 }
  0x11   : > { %s16440_s24 = scalar_lea.vmem %s19102_s0, %s12219_s21  ;;  %s16669_s29 = scalar_lea.vmem %s19105_s3, %s12219_s21 }
  0x12   : > { %15559 = vmatpush3.bf16.msra.mxu0 %v16101_v1  ;;  %16075 = vmatpush3.bf16.msra.mxu1 %v16101_v1  ;;  %v16102_v2 = vld [vmem:[%s16440_s24] sm:$0xff]   ;;  %v16104_v4 = vld [vmem:[%s16440_s24 + $0x8] sm:$0xff]   ;;  %v16106_v6 = vld [vmem:[%s16440_s24 + $0x10] sm:$0xff]  }
  0x13   : > { %v16103_v3 = vld [vmem:[%s16440_s24 + $0x400] sm:$0xff]   ;;  %15560 = vmatprep.mubr.msk.bf16.mxu0 %vm3096_vm0, %v16102_v2  ;;  %v16105_v5 = vld [vmem:[%s16440_s24 + $0x408] sm:$0xff]   ;;  %v16107_v7 = vld [vmem:[%s16440_s24 + $0x410] sm:$0xff]  }
  0x14   : > { %15816 = vmatprep.mubr.msk.bf16.mxu1 %vm3096_vm0, %v16103_v3  ;;  %v16108_v8 = vld [vmem:[%s16440_s24 + $0x18] sm:$0xff]   ;;  %v16110_v10 = vld [vmem:[%s16440_s24 + $0x20] sm:$0xff]   ;;  %v16112_v12 = vld [vmem:[%s16440_s24 + $0x28] sm:$0xff]  }
  0x15   : > { %15561 = vmatmul.mubr.msk.bf16.vlgmr.msra.gmra.mxu0 %vm3096_vm0, %v16104_v4  ;;  %15817 = vmatmul.mubr.msk.bf16.vlgmr.msra.gmra.mxu1 %vm3096_vm0, %v16105_v5  ;;  %v16109_v9 = vld [vmem:[%s16440_s24 + $0x418] sm:$0xff]   ;;  %v16111_v11 = vld [vmem:[%s16440_s24 + $0x420] sm:$0xff]   ;;  %v16113_v13 = vld [vmem:[%s16440_s24 + $0x428] sm:$0xff]  }
  0x16   : > { %15564 = vmatprep.mubr.msk.bf16.mxu0 %vm3096_vm0, %v16106_v6  ;;  %15820 = vmatprep.mubr.msk.bf16.mxu1 %vm3096_vm0, %v16107_v7  ;;  %v16114_v14 = vld [vmem:[%s16440_s24 + $0x30] sm:$0xff]   ;;  %v16116_v16 = vld [vmem:[%s16440_s24 + $0x38] sm:$0xff]   ;;  %v16118_v18 = vld [vmem:[%s16440_s24 + $0x40] sm:$0xff]  }
  0x17   : > { %v16115_v15 = vld [vmem:[%s16440_s24 + $0x430] sm:$0xff]   ;;  %v16117_v17 = vld [vmem:[%s16440_s24 + $0x438] sm:$0xff]   ;;  %v16119_v19 = vld [vmem:[%s16440_s24 + $0x440] sm:$0xff]  }
  0x18   : > { %v16120_v20 = vld [vmem:[%s16440_s24 + $0x48] sm:$0xff]   ;;  %v16122_v22 = vld [vmem:[%s16440_s24 + $0x50] sm:$0xff]   ;;  %v16124_v24 = vld [vmem:[%s16440_s24 + $0x58] sm:$0xff]  }
  0x19   : > { %v16121_v21 = vld [vmem:[%s16440_s24 + $0x448] sm:$0xff]   ;;  %v16123_v23 = vld [vmem:[%s16440_s24 + $0x450] sm:$0xff]   ;;  %v16125_v25 = vld [vmem:[%s16440_s24 + $0x458] sm:$0xff]  }
  0x1a   : > { %v16126_v26 = vld [vmem:[%s16440_s24 + $0x60] sm:$0xff]   ;;  %v16128_v28 = vld [vmem:[%s16440_s24 + $0x68] sm:$0xff]   ;;  %v16130_v30 = vld [vmem:[%s16440_s24 + $0x70] sm:$0xff]  }
  0x1b   : > { %v16127_v27 = vld [vmem:[%s16440_s24 + $0x460] sm:$0xff]   ;;  %v16129_v29 = vld [vmem:[%s16440_s24 + $0x468] sm:$0xff]   ;;  %v16131_v31 = vld [vmem:[%s16440_s24 + $0x470] sm:$0xff]  }
  0x1c   : > { %v16132_v32 = vld [vmem:[%s16440_s24 + $0x78] sm:$0xff]   ;;  %v16134_v34 = vld [vmem:[%s16440_s24 + $0x80] sm:$0xff]   ;;  %v16136_v36 = vld [vmem:[%s16440_s24 + $0x88] sm:$0xff]  }
  0x1d   : > { %15565 = vmatmul.mubr.msk.bf16.gmra.mxu0 %vm3096_vm0, %v16108_v8  ;;  %15821 = vmatmul.mubr.msk.bf16.gmra.mxu1 %vm3096_vm0, %v16109_v9  ;;  %v16133_v33 = vld [vmem:[%s16440_s24 + $0x478] sm:$0xff]   ;;  %v16135_v35 = vld [vmem:[%s16440_s24 + $0x480] sm:$0xff]   ;;  %v16137_v37 = vld [vmem:[%s16440_s24 + $0x488] sm:$0xff]  }
  0x1e   : > { %15568 = vmatprep.mubr.msk.bf16.mxu0 %vm3096_vm0, %v16110_v10  ;;  %15824 = vmatprep.mubr.msk.bf16.mxu1 %vm3096_vm0, %v16111_v11  ;;  %v16138_v38 = vld [vmem:[%s16440_s24 + $0x90] sm:$0xff]   ;;  %v16140_v40 = vld [vmem:[%s16440_s24 + $0x98] sm:$0xff]   ;;  %v16142_v42 = vld [vmem:[%s16440_s24 + $0xa0] sm:$0xff]  }
  0x1f   : > { %v16139_v39 = vld [vmem:[%s16440_s24 + $0x490] sm:$0xff]   ;;  %v16141_v41 = vld [vmem:[%s16440_s24 + $0x498] sm:$0xff]   ;;  %v16143_v43 = vld [vmem:[%s16440_s24 + $0x4a0] sm:$0xff]  }
  0x20   : > { %v16144_v44 = vld [vmem:[%s16440_s24 + $0xa8] sm:$0xff]   ;;  %v16146_v46 = vld [vmem:[%s16440_s24 + $0xb0] sm:$0xff]   ;;  %v16148_v48 = vld [vmem:[%s16440_s24 + $0xb8] sm:$0xff]  }
  0x21   : > { %v16145_v45 = vld [vmem:[%s16440_s24 + $0x4a8] sm:$0xff]   ;;  %v16147_v47 = vld [vmem:[%s16440_s24 + $0x4b0] sm:$0xff]   ;;  %v16149_v49 = vld [vmem:[%s16440_s24 + $0x4b8] sm:$0xff]  }
  0x22   : > { %v16150_v50 = vld [vmem:[%s16440_s24 + $0xc0] sm:$0xff]   ;;  %v16152_v52 = vld [vmem:[%s16440_s24 + $0xc8] sm:$0xff]   ;;  %v16154_v54 = vld [vmem:[%s16440_s24 + $0xd0] sm:$0xff]  }
  0x23   : > { %v16151_v51 = vld [vmem:[%s16440_s24 + $0x4c0] sm:$0xff]   ;;  %v16153_v53 = vld [vmem:[%s16440_s24 + $0x4c8] sm:$0xff]   ;;  %v16155_v55 = vld [vmem:[%s16440_s24 + $0x4d0] sm:$0xff]  }
  0x24   : > { %v16156_v56 = vld [vmem:[%s16440_s24 + $0xd8] sm:$0xff]   ;;  %v16158_v58 = vld [vmem:[%s16440_s24 + $0xe0] sm:$0xff]   ;;  %v16160_v60 = vld [vmem:[%s16440_s24 + $0xe8] sm:$0xff]  }
  0x25   : > { %15569 = vmatmul.mubr.msk.bf16.gmra.mxu0 %vm3096_vm0, %v16112_v12  ;;  %15825 = vmatmul.mubr.msk.bf16.gmra.mxu1 %vm3096_vm0, %v16113_v13  ;;  %v16157_v57 = vld [vmem:[%s16440_s24 + $0x4d8] sm:$0xff]   ;;  %v16159_v59 = vld [vmem:[%s16440_s24 + $0x4e0] sm:$0xff]   ;;  %v16161_v61 = vld [vmem:[%s16440_s24 + $0x4e8] sm:$0xff]  }
  0x26   : > { %15572 = vmatprep.mubr.msk.bf16.mxu0 %vm3096_vm0, %v16114_v14  ;;  %15828 = vmatprep.mubr.msk.bf16.mxu1 %vm3096_vm0, %v16115_v15  ;;  %v16162_v62 = vld [vmem:[%s16440_s24 + $0xf0] sm:$0xff]   ;;  %v16164_v0 = vld [vmem:[%s16440_s24 + $0xf8] sm:$0xff]   ;;  %v16166_v2 = vld [vmem:[%s16440_s24 + $0x100] sm:$0xff]  }
  0x27   : > { %v16163_v63 = vld [vmem:[%s16440_s24 + $0x4f0] sm:$0xff]   ;;  %v16165_v1 = vld [vmem:[%s16440_s24 + $0x4f8] sm:$0xff]   ;;  %v16167_v3 = vld [vmem:[%s16440_s24 + $0x500] sm:$0xff]  }
  0x28   : > { %v16168_v4 = vld [vmem:[%s16440_s24 + $0x108] sm:$0xff]   ;;  %v16170_v6 = vld [vmem:[%s16440_s24 + $0x110] sm:$0xff]   ;;  %v16172_v8 = vld [vmem:[%s16440_s24 + $0x118] sm:$0xff]  }
  0x29   : > { %v16169_v5 = vld [vmem:[%s16440_s24 + $0x508] sm:$0xff]   ;;  %v16171_v7 = vld [vmem:[%s16440_s24 + $0x510] sm:$0xff]   ;;  %v16173_v9 = vld [vmem:[%s16440_s24 + $0x518] sm:$0xff]  }
  0x2a   : > { %v16174_v10 = vld [vmem:[%s16440_s24 + $0x120] sm:$0xff]   ;;  %v16176_v12 = vld [vmem:[%s16440_s24 + $0x128] sm:$0xff]   ;;  %v16178_v14 = vld [vmem:[%s16440_s24 + $0x130] sm:$0xff]  }
  0x2b   : > { %v16175_v11 = vld [vmem:[%s16440_s24 + $0x520] sm:$0xff]   ;;  %v16177_v13 = vld [vmem:[%s16440_s24 + $0x528] sm:$0xff]   ;;  %v16179_v15 = vld [vmem:[%s16440_s24 + $0x530] sm:$0xff]  }
  0x2d   : > { %15573 = vmatmul.mubr.msk.bf16.gmra.mxu0 %vm3096_vm0, %v16116_v16  ;;  %15829 = vmatmul.mubr.msk.bf16.gmra.mxu1 %vm3096_vm0, %v16117_v17  ;;  %v16180_v16 = vld [vmem:[%s16440_s24 + $0x138] sm:$0xff]  }
  0x2e   : > { %15576 = vmatprep.mubr.msk.bf16.mxu0 %vm3096_vm0, %v16118_v18  ;;  %15832 = vmatprep.mubr.msk.bf16.mxu1 %vm3096_vm0, %v16119_v19  ;;  %v16181_v17 = vld [vmem:[%s16440_s24 + $0x538] sm:$0xff]   ;;  %v16182_v18 = vld [vmem:[%s16440_s24 + $0x140] sm:$0xff]  }
  0x2f   : > { %v16183_v19 = vld [vmem:[%s16440_s24 + $0x540] sm:$0xff]  }
  0x35   : > { %15577 = vmatmul.mubr.msk.bf16.gmra.mxu0 %vm3096_vm0, %v16120_v20  ;;  %15833 = vmatmul.mubr.msk.bf16.gmra.mxu1 %vm3096_vm0, %v16121_v21  ;;  %v16184_v20 = vld [vmem:[%s16440_s24 + $0x148] sm:$0xff]  }
  0x36   : > { %15580 = vmatprep.mubr.msk.bf16.mxu0 %vm3096_vm0, %v16122_v22  ;;  %15836 = vmatprep.mubr.msk.bf16.mxu1 %vm3096_vm0, %v16123_v23  ;;  %v16185_v21 = vld [vmem:[%s16440_s24 + $0x548] sm:$0xff]   ;;  %v16186_v22 = vld [vmem:[%s16440_s24 + $0x150] sm:$0xff]  }
  0x37   : > { %v16187_v23 = vld [vmem:[%s16440_s24 + $0x550] sm:$0xff]  }
  0x3d   : > { %15581 = vmatmul.mubr.msk.bf16.gmra.mxu0 %vm3096_vm0, %v16124_v24  ;;  %15837 = vmatmul.mubr.msk.bf16.gmra.mxu1 %vm3096_vm0, %v16125_v25  ;;  %v16188_v24 = vld [vmem:[%s16440_s24 + $0x158] sm:$0xff]  }
  0x3e   : > { %15584 = vmatprep.mubr.msk.bf16.mxu0 %vm3096_vm0, %v16126_v26  ;;  %15840 = vmatprep.mubr.msk.bf16.mxu1 %vm3096_vm0, %v16127_v27  ;;  %v16189_v25 = vld [vmem:[%s16440_s24 + $0x558] sm:$0xff]   ;;  %v16190_v26 = vld [vmem:[%s16440_s24 + $0x160] sm:$0xff]  }
  0x3f   : > { %v16191_v27 = vld [vmem:[%s16440_s24 + $0x560] sm:$0xff]  }
  0x45   : > { %15585 = vmatmul.mubr.msk.bf16.gmra.mxu0 %vm3096_vm0, %v16128_v28  ;;  %15841 = vmatmul.mubr.msk.bf16.gmra.mxu1 %vm3096_vm0, %v16129_v29  ;;  %v16192_v28 = vld [vmem:[%s16440_s24 + $0x168] sm:$0xff]  }
  0x46   : > { %15588 = vmatprep.mubr.msk.bf16.mxu0 %vm3096_vm0, %v16130_v30  ;;  %15844 = vmatprep.mubr.msk.bf16.mxu1 %vm3096_vm0, %v16131_v31  ;;  %v16193_v29 = vld [vmem:[%s16440_s24 + $0x568] sm:$0xff]   ;;  %v16194_v30 = vld [vmem:[%s16440_s24 + $0x170] sm:$0xff]  }
  0x47   : > { %v16195_v31 = vld [vmem:[%s16440_s24 + $0x570] sm:$0xff]  }
  0x4d   : > { %15589 = vmatmul.mubr.msk.bf16.gmra.mxu0 %vm3096_vm0, %v16132_v32  ;;  %15845 = vmatmul.mubr.msk.bf16.gmra.mxu1 %vm3096_vm0, %v16133_v33  ;;  %v16196_v32 = vld [vmem:[%s16440_s24 + $0x178] sm:$0xff]  }
  0x4e   : > { %15592 = vmatprep.mubr.msk.bf16.mxu0 %vm3096_vm0, %v16134_v34  ;;  %15848 = vmatprep.mubr.msk.bf16.mxu1 %vm3096_vm0, %v16135_v35  ;;  %v16197_v33 = vld [vmem:[%s16440_s24 + $0x578] sm:$0xff]   ;;  %v16198_v34 = vld [vmem:[%s16440_s24 + $0x180] sm:$0xff]  }
  0x4f   : > { %v16199_v35 = vld [vmem:[%s16440_s24 + $0x580] sm:$0xff]  }
  0x55   : > { %15593 = vmatmul.mubr.msk.bf16.gmra.mxu0 %vm3096_vm0, %v16136_v36  ;;  %15849 = vmatmul.mubr.msk.bf16.gmra.mxu1 %vm3096_vm0, %v16137_v37  ;;  %v16641_v36 = vld [vmem:[%s19104_s2] ss:$0 sm:$0xff]  ;;  %v16200_v37 = vld [vmem:[%s16440_s24 + $0x188] sm:$0xff]  }
  0x56   : > { %15596 = vmatprep.mubr.msk.bf16.mxu0 %vm3096_vm0, %v16138_v38  ;;  %15852 = vmatprep.mubr.msk.bf16.mxu1 %vm3096_vm0, %v16139_v39  ;;  %v16201_v38 = vld [vmem:[%s16440_s24 + $0x588] sm:$0xff]   ;;  %v16202_v39 = vld [vmem:[%s16440_s24 + $0x190] sm:$0xff]  }
  0x5d   : > { %15597 = vmatmul.mubr.msk.bf16.gmra.mxu0 %vm3096_vm0, %v16140_v40  ;;  %15853 = vmatmul.mubr.msk.bf16.gmra.mxu1 %vm3096_vm0, %v16141_v41  ;;  %v16203_v40 = vld [vmem:[%s16440_s24 + $0x590] sm:$0xff]  }
  0x5e   : > { %15600 = vmatprep.mubr.msk.bf16.mxu0 %vm3096_vm0, %v16142_v42  ;;  %15856 = vmatprep.mubr.msk.bf16.mxu1 %vm3096_vm0, %v16143_v43 }
  0x65   : > { %15601 = vmatmul.mubr.msk.bf16.gmra.mxu0 %vm3096_vm0, %v16144_v44  ;;  %15857 = vmatmul.mubr.msk.bf16.gmra.mxu1 %vm3096_vm0, %v16145_v45 }
  0x66   : > { %15604 = vmatprep.mubr.msk.bf16.mxu0 %vm3096_vm0, %v16146_v46  ;;  %15860 = vmatprep.mubr.msk.bf16.mxu1 %vm3096_vm0, %v16147_v47 }
  0x6d   : > { %15605 = vmatmul.mubr.msk.bf16.gmra.mxu0 %vm3096_vm0, %v16148_v48  ;;  %15861 = vmatmul.mubr.msk.bf16.gmra.mxu1 %vm3096_vm0, %v16149_v49 }
  0x6e   : > { %15608 = vmatprep.mubr.msk.bf16.mxu0 %vm3096_vm0, %v16150_v50  ;;  %15864 = vmatprep.mubr.msk.bf16.mxu1 %vm3096_vm0, %v16151_v51 }
  0x75   : > { %15609 = vmatmul.mubr.msk.bf16.gmra.mxu0 %vm3096_vm0, %v16152_v52  ;;  %15865 = vmatmul.mubr.msk.bf16.gmra.mxu1 %vm3096_vm0, %v16153_v53  ;;  %v16204_v52 = vld [vmem:[%s16440_s24 + $0x198] sm:$0xff]  }
  0x76   : > { %15612 = vmatprep.mubr.msk.bf16.mxu0 %vm3096_vm0, %v16154_v54  ;;  %15868 = vmatprep.mubr.msk.bf16.mxu1 %vm3096_vm0, %v16155_v55 }
  0x7d   : > { %15613 = vmatmul.mubr.msk.bf16.gmra.mxu0 %vm3096_vm0, %v16156_v56  ;;  %15869 = vmatmul.mubr.msk.bf16.gmra.mxu1 %vm3096_vm0, %v16157_v57  ;;  %v16205_v57 = vld [vmem:[%s16440_s24 + $0x598] sm:$0xff]  }
  0x7e   : > { %15616 = vmatprep.mubr.msk.bf16.mxu0 %vm3096_vm0, %v16158_v58  ;;  %15872 = vmatprep.mubr.msk.bf16.mxu1 %vm3096_vm0, %v16159_v59  ;;  %v16206_v58 = vld [vmem:[%s16440_s24 + $0x1a0] sm:$0xff]  }
  0x85   : > { %15617 = vmatmul.mubr.msk.bf16.gmra.mxu0 %vm3096_vm0, %v16160_v60  ;;  %15873 = vmatmul.mubr.msk.bf16.gmra.mxu1 %vm3096_vm0, %v16161_v61 }
  0x86   : > { %15620 = vmatprep.mubr.msk.bf16.mxu0 %vm3096_vm0, %v16162_v62  ;;  %15876 = vmatprep.mubr.msk.bf16.mxu1 %vm3096_vm0, %v16163_v63  ;;  %v16207_v63 = vld [vmem:[%s16440_s24 + $0x5a0] sm:$0xff]  }
  0x8d   : > { %15621 = vmatmul.mubr.msk.bf16.gmra.mxu0 %vm3096_vm0, %v16164_v0  ;;  %15877 = vmatmul.mubr.msk.bf16.gmra.mxu1 %vm3096_vm0, %v16165_v1 }
  0x8e   : > { %15624 = vmatprep.mubr.msk.bf16.mxu0 %vm3096_vm0, %v16166_v2  ;;  %15880 = vmatprep.mubr.msk.bf16.mxu1 %vm3096_vm0, %v16167_v3 }
  0x95   : > { %15625 = vmatmul.mubr.msk.bf16.gmra.mxu0 %vm3096_vm0, %v16168_v4  ;;  %15881 = vmatmul.mubr.msk.bf16.gmra.mxu1 %vm3096_vm0, %v16169_v5 }
  0x96   : > { %15628 = vmatprep.mubr.msk.bf16.mxu0 %vm3096_vm0, %v16170_v6  ;;  %15884 = vmatprep.mubr.msk.bf16.mxu1 %vm3096_vm0, %v16171_v7 }
  0x9d   : > { %15629 = vmatmul.mubr.msk.bf16.gmra.mxu0 %vm3096_vm0, %v16172_v8  ;;  %15885 = vmatmul.mubr.msk.bf16.gmra.mxu1 %vm3096_vm0, %v16173_v9 }
  0x9e   : > { %15632 = vmatprep.mubr.msk.bf16.mxu0 %vm3096_vm0, %v16174_v10  ;;  %15888 = vmatprep.mubr.msk.bf16.mxu1 %vm3096_vm0, %v16175_v11 }
  0xa5   : > { %15633 = vmatmul.mubr.msk.bf16.gmra.mxu0 %vm3096_vm0, %v16176_v12  ;;  %15889 = vmatmul.mubr.msk.bf16.gmra.mxu1 %vm3096_vm0, %v16177_v13 }
  0xa6   : > { %15636 = vmatprep.mubr.msk.bf16.mxu0 %vm3096_vm0, %v16178_v14  ;;  %15892 = vmatprep.mubr.msk.bf16.mxu1 %vm3096_vm0, %v16179_v15 }
  0xad   : > { %15637 = vmatmul.mubr.msk.bf16.gmra.mxu0 %vm3096_vm0, %v16180_v16  ;;  %15893 = vmatmul.mubr.msk.bf16.gmra.mxu1 %vm3096_vm0, %v16181_v17  ;;  %v16208_v16 = vld [vmem:[%s16440_s24 + $0x1a8] sm:$0xff]  }
  0xae   : > { %15640 = vmatprep.mubr.msk.bf16.mxu0 %vm3096_vm0, %v16182_v18  ;;  %15896 = vmatprep.mubr.msk.bf16.mxu1 %vm3096_vm0, %v16183_v19 }
  0xb5   : > { %15641 = vmatmul.mubr.msk.bf16.gmra.mxu0 %vm3096_vm0, %v16184_v20  ;;  %15897 = vmatmul.mubr.msk.bf16.gmra.mxu1 %vm3096_vm0, %v16185_v21  ;;  %v16209_v21 = vld [vmem:[%s16440_s24 + $0x5a8] sm:$0xff]  }
  0xb6   : > { %15644 = vmatprep.mubr.msk.bf16.mxu0 %vm3096_vm0, %v16186_v22  ;;  %15900 = vmatprep.mubr.msk.bf16.mxu1 %vm3096_vm0, %v16187_v23 }
  0xbd   : > { %15645 = vmatmul.mubr.msk.bf16.gmra.mxu0 %vm3096_vm0, %v16188_v24  ;;  %15901 = vmatmul.mubr.msk.bf16.gmra.mxu1 %vm3096_vm0, %v16189_v25 }
  0xbe   : > { %15648 = vmatprep.mubr.msk.bf16.mxu0 %vm3096_vm0, %v16190_v26  ;;  %15904 = vmatprep.mubr.msk.bf16.mxu1 %vm3096_vm0, %v16191_v27  ;;  %v16210_v27 = vld [vmem:[%s16440_s24 + $0x1b0] sm:$0xff]  }
  0xc5   : > { %15649 = vmatmul.mubr.msk.bf16.gmra.mxu0 %vm3096_vm0, %v16192_v28  ;;  %15905 = vmatmul.mubr.msk.bf16.gmra.mxu1 %vm3096_vm0, %v16193_v29  ;;  %v16211_v28 = vld [vmem:[%s16440_s24 + $0x5b0] sm:$0xff]  }
  0xc6   : > { %15652 = vmatprep.mubr.msk.bf16.mxu0 %vm3096_vm0, %v16194_v30  ;;  %15908 = vmatprep.mubr.msk.bf16.mxu1 %vm3096_vm0, %v16195_v31 }
  0xcd   : > { %15653 = vmatmul.mubr.msk.bf16.gmra.mxu0 %vm3096_vm0, %v16196_v32  ;;  %15909 = vmatmul.mubr.msk.bf16.gmra.mxu1 %vm3096_vm0, %v16197_v33 }
  0xce   : > { %15656 = vmatprep.mubr.msk.bf16.mxu0 %vm3096_vm0, %v16198_v34  ;;  %15912 = vmatprep.mubr.msk.bf16.mxu1 %vm3096_vm0, %v16199_v35 }
  0xd5   : > { %v15562_v41 = vpop.f32.mrf.mxu0  ;;  %15657 = vmatmul.mubr.msk.bf16.gmra.mxu0 %vm3096_vm0, %v16200_v37  ;;  %v15818_v43 = vpop.f32.mrf.mxu1  ;;  %15913 = vmatmul.mubr.msk.bf16.gmra.mxu1 %vm3096_vm0, %v16201_v38 }
  0xd6   : > { %v7494_v42 = vadd.f32 %v15562_v41, %v16641_v36  ;;  %15660 = vmatprep.mubr.msk.bf16.mxu0 %vm3096_vm0, %v16202_v39  ;;  %v7750_v44 = vadd.f32 %v15818_v43, %v16641_v36  ;;  %15916 = vmatprep.mubr.msk.bf16.mxu1 %vm3096_vm0, %v16203_v40 }
  0xd7   : > { %v3899_v45 = vpop.f32.mrf.mxu0  ;;  %v4923_v48 = vpop.f32.mrf.mxu1 }
  0xd8   : > { %vm8006_vm1 = vcmp.ge.f32.partialorder %v7494_v42, 0.0  ;;  %v8518_v46 = vmul.f32 0.1, %v7494_v42  ;;  %v7492_v47 = vadd.f32 %v16641_v36, %v3899_v45  ;;  %vm8262_vm2 = vcmp.ge.f32.partialorder %v7750_v44, 0.0 }
  0xd9   : > { %v8774_v49 = vmul.f32 0.1, %v7750_v44  ;;  %v7748_v50 = vadd.f32 %v16641_v36, %v4923_v48  ;;  %v15563_v51 = vpop.f32.mrf.mxu0  ;;  %v15819_v56 = vpop.f32.mrf.mxu1 }
  0xda   : > { %v9030_v53 = vsel %vm8006_vm1, %v7494_v42, %v8518_v46  ;;  %vm8004_vm3 = vcmp.ge.f32.partialorder %v7492_v47, 0.0  ;;  %v8516_v54 = vmul.f32 0.1, %v7492_v47  ;;  %v7495_v55 = vadd.f32 %v15563_v51, %v16641_v36 }
  0xdb   : > { %v9286_v59 = vsel %vm8262_vm2, %v7750_v44, %v8774_v49  ;;  %vm8260_vm4 = vcmp.ge.f32.partialorder %v7748_v50, 0.0  ;;  %v8772_v60 = vmul.f32 0.1, %v7748_v50  ;;  %v7751_v61 = vadd.f32 %v15819_v56, %v16641_v36  ;;  %v3902_v62 = vpop.f32.mrf.mxu0  ;;  %v4926_v3 = vpop.f32.mrf.mxu1 }
  0xdc   : > { %v9028_v0 = vsel %vm8004_vm3, %v7492_v47, %v8516_v54  ;;  %vm8007_vm5 = vcmp.ge.f32.partialorder %v7495_v55, 0.0  ;;  %v8519_v1 = vmul.f32 0.1, %v7495_v55  ;;  %v7493_v2 = vadd.f32 %v16641_v36, %v3902_v62  ;;  %v16212_v54 = vld [vmem:[%s16440_s24 + $0x1b8] sm:$0xff]  }
  0xdd   : > { %v9284_v4 = vsel %vm8260_vm4, %v7748_v50, %v8772_v60  ;;  %vm8263_vm6 = vcmp.ge.f32.partialorder %v7751_v61, 0.0  ;;  %v8775_v5 = vmul.f32 0.1, %v7751_v61  ;;  %v7749_v6 = vadd.f32 %v16641_v36, %v4926_v3  ;;  %v15566_v7 = vpop.f32.mrf.mxu0  ;;  %15661 = vmatmul.mubr.msk.bf16.gmra.mxu0 %vm3096_vm0, %v16204_v52  ;;  %v15822_v11 = vpop.f32.mrf.mxu1  ;;  %15917 = vmatmul.mubr.msk.bf16.gmra.mxu1 %vm3096_vm0, %v16205_v57 }
  0xde   : > { %v9031_v8 = vsel %vm8007_vm5, %v7495_v55, %v8519_v1  ;;  %vm8005_vm7 = vcmp.ge.f32.partialorder %v7493_v2, 0.0  ;;  %v8517_v9 = vmul.f32 0.1, %v7493_v2  ;;  %v7498_v10 = vadd.f32 %v15566_v7, %v16641_v36  ;;  %15664 = vmatprep.mubr.msk.bf16.mxu0 %vm3096_vm0, %v16206_v58  ;;  %15920 = vmatprep.mubr.msk.bf16.mxu1 %vm3096_vm0, %v16207_v63  ;;  %v16213_v58 = vld [vmem:[%s16440_s24 + $0x5b8] sm:$0xff]  }
  0xdf   : > { %v13771_v12 = vpack.c.bf16 %v9031_v8, %v9030_v53  ;;  %v9287_v13 = vsel %vm8263_vm6, %v7751_v61, %v8775_v5  ;;  %vm8261_vm8 = vcmp.ge.f32.partialorder %v7749_v6, 0.0  ;;  %v8773_v14 = vmul.f32 0.1, %v7749_v6  ;;  %v3915_v15 = vpop.f32.mrf.mxu0  ;;  %v4939_v20 = vpop.f32.mrf.mxu1 }
  0xe0   : > { %v14411_v17 = vpack.c.bf16 %v9287_v13, %v9286_v59  ;;  %v9029_v18 = vsel %vm8005_vm7, %v7493_v2, %v8517_v9  ;;  %vm8010_vm9 = vcmp.ge.f32.partialorder %v7498_v10, 0.0  ;;  %v8522_v19 = vmul.f32 0.1, %v7498_v10 }
  0xe1   : > { %15043 = vst [vmem:[%s16669_s29 + $0x8] sm:$0xff] %v13771_v12   ;;  %v13766_v22 = vpack.c.bf16 %v9029_v18, %v9028_v0  ;;  %v9285_v23 = vsel %vm8261_vm8, %v7749_v6, %v8773_v14  ;;  %v7754_v24 = vadd.f32 %v15822_v11, %v16641_v36  ;;  %v7496_v25 = vadd.f32 %v16641_v36, %v3915_v15  ;;  %v15567_v26 = vpop.f32.mrf.mxu0  ;;  %v15823_v33 = vpop.f32.mrf.mxu1  ;;  %v16214_v0 = vld [vmem:[%s16440_s24 + $0x1c0] sm:$0xff]  }
  0xe2   : > { %15171 = vst [vmem:[%s16669_s29 + $0x408] sm:$0xff] %v14411_v17   ;;  %v14406_v29 = vpack.c.bf16 %v9285_v23, %v9284_v4  ;;  %v9034_v30 = vsel %vm8010_vm9, %v7498_v10, %v8522_v19  ;;  %v7752_v31 = vadd.f32 %v16641_v36, %v4939_v20  ;;  %v7499_v32 = vadd.f32 %v15567_v26, %v16641_v36  ;;  %v16215_v10 = vld [vmem:[%s16440_s24 + $0x5c0] sm:$0xff]  }
  0xe3   : > { %13767 = vst [vmem:[%s16669_s29] sm:$0xff] %v13766_v22   ;;  %vm8266_vm10 = vcmp.ge.f32.partialorder %v7754_v24, 0.0  ;;  %v8778_v34 = vmul.f32 0.1, %v7754_v24  ;;  %vm8008_vm11 = vcmp.ge.f32.partialorder %v7496_v25, 0.0  ;;  %v8520_v35 = vmul.f32 0.1, %v7496_v25  ;;  %v3918_v37 = vpop.f32.mrf.mxu0  ;;  %v4942_v40 = vpop.f32.mrf.mxu1 }
  0xe4   : > { %15170 = vst [vmem:[%s16669_s29 + $0x400] sm:$0xff] %v14406_v29   ;;  %vm8264_vm12 = vcmp.ge.f32.partialorder %v7752_v31, 0.0  ;;  %v8776_v38 = vmul.f32 0.1, %v7752_v31  ;;  %vm8011_vm13 = vcmp.ge.f32.partialorder %v7499_v32, 0.0  ;;  %v7755_v43 = vadd.f32 %v15823_v33, %v16641_v36 }
  0xe5   : > { %v8523_v39 = vmul.f32 0.1, %v7499_v32  ;;  %v9290_v41 = vsel %vm8266_vm10, %v7754_v24, %v8778_v34  ;;  %v9032_v42 = vsel %vm8008_vm11, %v7496_v25, %v8520_v35  ;;  %v7497_v44 = vadd.f32 %v16641_v36, %v3918_v37  ;;  %v15570_v45 = vpop.f32.mrf.mxu0  ;;  %15665 = vmatmul.mubr.msk.bf16.gmra.mxu0 %vm3096_vm0, %v16208_v16  ;;  %v15826_v50 = vpop.f32.mrf.mxu1  ;;  %15921 = vmatmul.mubr.msk.bf16.gmra.mxu1 %vm3096_vm0, %v16209_v21 }
  0xe6   : > { %v9288_v46 = vsel %vm8264_vm12, %v7752_v31, %v8776_v38  ;;  %v7753_v48 = vadd.f32 %v16641_v36, %v4942_v40  ;;  %v7502_v49 = vadd.f32 %v15570_v45, %v16641_v36  ;;  %vm8267_vm14 = vcmp.ge.f32.partialorder %v7755_v43, 0.0  ;;  %15668 = vmatprep.mubr.msk.bf16.mxu0 %vm3096_vm0, %v16210_v27  ;;  %15924 = vmatprep.mubr.msk.bf16.mxu1 %vm3096_vm0, %v16211_v28  ;;  %v16216_v27 = vld [vmem:[%s16440_s24 + $0x1c8] sm:$0xff]   ;;  %v16219_v38 = vld [vmem:[%s16440_s24 + $0x5d0] sm:$0xff]  }
  0xe7   : > { %v9035_v47 = vsel %vm8011_vm13, %v7499_v32, %v8523_v39  ;;  %v8779_v52 = vmul.f32 0.1, %v7755_v43  ;;  %vm8009_vm15 = vcmp.ge.f32.partialorder %v7497_v44, 0.0  ;;  %v3931_v53 = vpop.f32.mrf.mxu0  ;;  %v8521_v55 = vmul.f32 0.1, %v7497_v44  ;;  %v4955_v57 = vpop.f32.mrf.mxu1  ;;  %v16217_v31 = vld [vmem:[%s16440_s24 + $0x5c8] sm:$0xff]  }
  0xe8   : > { %v13781_v51 = vpack.c.bf16 %v9035_v47, %v9034_v30  ;;  %vm8265_vm1 = vcmp.ge.f32.partialorder %v7753_v48, 0.0  ;;  %v8777_v56 = vmul.f32 0.1, %v7753_v48  ;;  %vm8014_vm2 = vcmp.ge.f32.partialorder %v7502_v49, 0.0  ;;  %v16218_v32 = vld [vmem:[%s16440_s24 + $0x1d0] sm:$0xff]  }
  0xe9   : > { %v9291_v59 = vsel %vm8267_vm14, %v7755_v43, %v8779_v52  ;;  %v8526_v60 = vmul.f32 0.1, %v7502_v49  ;;  %v7758_v61 = vadd.f32 %v15826_v50, %v16641_v36  ;;  %v7500_v62 = vadd.f32 %v16641_v36, %v3931_v53  ;;  %v15571_v63 = vpop.f32.mrf.mxu0  ;;  %v15827_v5 = vpop.f32.mrf.mxu1 }
  0xea   : > { %15045 = vst [vmem:[%s16669_s29 + $0x18] sm:$0xff] %v13781_v51   ;;  %v14421_v1 = vpack.c.bf16 %v9291_v59, %v9290_v41  ;;  %v9033_v2 = vsel %vm8009_vm15, %v7497_v44, %v8521_v55  ;;  %v9289_v3 = vsel %vm8265_vm1, %v7753_v48, %v8777_v56  ;;  %v7756_v4 = vadd.f32 %v16641_v36, %v4955_v57 }
  0xeb   : > { %v13776_v6 = vpack.c.bf16 %v9033_v2, %v9032_v42  ;;  %v14416_v7 = vpack.c.bf16 %v9289_v3, %v9288_v46  ;;  %v9038_v8 = vsel %vm8014_vm2, %v7502_v49, %v8526_v60  ;;  %vm8270_vm3 = vcmp.ge.f32.partialorder %v7758_v61, 0.0  ;;  %v3934_v9 = vpop.f32.mrf.mxu0  ;;  %v4958_v13 = vpop.f32.mrf.mxu1 }
  0xec   : > { %15173 = vst [vmem:[%s16669_s29 + $0x418] sm:$0xff] %v14421_v1   ;;  %v8782_v11 = vmul.f32 0.1, %v7758_v61  ;;  %vm8012_vm4 = vcmp.ge.f32.partialorder %v7500_v62, 0.0  ;;  %v8524_v12 = vmul.f32 0.1, %v7500_v62  ;;  %v7503_v15 = vadd.f32 %v15571_v63, %v16641_v36 }
  0xed   : > { %vm8268_vm5 = vcmp.ge.f32.partialorder %v7756_v4, 0.0  ;;  %15044 = vst [vmem:[%s16669_s29 + $0x10] sm:$0xff] %v13776_v6   ;;  %15172 = vst [vmem:[%s16669_s29 + $0x410] sm:$0xff] %v14416_v7   ;;  %v8780_v14 = vmul.f32 0.1, %v7756_v4  ;;  %v7759_v16 = vadd.f32 %v15827_v5, %v16641_v36  ;;  %v7501_v17 = vadd.f32 %v16641_v36, %v3934_v9  ;;  %v15574_v18 = vpop.f32.mrf.mxu0  ;;  %15669 = vmatmul.mubr.msk.bf16.gmra.mxu0 %vm3096_vm0, %v16212_v54  ;;  %v15830_v23 = vpop.f32.mrf.mxu1  ;;  %v16220_v1 = vld [vmem:[%s16440_s24 + $0x1d8] sm:$0xff]  }
  0xee   : > { %v9294_v19 = vsel %vm8270_vm3, %v7758_v61, %v8782_v11  ;;  %v9036_v20 = vsel %vm8012_vm4, %v7500_v62, %v8524_v12  ;;  %v7757_v21 = vadd.f32 %v16641_v36, %v4958_v13  ;;  %v7506_v22 = vadd.f32 %v15574_v18, %v16641_v36  ;;  %15925 = vmatmul.mubr.msk.bf16.gmra.mxu1 %vm3096_vm0, %v16213_v58  ;;  %v16221_v5 = vld [vmem:[%s16440_s24 + $0x5d8] sm:$0xff]   ;;  %v16222_v6 = vld [vmem:[%s16440_s24 + $0x1e0] sm:$0xff]  }
  0xef   : > { %v9292_v24 = vsel %vm8268_vm5, %v7756_v4, %v8780_v14  ;;  %vm8015_vm6 = vcmp.ge.f32.partialorder %v7503_v15, 0.0  ;;  %v8527_v25 = vmul.f32 0.1, %v7503_v15  ;;  %vm8271_vm7 = vcmp.ge.f32.partialorder %v7759_v16, 0.0  ;;  %v3947_v26 = vpop.f32.mrf.mxu0  ;;  %15672 = vmatprep.mubr.msk.bf16.mxu0 %vm3096_vm0, %v16214_v0  ;;  %15928 = vmatprep.mubr.msk.bf16.mxu1 %vm3096_vm0, %v16215_v10  ;;  %v4971_v30 = vpop.f32.mrf.mxu1  ;;  %v16223_v11 = vld [vmem:[%s16440_s24 + $0x5e0] sm:$0xff]  }
  0xf0   : > { %v8783_v28 = vmul.f32 0.1, %v7759_v16  ;;  %vm8013_vm8 = vcmp.ge.f32.partialorder %v7501_v17, 0.0  ;;  %v8525_v29 = vmul.f32 0.1, %v7501_v17  ;;  %vm8269_vm9 = vcmp.ge.f32.partialorder %v7757_v21, 0.0 }
  0xf1   : > { %v9039_v33 = vsel %vm8015_vm6, %v7503_v15, %v8527_v25  ;;  %v8781_v34 = vmul.f32 0.1, %v7757_v21  ;;  %vm8018_vm10 = vcmp.ge.f32.partialorder %v7506_v22, 0.0  ;;  %v8530_v35 = vmul.f32 0.1, %v7506_v22  ;;  %v15575_v37 = vpop.f32.mrf.mxu0  ;;  %v15831_v43 = vpop.f32.mrf.mxu1 }
  0xf2   : > { %v13791_v39 = vpack.c.bf16 %v9039_v33, %v9038_v8  ;;  %v9295_v40 = vsel %vm8271_vm7, %v7759_v16, %v8783_v28  ;;  %v9037_v41 = vsel %vm8013_vm8, %v7501_v17, %v8525_v29  ;;  %v7762_v42 = vadd.f32 %v15830_v23, %v16641_v36 }
  0xf3   : > { %v14431_v44 = vpack.c.bf16 %v9295_v40, %v9294_v19  ;;  %v13786_v45 = vpack.c.bf16 %v9037_v41, %v9036_v20  ;;  %v9293_v46 = vsel %vm8269_vm9, %v7757_v21, %v8781_v34  ;;  %v9042_v47 = vsel %vm8018_vm10, %v7506_v22, %v8530_v35  ;;  %v3950_v48 = vpop.f32.mrf.mxu0  ;;  %v4974_v52 = vpop.f32.mrf.mxu1  ;;  %v16224_v40 = vld [vmem:[%s16440_s24 + $0x1e8] sm:$0xff]  }
  0xf4   : > { %15047 = vst [vmem:[%s16669_s29 + $0x28] sm:$0xff] %v13791_v39   ;;  %v14426_v49 = vpack.c.bf16 %v9293_v46, %v9292_v24  ;;  %vm8274_vm11 = vcmp.ge.f32.partialorder %v7762_v42, 0.0  ;;  %v8786_v50 = vmul.f32 0.1, %v7762_v42  ;;  %v7504_v51 = vadd.f32 %v16641_v36, %v3947_v26 }
  0xf5   : > { %15175 = vst [vmem:[%s16669_s29 + $0x428] sm:$0xff] %v14431_v44   ;;  %15046 = vst [vmem:[%s16669_s29 + $0x20] sm:$0xff] %v13786_v45   ;;  %v7760_v53 = vadd.f32 %v16641_v36, %v4971_v30  ;;  %v7507_v54 = vadd.f32 %v15575_v37, %v16641_v36  ;;  %v7763_v55 = vadd.f32 %v15831_v43, %v16641_v36  ;;  %v15578_v57 = vpop.f32.mrf.mxu0  ;;  %15673 = vmatmul.mubr.msk.bf16.gmra.mxu0 %vm3096_vm0, %v16216_v27  ;;  %v15834_v61 = vpop.f32.mrf.mxu1  ;;  %v16225_v44 = vld [vmem:[%s16440_s24 + $0x5e8] sm:$0xff]   ;;  %v16226_v45 = vld [vmem:[%s16440_s24 + $0x1f0] sm:$0xff]  }
  0xf6   : > { %v7505_v56 = vadd.f32 %v16641_v36, %v3950_v48  ;;  %15174 = vst [vmem:[%s16669_s29 + $0x420] sm:$0xff] %v14426_v49   ;;  %v9298_v58 = vsel %vm8274_vm11, %v7762_v42, %v8786_v50  ;;  %vm8016_vm12 = vcmp.ge.f32.partialorder %v7504_v51, 0.0  ;;  %v8528_v59 = vmul.f32 0.1, %v7504_v51  ;;  %15929 = vmatmul.mubr.msk.bf16.gmra.mxu1 %vm3096_vm0, %v16217_v31  ;;  %15676 = vmatprep.mubr.msk.bf16.mxu0 %vm3096_vm0, %v16218_v32 }
  0xf7   : > { %v7761_v60 = vadd.f32 %v16641_v36, %v4974_v52  ;;  %vm8272_vm13 = vcmp.ge.f32.partialorder %v7760_v53, 0.0  ;;  %v8784_v62 = vmul.f32 0.1, %v7760_v53  ;;  %vm8019_vm14 = vcmp.ge.f32.partialorder %v7507_v54, 0.0  ;;  %v3963_v0 = vpop.f32.mrf.mxu0  ;;  %15932 = vmatprep.mubr.msk.bf16.mxu1 %vm3096_vm0, %v16219_v38  ;;  %v4987_v4 = vpop.f32.mrf.mxu1 }
  0xf8   : > { %v8531_v63 = vmul.f32 0.1, %v7507_v54  ;;  %v9040_v2 = vsel %vm8016_vm12, %v7504_v51, %v8528_v59  ;;  %vm8275_vm15 = vcmp.ge.f32.partialorder %v7763_v55, 0.0  ;;  %v8787_v3 = vmul.f32 0.1, %v7763_v55 }
  0xf9   : > { %vm8017_vm1 = vcmp.ge.f32.partialorder %v7505_v56, 0.0  ;;  %v9296_v7 = vsel %vm8272_vm13, %v7760_v53, %v8784_v62  ;;  %v8529_v9 = vmul.f32 0.1, %v7505_v56  ;;  %vm8273_vm2 = vcmp.ge.f32.partialorder %v7761_v60, 0.0  ;;  %v15579_v10 = vpop.f32.mrf.mxu0  ;;  %v15835_v16 = vpop.f32.mrf.mxu1  ;;  %v16227_v53 = vld [vmem:[%s16440_s24 + $0x5f0] sm:$0xff]  }
  0xfa   : > { %v9043_v8 = vsel %vm8019_vm14, %v7507_v54, %v8531_v63  ;;  %v9299_v13 = vsel %vm8275_vm15, %v7763_v55, %v8787_v3  ;;  %v8785_v14 = vmul.f32 0.1, %v7761_v60  ;;  %v7510_v15 = vadd.f32 %v15578_v57, %v16641_v36 }
  0xfb   : > { %v13801_v12 = vpack.c.bf16 %v9043_v8, %v9042_v47  ;;  %v14441_v17 = vpack.c.bf16 %v9299_v13, %v9298_v58  ;;  %v9041_v18 = vsel %vm8017_vm1, %v7505_v56, %v8529_v9  ;;  %v7766_v19 = vadd.f32 %v15834_v61, %v16641_v36  ;;  %v3966_v21 = vpop.f32.mrf.mxu0  ;;  %v4990_v25 = vpop.f32.mrf.mxu1  ;;  %v16228_v13 = vld [vmem:[%s16440_s24 + $0x1f8] sm:$0xff]  }
  0xfc   : > { %v7508_v20 = vadd.f32 %v16641_v36, %v3963_v0  ;;  %v13796_v22 = vpack.c.bf16 %v9041_v18, %v9040_v2  ;;  %v9297_v23 = vsel %vm8273_vm2, %v7761_v60, %v8785_v14  ;;  %vm8022_vm3 = vcmp.ge.f32.partialorder %v7510_v15, 0.0  ;;  %v16230_v18 = vld [vmem:[%s16440_s24 + $0x200] sm:$0xff]  }
  0xfd   : > { %15049 = vst [vmem:[%s16669_s29 + $0x38] sm:$0xff] %v13801_v12   ;;  %v8534_v24 = vmul.f32 0.1, %v7510_v15  ;;  %15177 = vst [vmem:[%s16669_s29 + $0x438] sm:$0xff] %v14441_v17   ;;  %v14436_v26 = vpack.c.bf16 %v9297_v23, %v9296_v7  ;;  %vm8278_vm4 = vcmp.ge.f32.partialorder %v7766_v19, 0.0  ;;  %v15582_v28 = vpop.f32.mrf.mxu0  ;;  %15677 = vmatmul.mubr.msk.bf16.gmra.mxu0 %vm3096_vm0, %v16220_v1  ;;  %v7764_v31 = vadd.f32 %v16641_v36, %v4987_v4  ;;  %v15838_v33 = vpop.f32.mrf.mxu1  ;;  %v16229_v17 = vld [vmem:[%s16440_s24 + $0x5f8] sm:$0xff]  }
  0xfe   : > { %v8790_v27 = vmul.f32 0.1, %v7766_v19  ;;  %vm8020_vm5 = vcmp.ge.f32.partialorder %v7508_v20, 0.0  ;;  %15048 = vst [vmem:[%s16669_s29 + $0x30] sm:$0xff] %v13796_v22   ;;  %v8532_v30 = vmul.f32 0.1, %v7508_v20  ;;  %v7511_v32 = vadd.f32 %v15579_v10, %v16641_v36  ;;  %15933 = vmatmul.mubr.msk.bf16.gmra.mxu1 %vm3096_vm0, %v16221_v5  ;;  %15680 = vmatprep.mubr.msk.bf16.mxu0 %vm3096_vm0, %v16222_v6 }
  0xff   : > { %v9046_v29 = vsel %vm8022_vm3, %v7510_v15, %v8534_v24  ;;  %15176 = vst [vmem:[%s16669_s29 + $0x430] sm:$0xff] %v14436_v26   ;;  %v7767_v35 = vadd.f32 %v15835_v16, %v16641_v36  ;;  %v7509_v37 = vadd.f32 %v16641_v36, %v3966_v21  ;;  %v7765_v38 = vadd.f32 %v16641_v36, %v4990_v25  ;;  %v3979_v39 = vpop.f32.mrf.mxu0  ;;  %v5003_v43 = vpop.f32.mrf.mxu1  ;;  %v16231_v26 = vld [vmem:[%s16440_s24 + $0x600] sm:$0xff]  }
 0x100   : > { %v9302_v34 = vsel %vm8278_vm4, %v7766_v19, %v8790_v27  ;;  %15936 = vmatprep.mubr.msk.bf16.mxu1 %vm3096_vm0, %v16223_v11  ;;  %v9044_v41 = vsel %vm8020_vm5, %v7508_v20, %v8532_v30  ;;  %vm8276_vm6 = vcmp.ge.f32.partialorder %v7764_v31, 0.0  ;;  %v8788_v42 = vmul.f32 0.1, %v7764_v31 }
 0x101   : > { %vm8023_vm7 = vcmp.ge.f32.partialorder %v7511_v32, 0.0  ;;  %v8535_v46 = vmul.f32 0.1, %v7511_v32  ;;  %vm8279_vm8 = vcmp.ge.f32.partialorder %v7767_v35, 0.0  ;;  %v8791_v47 = vmul.f32 0.1, %v7767_v35  ;;  %v15583_v48 = vpop.f32.mrf.mxu0  ;;  %v15839_v52 = vpop.f32.mrf.mxu1 }
 0x102   : > { %vm8021_vm9 = vcmp.ge.f32.partialorder %v7509_v37, 0.0  ;;  %v9300_v49 = vsel %vm8276_vm6, %v7764_v31, %v8788_v42  ;;  %v8533_v50 = vmul.f32 0.1, %v7509_v37  ;;  %vm8277_vm10 = vcmp.ge.f32.partialorder %v7765_v38, 0.0 }
 0x103   : > { %v8789_v51 = vmul.f32 0.1, %v7765_v38  ;;  %v9047_v54 = vsel %vm8023_vm7, %v7511_v32, %v8535_v46  ;;  %v9303_v55 = vsel %vm8279_vm8, %v7767_v35, %v8791_v47  ;;  %v7514_v56 = vadd.f32 %v15582_v28, %v16641_v36  ;;  %v3982_v58 = vpop.f32.mrf.mxu0  ;;  %v5006_v63 = vpop.f32.mrf.mxu1 }
 0x104   : > { %v7770_v57 = vadd.f32 %v15838_v33, %v16641_v36  ;;  %v13811_v59 = vpack.c.bf16 %v9047_v54, %v9046_v29  ;;  %v14451_v60 = vpack.c.bf16 %v9303_v55, %v9302_v34  ;;  %v9045_v61 = vsel %vm8021_vm9, %v7509_v37, %v8533_v50  ;;  %v16232_v50 = vld [vmem:[%s16440_s24 + $0x208] sm:$0xff]  }
 0x105   : > { %v9301_v62 = vsel %vm8277_vm10, %v7765_v38, %v8789_v51  ;;  %v13806_v0 = vpack.c.bf16 %v9045_v61, %v9044_v41  ;;  %vm8026_vm11 = vcmp.ge.f32.partialorder %v7514_v56, 0.0  ;;  %v8538_v2 = vmul.f32 0.1, %v7514_v56  ;;  %v15586_v3 = vpop.f32.mrf.mxu0  ;;  %15681 = vmatmul.mubr.msk.bf16.gmra.mxu0 %vm3096_vm0, %v16224_v40  ;;  %v15842_v7 = vpop.f32.mrf.mxu1 }
 0x106   : > { %v14446_v1 = vpack.c.bf16 %v9301_v62, %v9300_v49  ;;  %15051 = vst [vmem:[%s16669_s29 + $0x48] sm:$0xff] %v13811_v59   ;;  %15179 = vst [vmem:[%s16669_s29 + $0x448] sm:$0xff] %v14451_v60   ;;  %vm8282_vm12 = vcmp.ge.f32.partialorder %v7770_v57, 0.0  ;;  %v8794_v4 = vmul.f32 0.1, %v7770_v57  ;;  %v7512_v5 = vadd.f32 %v16641_v36, %v3979_v39  ;;  %15937 = vmatmul.mubr.msk.bf16.gmra.mxu1 %vm3096_vm0, %v16225_v44 }
 0x107   : > { %v7768_v6 = vadd.f32 %v16641_v36, %v5003_v43  ;;  %15684 = vmatprep.mubr.msk.bf16.mxu0 %vm3096_vm0, %v16226_v45  ;;  %15050 = vst [vmem:[%s16669_s29 + $0x40] sm:$0xff] %v13806_v0   ;;  %v9050_v8 = vsel %vm8026_vm11, %v7514_v56, %v8538_v2  ;;  %v7515_v9 = vadd.f32 %v15583_v48, %v16641_v36  ;;  %v3995_v12 = vpop.f32.mrf.mxu0  ;;  %v5019_v16 = vpop.f32.mrf.mxu1  ;;  %v16233_v56 = vld [vmem:[%s16440_s24 + $0x608] sm:$0xff]  }
 0x108   : > { %15178 = vst [vmem:[%s16669_s29 + $0x440] sm:$0xff] %v14446_v1   ;;  %v7771_v10 = vadd.f32 %v15839_v52, %v16641_v36  ;;  %v7513_v11 = vadd.f32 %v16641_v36, %v3982_v58  ;;  %15940 = vmatprep.mubr.msk.bf16.mxu1 %vm3096_vm0, %v16227_v53  ;;  %v9306_v14 = vsel %vm8282_vm12, %v7770_v57, %v8794_v4  ;;  %vm8024_vm13 = vcmp.ge.f32.partialorder %v7512_v5, 0.0  ;;  %v16234_v57 = vld [vmem:[%s16440_s24 + $0x210] sm:$0xff]  }
 0x109   : > { %v8536_v15 = vmul.f32 0.1, %v7512_v5  ;;  %vm8280_vm14 = vcmp.ge.f32.partialorder %v7768_v6, 0.0  ;;  %v8792_v19 = vmul.f32 0.1, %v7768_v6  ;;  %vm8027_vm15 = vcmp.ge.f32.partialorder %v7515_v9, 0.0  ;;  %v15587_v21 = vpop.f32.mrf.mxu0  ;;  %v15843_v25 = vpop.f32.mrf.mxu1 }
 0x10a   : > { %v8539_v20 = vmul.f32 0.1, %v7515_v9  ;;  %vm8283_vm1 = vcmp.ge.f32.partialorder %v7771_v10, 0.0  ;;  %v8795_v23 = vmul.f32 0.1, %v7771_v10  ;;  %vm8025_vm2 = vcmp.ge.f32.partialorder %v7513_v11, 0.0 }
 0x10b   : > { %v9048_v22 = vsel %vm8024_vm13, %v7512_v5, %v8536_v15  ;;  %v8537_v24 = vmul.f32 0.1, %v7513_v11  ;;  %v9304_v27 = vsel %vm8280_vm14, %v7768_v6, %v8792_v19  ;;  %v7769_v29 = vadd.f32 %v16641_v36, %v5006_v63  ;;  %v3998_v31 = vpop.f32.mrf.mxu0  ;;  %v5022_v37 = vpop.f32.mrf.mxu1  ;;  %v16235_v5 = vld [vmem:[%s16440_s24 + $0x610] sm:$0xff]  }
 0x10c   : > { %v9051_v28 = vsel %vm8027_vm15, %v7515_v9, %v8539_v20  ;;  %v7518_v30 = vadd.f32 %v15586_v3, %v16641_v36  ;;  %v9307_v33 = vsel %vm8283_vm1, %v7771_v10, %v8795_v23  ;;  %v7774_v35 = vadd.f32 %v15842_v7, %v16641_v36 }
 0x10d   : > { %v13821_v32 = vpack.c.bf16 %v9051_v28, %v9050_v8  ;;  %v9049_v34 = vsel %vm8025_vm2, %v7513_v11, %v8537_v24  ;;  %v14461_v38 = vpack.c.bf16 %v9307_v33, %v9306_v14  ;;  %vm8281_vm3 = vcmp.ge.f32.partialorder %v7769_v29, 0.0  ;;  %v15590_v41 = vpop.f32.mrf.mxu0  ;;  %15685 = vmatmul.mubr.msk.bf16.gmra.mxu0 %vm3096_vm0, %v16228_v13  ;;  %v15846_v44 = vpop.f32.mrf.mxu1 }
 0x10e   : > { %v13816_v39 = vpack.c.bf16 %v9049_v34, %v9048_v22  ;;  %v8793_v40 = vmul.f32 0.1, %v7769_v29  ;;  %vm8030_vm4 = vcmp.ge.f32.partialorder %v7518_v30, 0.0  ;;  %v8542_v42 = vmul.f32 0.1, %v7518_v30  ;;  %15941 = vmatmul.mubr.msk.bf16.gmra.mxu1 %vm3096_vm0, %v16229_v17  ;;  %15688 = vmatprep.mubr.msk.bf16.mxu0 %vm3096_vm0, %v16230_v18 }
 0x10f   : > { %15053 = vst [vmem:[%s16669_s29 + $0x58] sm:$0xff] %v13821_v32   ;;  %vm8286_vm5 = vcmp.ge.f32.partialorder %v7774_v35, 0.0  ;;  %v8798_v43 = vmul.f32 0.1, %v7774_v35  ;;  %15181 = vst [vmem:[%s16669_s29 + $0x458] sm:$0xff] %v14461_v38   ;;  %v7516_v46 = vadd.f32 %v16641_v36, %v3995_v12  ;;  %v7772_v47 = vadd.f32 %v16641_v36, %v5019_v16  ;;  %v4011_v49 = vpop.f32.mrf.mxu0  ;;  %15944 = vmatprep.mubr.msk.bf16.mxu1 %vm3096_vm0, %v16231_v26  ;;  %v5035_v55 = vpop.f32.mrf.mxu1  ;;  %v16238_v38 = vld [vmem:[%s16440_s24 + $0x220] sm:$0xff]  }
 0x110   : > { %15052 = vst [vmem:[%s16669_s29 + $0x50] sm:$0xff] %v13816_v39   ;;  %v9305_v45 = vsel %vm8281_vm3, %v7769_v29, %v8793_v40  ;;  %v7519_v48 = vadd.f32 %v15587_v21, %v16641_v36  ;;  %v9054_v52 = vsel %vm8030_vm4, %v7518_v30, %v8542_v42  ;;  %v7775_v54 = vadd.f32 %v15843_v25, %v16641_v36  ;;  %v16822_v25 = vld [vmem:[%s19104_s2] ss:$0 sm:$0xff] }
 0x111   : > { %v14456_v51 = vpack.c.bf16 %v9305_v45, %v9304_v27  ;;  %v9310_v53 = vsel %vm8286_vm5, %v7774_v35, %v8798_v43  ;;  %vm8028_vm6 = vcmp.ge.f32.partialorder %v7516_v46, 0.0  ;;  %v8540_v58 = vmul.f32 0.1, %v7516_v46  ;;  %v15591_v60 = vpop.f32.mrf.mxu0  ;;  %v15847_v63 = vpop.f32.mrf.mxu1 }
 0x112   : > { %vm8284_vm7 = vcmp.ge.f32.partialorder %v7772_v47, 0.0  ;;  %v8796_v59 = vmul.f32 0.1, %v7772_v47  ;;  %vm8031_vm8 = vcmp.ge.f32.partialorder %v7519_v48, 0.0  ;;  %v8543_v61 = vmul.f32 0.1, %v7519_v48 }
 0x113   : > { %15180 = vst [vmem:[%s16669_s29 + $0x450] sm:$0xff] %v14456_v51   ;;  %vm8287_vm9 = vcmp.ge.f32.partialorder %v7775_v54, 0.0  ;;  %v8799_v62 = vmul.f32 0.1, %v7775_v54  ;;  %v9052_v0 = vsel %vm8028_vm6, %v7516_v46, %v8540_v58  ;;  %v7517_v2 = vadd.f32 %v16641_v36, %v3998_v31  ;;  %v4014_v4 = vpop.f32.mrf.mxu0  ;;  %v5038_v10 = vpop.f32.mrf.mxu1  ;;  %v16236_v31 = vld [vmem:[%s16440_s24 + $0x218] sm:$0xff]  }
 0x114   : > { %v9308_v1 = vsel %vm8284_vm7, %v7772_v47, %v8796_v59  ;;  %v7773_v3 = vadd.f32 %v16641_v36, %v5022_v37  ;;  %v9055_v6 = vsel %vm8031_vm8, %v7519_v48, %v8543_v61  ;;  %v7522_v8 = vadd.f32 %v15590_v41, %v16641_v36  ;;  %v16237_v37 = vld [vmem:[%s16440_s24 + $0x618] sm:$0xff]  }
 0x115   : > { %v9311_v7 = vsel %vm8287_vm9, %v7775_v54, %v8799_v62  ;;  %v7778_v9 = vadd.f32 %v15846_v44, %v16641_v36  ;;  %v13831_v11 = vpack.c.bf16 %v9055_v6, %v9054_v52  ;;  %vm8029_vm10 = vcmp.ge.f32.partialorder %v7517_v2, 0.0  ;;  %v15594_v14 = vpop.f32.mrf.mxu0  ;;  %15689 = vmatmul.mubr.msk.bf16.gmra.mxu0 %vm3096_vm0, %v16232_v50  ;;  %v15850_v17 = vpop.f32.mrf.mxu1  ;;  %v16239_v44 = vld [vmem:[%s16440_s24 + $0x620] sm:$0xff]  }
 0x116   : > { %v14471_v12 = vpack.c.bf16 %v9311_v7, %v9310_v53  ;;  %v8541_v13 = vmul.f32 0.1, %v7517_v2  ;;  %vm8285_vm11 = vcmp.ge.f32.partialorder %v7773_v3, 0.0  ;;  %v8797_v15 = vmul.f32 0.1, %v7773_v3  ;;  %15945 = vmatmul.mubr.msk.bf16.gmra.mxu1 %vm3096_vm0, %v16233_v56  ;;  %15692 = vmatprep.mubr.msk.bf16.mxu0 %vm3096_vm0, %v16234_v57 }
 0x117   : > { %vm8034_vm12 = vcmp.ge.f32.partialorder %v7522_v8, 0.0  ;;  %v8546_v16 = vmul.f32 0.1, %v7522_v8  ;;  %15055 = vst [vmem:[%s16669_s29 + $0x68] sm:$0xff] %v13831_v11   ;;  %vm8290_vm13 = vcmp.ge.f32.partialorder %v7778_v9, 0.0  ;;  %v7520_v20 = vadd.f32 %v16641_v36, %v4011_v49  ;;  %v4027_v21 = vpop.f32.mrf.mxu0  ;;  %15948 = vmatprep.mubr.msk.bf16.mxu1 %vm3096_vm0, %v16235_v5  ;;  %v5051_v27 = vpop.f32.mrf.mxu1  ;;  %v16240_v5 = vld [vmem:[%s16440_s24 + $0x228] sm:$0xff]  }
 0x118   : > { %15183 = vst [vmem:[%s16669_s29 + $0x468] sm:$0xff] %v14471_v12   ;;  %v9053_v18 = vsel %vm8029_vm10, %v7517_v2, %v8541_v13  ;;  %v8802_v19 = vmul.f32 0.1, %v7778_v9  ;;  %v9309_v23 = vsel %vm8285_vm11, %v7773_v3, %v8797_v15  ;;  %v7776_v26 = vadd.f32 %v16822_v25, %v5035_v55  ;;  %v16241_v11 = vld [vmem:[%s16440_s24 + $0x628] sm:$0xff]   ;;  %v16242_v12 = vld [vmem:[%s16440_s24 + $0x230] sm:$0xff]  }
 0x119   : > { %v13826_v22 = vpack.c.bf16 %v9053_v18, %v9052_v0  ;;  %v9058_v24 = vsel %vm8034_vm12, %v7522_v8, %v8546_v16  ;;  %v14466_v28 = vpack.c.bf16 %v9309_v23, %v9308_v1  ;;  %vm8032_vm14 = vcmp.ge.f32.partialorder %v7520_v20, 0.0  ;;  %v15595_v30 = vpop.f32.mrf.mxu0  ;;  %v15851_v35 = vpop.f32.mrf.mxu1 }
 0x11a   : > { %v9314_v36 = vsel %vm8290_vm13, %v7778_v9, %v8802_v19  ;;  %v8544_v29 = vmul.f32 0.1, %v7520_v20  ;;  %vm8288_vm15 = vcmp.ge.f32.partialorder %v7776_v26, 0.0  ;;  %v8800_v32 = vmul.f32 0.1, %v7776_v26 }
 0x11b   : > { %15054 = vst [vmem:[%s16669_s29 + $0x60] sm:$0xff] %v13826_v22   ;;  %v7523_v33 = vadd.f32 %v16822_v25, %v15591_v60  ;;  %v7779_v34 = vadd.f32 %v16822_v25, %v15847_v63  ;;  %15182 = vst [vmem:[%s16669_s29 + $0x460] sm:$0xff] %v14466_v28   ;;  %v7521_v40 = vadd.f32 %v16822_v25, %v4014_v4  ;;  %v4030_v43 = vpop.f32.mrf.mxu0  ;;  %v5054_v47 = vpop.f32.mrf.mxu1 }
 0x11c   : > { %v9056_v39 = vsel %vm8032_vm14, %v7520_v20, %v8544_v29  ;;  %v7777_v41 = vadd.f32 %v16822_v25, %v5038_v10  ;;  %v7526_v42 = vadd.f32 %v16822_v25, %v15594_v14  ;;  %v9312_v45 = vsel %vm8288_vm15, %v7776_v26, %v8800_v32 }
 0x11d   : > { %vm8035_vm1 = vcmp.ge.f32.partialorder %v7523_v33, 0.0  ;;  %v8547_v46 = vmul.f32 0.1, %v7523_v33  ;;  %vm8291_vm2 = vcmp.ge.f32.partialorder %v7779_v34, 0.0  ;;  %v8803_v48 = vmul.f32 0.1, %v7779_v34  ;;  %v16836_v50 = vpop.f32.mrf.mxu0  ;;  %15693 = vmatmul.mubr.msk.bf16.gmra.mxu0 %vm3096_vm0, %v16236_v31  ;;  %v16839_v54 = vpop.f32.mrf.mxu1 }
 0x11e   : > { %vm8033_vm3 = vcmp.ge.f32.partialorder %v7521_v40, 0.0  ;;  %v8545_v49 = vmul.f32 0.1, %v7521_v40  ;;  %vm8289_vm4 = vcmp.ge.f32.partialorder %v7777_v41, 0.0  ;;  %v8801_v52 = vmul.f32 0.1, %v7777_v41  ;;  %15949 = vmatmul.mubr.msk.bf16.gmra.mxu1 %vm3096_vm0, %v16237_v37  ;;  %15696 = vmatprep.mubr.msk.bf16.mxu0 %vm3096_vm0, %v16238_v38 }
 0x11f   : > { %v9059_v51 = vsel %vm8035_vm1, %v7523_v33, %v8547_v46  ;;  %vm8038_vm5 = vcmp.ge.f32.partialorder %v7526_v42, 0.0  ;;  %v8550_v53 = vmul.f32 0.1, %v7526_v42  ;;  %v9315_v56 = vsel %vm8291_vm2, %v7779_v34, %v8803_v48  ;;  %v4043_v59 = vpop.f32.mrf.mxu0  ;;  %15952 = vmatprep.mubr.msk.bf16.mxu1 %vm3096_vm0, %v16239_v44  ;;  %v16847_v0 = vpop.f32.mrf.mxu1  ;;  %v16246_v48 = vld [vmem:[%s16440_s24 + $0x240] sm:$0xff]  }
 0x120   : > { %v13841_v55 = vpack.c.bf16 %v9059_v51, %v9058_v24  ;;  %v9057_v57 = vsel %vm8033_vm3, %v7521_v40, %v8545_v49  ;;  %v7782_v58 = vadd.f32 %v16822_v25, %v15850_v17  ;;  %v14481_v60 = vpack.c.bf16 %v9315_v56, %v9314_v36  ;;  %v16243_v17 = vld [vmem:[%s16440_s24 + $0x630] sm:$0xff]  }
 0x121   : > { %v13836_v61 = vpack.c.bf16 %v9057_v57, %v9056_v39  ;;  %v9313_v62 = vsel %vm8289_vm4, %v7777_v41, %v8801_v52  ;;  %v9062_v63 = vsel %vm8038_vm5, %v7526_v42, %v8550_v53  ;;  %v7524_v3 = vadd.f32 %v16822_v25, %v4027_v21  ;;  %v16851_v4 = vpop.f32.mrf.mxu0  ;;  %v16860_v10 = vpop.f32.mrf.mxu1 }
 0x122   : > { %15057 = vst [vmem:[%s16669_s29 + $0x78] sm:$0xff] %v13841_v55   ;;  %v14476_v1 = vpack.c.bf16 %v9313_v62, %v9312_v45  ;;  %vm8294_vm6 = vcmp.ge.f32.partialorder %v7782_v58, 0.0  ;;  %v8806_v2 = vmul.f32 0.1, %v7782_v58  ;;  %15185 = vst [vmem:[%s16669_s29 + $0x478] sm:$0xff] %v14481_v60   ;;  %v7780_v6 = vadd.f32 %v16822_v25, %v5051_v27 }
 0x123   : > { %15056 = vst [vmem:[%s16669_s29 + $0x70] sm:$0xff] %v13836_v61   ;;  %v7527_v7 = vadd.f32 %v16822_v25, %v15595_v30  ;;  %v7783_v8 = vadd.f32 %v16822_v25, %v15851_v35  ;;  %v7525_v9 = vadd.f32 %v16822_v25, %v4030_v43  ;;  %vm8036_vm7 = vcmp.ge.f32.partialorder %v7524_v3, 0.0  ;;  %v4046_v16 = vpop.f32.mrf.mxu0  ;;  %v5070_v20 = vpop.f32.mrf.mxu1  ;;  %v16244_v43 = vld [vmem:[%s16440_s24 + $0x238] sm:$0xff]  }
 0x124   : > { %15184 = vst [vmem:[%s16669_s29 + $0x470] sm:$0xff] %v14476_v1   ;;  %v9318_v13 = vsel %vm8294_vm6, %v7782_v58, %v8806_v2  ;;  %v8548_v14 = vmul.f32 0.1, %v7524_v3  ;;  %v7781_v15 = vadd.f32 %v16822_v25, %v5054_v47  ;;  %vm8292_vm8 = vcmp.ge.f32.partialorder %v7780_v6, 0.0  ;;  %v16245_v47 = vld [vmem:[%s16440_s24 + $0x638] sm:$0xff]  }
 0x125   : > { %v8804_v18 = vmul.f32 0.1, %v7780_v6  ;;  %vm8039_vm9 = vcmp.ge.f32.partialorder %v7527_v7, 0.0  ;;  %v8551_v19 = vmul.f32 0.1, %v7527_v7  ;;  %vm8295_vm10 = vcmp.ge.f32.partialorder %v7783_v8, 0.0  ;;  %v16867_v23 = vpop.f32.mrf.mxu0  ;;  %15697 = vmatmul.mubr.msk.bf16.gmra.mxu0 %vm3096_vm0, %v16240_v5  ;;  %v16870_v28 = vpop.f32.mrf.mxu1 }
 0x126   : > { %v9060_v21 = vsel %vm8036_vm7, %v7524_v3, %v8548_v14  ;;  %v8807_v22 = vmul.f32 0.1, %v7783_v8  ;;  %vm8037_vm11 = vcmp.ge.f32.partialorder %v7525_v9, 0.0  ;;  %v8549_v27 = vmul.f32 0.1, %v7525_v9  ;;  %15953 = vmatmul.mubr.msk.bf16.gmra.mxu1 %vm3096_vm0, %v16241_v11  ;;  %15700 = vmatprep.mubr.msk.bf16.mxu0 %vm3096_vm0, %v16242_v12 }
 0x127   : > { %v9316_v24 = vsel %vm8292_vm8, %v7780_v6, %v8804_v18  ;;  %v9063_v26 = vsel %vm8039_vm9, %v7527_v7, %v8551_v19  ;;  %vm8293_vm12 = vcmp.ge.f32.partialorder %v7781_v15, 0.0  ;;  %v8805_v30 = vmul.f32 0.1, %v7781_v15  ;;  %v16876_v32 = vpop.f32.mrf.mxu0  ;;  %15956 = vmatprep.mubr.msk.bf16.mxu1 %vm3096_vm0, %v16243_v17  ;;  %v16883_v38 = vpop.f32.mrf.mxu1 }
 0x128   : > { %v13851_v36 = vpack.c.bf16 %v9063_v26, %v9062_v63  ;;  %v9319_v29 = vsel %vm8295_vm10, %v7783_v8, %v8807_v22  ;;  %v7530_v31 = vadd.f32 %v16822_v25, %v16836_v50  ;;  %v9061_v34 = vsel %vm8037_vm11, %v7525_v9, %v8549_v27  ;;  %v16250_v22 = vld [vmem:[%s16440_s24 + $0x250] sm:$0xff]  }
 0x129   : > { %v14491_v33 = vpack.c.bf16 %v9319_v29, %v9318_v13  ;;  %v7786_v35 = vadd.f32 %v16822_v25, %v16839_v54  ;;  %v7528_v37 = vadd.f32 %v16822_v25, %v4043_v59  ;;  %v13846_v39 = vpack.c.bf16 %v9061_v34, %v9060_v21  ;;  %v16887_v42 = vpop.f32.mrf.mxu0  ;;  %v16891_v46 = vpop.f32.mrf.mxu1  ;;  %v16247_v54 = vld [vmem:[%s16440_s24 + $0x640] sm:$0xff]   ;;  %v16249_v21 = vld [vmem:[%s16440_s24 + $0x648] sm:$0xff]  }
 0x12a   : > { %15059 = vst [vmem:[%s16669_s29 + $0x88] sm:$0xff] %v13851_v36   ;;  %v9317_v40 = vsel %vm8293_vm12, %v7781_v15, %v8805_v30  ;;  %vm8042_vm13 = vcmp.ge.f32.partialorder %v7530_v31, 0.0  ;;  %v8554_v41 = vmul.f32 0.1, %v7530_v31  ;;  %v7784_v51 = vadd.f32 %v16822_v25, %v16847_v0 }
 0x12b   : > { %15187 = vst [vmem:[%s16669_s29 + $0x488] sm:$0xff] %v14491_v33   ;;  %v14486_v44 = vpack.c.bf16 %v9317_v40, %v9316_v24  ;;  %vm8298_vm14 = vcmp.ge.f32.partialorder %v7786_v35, 0.0  ;;  %v8810_v45 = vmul.f32 0.1, %v7786_v35  ;;  %vm8040_vm15 = vcmp.ge.f32.partialorder %v7528_v37, 0.0  ;;  %15058 = vst [vmem:[%s16669_s29 + $0x80] sm:$0xff] %v13846_v39   ;;  %v4062_v53 = vpop.f32.mrf.mxu0  ;;  %v16906_v59 = vpop.f32.mrf.mxu1 }
 0x12c   : > { %v9066_v49 = vsel %vm8042_vm13, %v7530_v31, %v8554_v41  ;;  %v8552_v50 = vmul.f32 0.1, %v7528_v37  ;;  %v7531_v52 = vadd.f32 %v16822_v25, %v16851_v4  ;;  %v7787_v56 = vadd.f32 %v16822_v25, %v16860_v10 }
 0x12d   : > { %15186 = vst [vmem:[%s16669_s29 + $0x480] sm:$0xff] %v14486_v44   ;;  %v9322_v55 = vsel %vm8298_vm14, %v7786_v35, %v8810_v45  ;;  %v7529_v57 = vadd.f32 %v16822_v25, %v4046_v16  ;;  %v7785_v58 = vadd.f32 %v16822_v25, %v5070_v20  ;;  %vm8296_vm1 = vcmp.ge.f32.partialorder %v7784_v51, 0.0  ;;  %v16909_v62 = vpop.f32.mrf.mxu0  ;;  %15701 = vmatmul.mubr.msk.bf16.gmra.mxu0 %vm3096_vm0, %v16244_v43  ;;  %v16912_v1 = vpop.f32.mrf.mxu1  ;;  %v16248_v16 = vld [vmem:[%s16440_s24 + $0x248] sm:$0xff]  }
 0x12e   : > { %v9064_v60 = vsel %vm8040_vm15, %v7528_v37, %v8552_v50  ;;  %v8808_v61 = vmul.f32 0.1, %v7784_v51  ;;  %vm8043_vm2 = vcmp.ge.f32.partialorder %v7531_v52, 0.0  ;;  %v8555_v63 = vmul.f32 0.1, %v7531_v52  ;;  %15957 = vmatmul.mubr.msk.bf16.gmra.mxu1 %vm3096_vm0, %v16245_v47  ;;  %15704 = vmatprep.mubr.msk.bf16.mxu0 %vm3096_vm0, %v16246_v48 }
 0x12f   : > { %vm8299_vm3 = vcmp.ge.f32.partialorder %v7787_v56, 0.0  ;;  %v8811_v0 = vmul.f32 0.1, %v7787_v56  ;;  %vm8041_vm4 = vcmp.ge.f32.partialorder %v7529_v57, 0.0  ;;  %v8553_v3 = vmul.f32 0.1, %v7529_v57  ;;  %v16916_v5 = vpop.f32.mrf.mxu0  ;;  %15960 = vmatprep.mubr.msk.bf16.mxu1 %vm3096_vm0, %v16247_v54  ;;  %v16924_v10 = vpop.f32.mrf.mxu1 }
 0x130   : > { %v9320_v2 = vsel %vm8296_vm1, %v7784_v51, %v8808_v61  ;;  %vm8297_vm5 = vcmp.ge.f32.partialorder %v7785_v58, 0.0  ;;  %v8809_v4 = vmul.f32 0.1, %v7785_v58  ;;  %v9067_v6 = vsel %vm8043_vm2, %v7531_v52, %v8555_v63  ;;  %v16252_v54 = vld [vmem:[%s16440_s24 + $0x258] sm:$0xff]   ;;  %v16255_v61 = vld [vmem:[%s16440_s24 + $0x660] sm:$0xff]  }
 0x131   : > { %v9323_v7 = vsel %vm8299_vm3, %v7787_v56, %v8811_v0  ;;  %v7534_v8 = vadd.f32 %v16822_v25, %v16867_v23  ;;  %v7790_v9 = vadd.f32 %v16822_v25, %v16870_v28  ;;  %v13861_v11 = vpack.c.bf16 %v9067_v6, %v9066_v49  ;;  %v16927_v15 = vpop.f32.mrf.mxu0  ;;  %v16930_v20 = vpop.f32.mrf.mxu1  ;;  %v16251_v28 = vld [vmem:[%s16440_s24 + $0x650] sm:$0xff]  }
 0x132   : > { %v14501_v12 = vpack.c.bf16 %v9323_v7, %v9322_v55  ;;  %v9065_v13 = vsel %vm8041_vm4, %v7529_v57, %v8553_v3  ;;  %v9321_v14 = vsel %vm8297_vm5, %v7785_v58, %v8809_v4  ;;  %v7532_v24 = vadd.f32 %v16822_v25, %v16876_v32 }
 0x133   : > { %v13856_v17 = vpack.c.bf16 %v9065_v13, %v9064_v60  ;;  %v14496_v18 = vpack.c.bf16 %v9321_v14, %v9320_v2  ;;  %vm8046_vm6 = vcmp.ge.f32.partialorder %v7534_v8, 0.0  ;;  %v8558_v19 = vmul.f32 0.1, %v7534_v8  ;;  %15061 = vst [vmem:[%s16669_s29 + $0x98] sm:$0xff] %v13861_v11   ;;  %v16940_v27 = vpop.f32.mrf.mxu0  ;;  %v16950_v33 = vpop.f32.mrf.mxu1  ;;  %v16254_v60 = vld [vmem:[%s16440_s24 + $0x260] sm:$0xff]  }
 0x134   : > { %15189 = vst [vmem:[%s16669_s29 + $0x498] sm:$0xff] %v14501_v12   ;;  %vm8302_vm7 = vcmp.ge.f32.partialorder %v7790_v9, 0.0  ;;  %v8814_v23 = vmul.f32 0.1, %v7790_v9  ;;  %v7788_v26 = vadd.f32 %v16822_v25, %v16883_v38  ;;  %v7535_v29 = vadd.f32 %v16822_v25, %v16887_v42 }
 0x135   : > { %15060 = vst [vmem:[%s16669_s29 + $0x90] sm:$0xff] %v13856_v17   ;;  %15188 = vst [vmem:[%s16669_s29 + $0x490] sm:$0xff] %v14496_v18   ;;  %v9070_v36 = vsel %vm8046_vm6, %v7534_v8, %v8558_v19  ;;  %v7791_v30 = vadd.f32 %v16822_v25, %v16891_v46  ;;  %v7533_v31 = vadd.f32 %v16822_v25, %v4062_v53  ;;  %vm8044_vm8 = vcmp.ge.f32.partialorder %v7532_v24, 0.0  ;;  %v16952_v35 = vpop.f32.mrf.mxu0  ;;  %v16955_v39 = vpop.f32.mrf.mxu1 }
 0x136   : > { %v9326_v32 = vsel %vm8302_vm7, %v7790_v9, %v8814_v23  ;;  %v8556_v34 = vmul.f32 0.1, %v7532_v24  ;;  %vm8300_vm9 = vcmp.ge.f32.partialorder %v7788_v26, 0.0  ;;  %15705 = vmatmul.mubr.msk.bf16.gmra.mxu0 %vm3096_vm0, %v16248_v16  ;;  %v8812_v37 = vmul.f32 0.1, %v7788_v26  ;;  %15961 = vmatmul.mubr.msk.bf16.gmra.mxu1 %vm3096_vm0, %v16249_v21 }
 0x137   : > { %vm8047_vm10 = vcmp.ge.f32.partialorder %v7535_v29, 0.0  ;;  %v8559_v38 = vmul.f32 0.1, %v7535_v29  ;;  %vm8303_vm11 = vcmp.ge.f32.partialorder %v7791_v30, 0.0  ;;  %15708 = vmatprep.mubr.msk.bf16.mxu0 %vm3096_vm0, %v16250_v22  ;;  %v8815_v41 = vmul.f32 0.1, %v7791_v30  ;;  %v16959_v43 = vpop.f32.mrf.mxu0  ;;  %15964 = vmatprep.mubr.msk.bf16.mxu1 %vm3096_vm0, %v16251_v28  ;;  %v16967_v48 = vpop.f32.mrf.mxu1 }
 0x138   : > { %v9068_v40 = vsel %vm8044_vm8, %v7532_v24, %v8556_v34  ;;  %vm8045_vm12 = vcmp.ge.f32.partialorder %v7533_v31, 0.0  ;;  %v8557_v42 = vmul.f32 0.1, %v7533_v31  ;;  %v9324_v44 = vsel %vm8300_vm9, %v7788_v26, %v8812_v37  ;;  %v16259_v34 = vld [vmem:[%s16440_s24 + $0x670] sm:$0xff]  }
 0x139   : > { %v9071_v45 = vsel %vm8047_vm10, %v7535_v29, %v8559_v38  ;;  %v7789_v46 = vadd.f32 %v16822_v25, %v16906_v59  ;;  %v7538_v47 = vadd.f32 %v16822_v25, %v16909_v62  ;;  %v9327_v50 = vsel %vm8303_vm11, %v7791_v30, %v8815_v41  ;;  %v16972_v53 = vpop.f32.mrf.mxu0  ;;  %v16975_v58 = vpop.f32.mrf.mxu1  ;;  %v16253_v59 = vld [vmem:[%s16440_s24 + $0x658] sm:$0xff]  }
 0x13a   : > { %v13871_v49 = vpack.c.bf16 %v9071_v45, %v9070_v36  ;;  %v9069_v51 = vsel %vm8045_vm12, %v7533_v31, %v8557_v42  ;;  %v7794_v52 = vadd.f32 %v16822_v25, %v16912_v1  ;;  %v14511_v55 = vpack.c.bf16 %v9327_v50, %v9326_v32  ;;  %v16256_v36 = vld [vmem:[%s16440_s24 + $0x268] sm:$0xff]   ;;  %v16258_v32 = vld [vmem:[%s16440_s24 + $0x270] sm:$0xff]  }
 0x13b   : > { %v13866_v56 = vpack.c.bf16 %v9069_v51, %v9068_v40  ;;  %vm8301_vm13 = vcmp.ge.f32.partialorder %v7789_v46, 0.0  ;;  %v8813_v57 = vmul.f32 0.1, %v7789_v46  ;;  %vm8050_vm14 = vcmp.ge.f32.partialorder %v7538_v47, 0.0  ;;  %v16981_v0 = vpop.f32.mrf.mxu0  ;;  %v16991_v6 = vpop.f32.mrf.mxu1 }
 0x13c   : > { %15063 = vst [vmem:[%s16669_s29 + $0xa8] sm:$0xff] %v13871_v49   ;;  %v8562_v62 = vmul.f32 0.1, %v7538_v47  ;;  %vm8306_vm15 = vcmp.ge.f32.partialorder %v7794_v52, 0.0  ;;  %v8818_v63 = vmul.f32 0.1, %v7794_v52  ;;  %v7536_v2 = vadd.f32 %v16822_v25, %v16916_v5 }
 0x13d   : > { %15191 = vst [vmem:[%s16669_s29 + $0x4a8] sm:$0xff] %v14511_v55   ;;  %15062 = vst [vmem:[%s16669_s29 + $0xa0] sm:$0xff] %v13866_v56   ;;  %v9325_v1 = vsel %vm8301_vm13, %v7789_v46, %v8813_v57  ;;  %v7792_v3 = vadd.f32 %v16822_v25, %v16924_v10  ;;  %v7539_v4 = vadd.f32 %v16822_v25, %v16927_v15  ;;  %v16995_v12 = vpop.f32.mrf.mxu0  ;;  %v16998_v13 = vpop.f32.mrf.mxu1 }
 0x13e   : > { %v14506_v7 = vpack.c.bf16 %v9325_v1, %v9324_v44  ;;  %v9074_v8 = vsel %vm8050_vm14, %v7538_v47, %v8562_v62  ;;  %v9330_v9 = vsel %vm8306_vm15, %v7794_v52, %v8818_v63  ;;  %v7795_v11 = vadd.f32 %v16822_v25, %v16930_v20  ;;  %15709 = vmatmul.mubr.msk.bf16.gmra.mxu0 %vm3096_vm0, %v16252_v54  ;;  %v16260_v62 = vld [vmem:[%s16440_s24 + $0x278] sm:$0xff]  }
 0x13f   : > { %vm8048_vm1 = vcmp.ge.f32.partialorder %v7536_v2, 0.0  ;;  %v8560_v5 = vmul.f32 0.1, %v7536_v2  ;;  %vm8304_vm2 = vcmp.ge.f32.partialorder %v7792_v3, 0.0  ;;  %v8816_v10 = vmul.f32 0.1, %v7792_v3  ;;  %15965 = vmatmul.mubr.msk.bf16.gmra.mxu1 %vm3096_vm0, %v16253_v59  ;;  %15712 = vmatprep.mubr.msk.bf16.mxu0 %vm3096_vm0, %v16254_v60  ;;  %v17003_v16 = vpop.f32.mrf.mxu0  ;;  %v17010_v21 = vpop.f32.mrf.mxu1 }
 0x140   : > { %15190 = vst [vmem:[%s16669_s29 + $0x4a0] sm:$0xff] %v14506_v7   ;;  %vm8051_vm3 = vcmp.ge.f32.partialorder %v7539_v4, 0.0  ;;  %v8563_v14 = vmul.f32 0.1, %v7539_v4  ;;  %vm8307_vm4 = vcmp.ge.f32.partialorder %v7795_v11, 0.0  ;;  %15968 = vmatprep.mubr.msk.bf16.mxu1 %vm3096_vm0, %v16255_v61  ;;  %v7537_v19 = vadd.f32 %v16822_v25, %v16940_v27 }
 0x141   : > { %v8819_v15 = vmul.f32 0.1, %v7795_v11  ;;  %v9072_v17 = vsel %vm8048_vm1, %v7536_v2, %v8560_v5  ;;  %v9328_v18 = vsel %vm8304_vm2, %v7792_v3, %v8816_v10  ;;  %v7793_v20 = vadd.f32 %v16822_v25, %v16950_v33  ;;  %v17016_v28 = vpop.f32.mrf.mxu0  ;;  %v17019_v31 = vpop.f32.mrf.mxu1  ;;  %v16257_v33 = vld [vmem:[%s16440_s24 + $0x668] sm:$0xff]   ;;  %v16261_v2 = vld [vmem:[%s16440_s24 + $0x678] sm:$0xff]   ;;  %v16262_v3 = vld [vmem:[%s16440_s24 + $0x280] sm:$0xff]  }
 0x142   : > { %v9075_v22 = vsel %vm8051_vm3, %v7539_v4, %v8563_v14  ;;  %v7542_v24 = vadd.f32 %v16822_v25, %v16952_v35  ;;  %v7798_v26 = vadd.f32 %v16822_v25, %v16955_v39  ;;  %vm8049_vm5 = vcmp.ge.f32.partialorder %v7537_v19, 0.0 }
 0x143   : > { %v9331_v23 = vsel %vm8307_vm4, %v7795_v11, %v8819_v15  ;;  %v13881_v27 = vpack.c.bf16 %v9075_v22, %v9074_v8  ;;  %v8561_v30 = vmul.f32 0.1, %v7537_v19  ;;  %vm8305_vm6 = vcmp.ge.f32.partialorder %v7793_v20, 0.0  ;;  %v17024_v38 = vpop.f32.mrf.mxu0  ;;  %v17030_v42 = vpop.f32.mrf.mxu1 }
 0x144   : > { %v14521_v29 = vpack.c.bf16 %v9331_v23, %v9330_v9  ;;  %v8817_v37 = vmul.f32 0.1, %v7793_v20  ;;  %vm8054_vm7 = vcmp.ge.f32.partialorder %v7542_v24, 0.0  ;;  %v8566_v35 = vmul.f32 0.1, %v7542_v24 }
 0x145   : > { %15065 = vst [vmem:[%s16669_s29 + $0xb8] sm:$0xff] %v13881_v27   ;;  %v9073_v39 = vsel %vm8049_vm5, %v7537_v19, %v8561_v30  ;;  %vm8310_vm8 = vcmp.ge.f32.partialorder %v7798_v26, 0.0  ;;  %v8822_v40 = vmul.f32 0.1, %v7798_v26  ;;  %v7540_v41 = vadd.f32 %v16822_v25, %v16959_v43  ;;  %v17034_v49 = vpop.f32.mrf.mxu0  ;;  %v17037_v54 = vpop.f32.mrf.mxu1 }
 0x146   : > { %15193 = vst [vmem:[%s16669_s29 + $0x4b8] sm:$0xff] %v14521_v29   ;;  %v13876_v44 = vpack.c.bf16 %v9073_v39, %v9072_v17  ;;  %v9329_v45 = vsel %vm8305_vm6, %v7793_v20, %v8817_v37  ;;  %v9078_v46 = vsel %vm8054_vm7, %v7542_v24, %v8566_v35  ;;  %v7796_v47 = vadd.f32 %v16822_v25, %v16967_v48  ;;  %v16264_v37 = vld [vmem:[%s16440_s24 + $0x288] sm:$0xff]  }
 0x147   : > { %15713 = vmatmul.mubr.msk.bf16.gmra.mxu0 %vm3096_vm0, %v16256_v36  ;;  %v14516_v50 = vpack.c.bf16 %v9329_v45, %v9328_v18  ;;  %v9334_v51 = vsel %vm8310_vm8, %v7798_v26, %v8822_v40  ;;  %vm8052_vm9 = vcmp.ge.f32.partialorder %v7540_v41, 0.0  ;;  %v8564_v52 = vmul.f32 0.1, %v7540_v41  ;;  %15969 = vmatmul.mubr.msk.bf16.gmra.mxu1 %vm3096_vm0, %v16257_v33  ;;  %v17046_v56 = vpop.f32.mrf.mxu0  ;;  %v17056_v61 = vpop.f32.mrf.mxu1  ;;  %v16266_v45 = vld [vmem:[%s16440_s24 + $0x290] sm:$0xff]  }
 0x148   : > { %15716 = vmatprep.mubr.msk.bf16.mxu0 %vm3096_vm0, %v16258_v32  ;;  %15064 = vst [vmem:[%s16669_s29 + $0xb0] sm:$0xff] %v13876_v44   ;;  %vm8308_vm10 = vcmp.ge.f32.partialorder %v7796_v47, 0.0  ;;  %v8820_v43 = vmul.f32 0.1, %v7796_v47  ;;  %v7543_v48 = vadd.f32 %v16822_v25, %v16972_v53  ;;  %v7799_v55 = vadd.f32 %v16822_v25, %v16975_v58  ;;  %15972 = vmatprep.mubr.msk.bf16.mxu1 %vm3096_vm0, %v16259_v34  ;;  %v16265_v44 = vld [vmem:[%s16440_s24 + $0x688] sm:$0xff]  }
 0x149   : > { %15192 = vst [vmem:[%s16669_s29 + $0x4b0] sm:$0xff] %v14516_v50   ;;  %v9076_v57 = vsel %vm8052_vm9, %v7540_v41, %v8564_v52  ;;  %v7541_v59 = vadd.f32 %v16822_v25, %v16981_v0  ;;  %v7797_v60 = vadd.f32 %v16822_v25, %v16991_v6  ;;  %v7546_v53 = vadd.f32 %v16822_v25, %v16995_v12  ;;  %v17059_v1 = vpop.f32.mrf.mxu0  ;;  %v17063_v6 = vpop.f32.mrf.mxu1  ;;  %v16263_v12 = vld [vmem:[%s16440_s24 + $0x680] sm:$0xff]  }
 0x14a   : > { %v9332_v58 = vsel %vm8308_vm10, %v7796_v47, %v8820_v43  ;;  %vm8055_vm11 = vcmp.ge.f32.partialorder %v7543_v48, 0.0  ;;  %v8567_v63 = vmul.f32 0.1, %v7543_v48  ;;  %vm8311_vm12 = vcmp.ge.f32.partialorder %v7799_v55, 0.0 }
 0x14b   : > { %v8823_v4 = vmul.f32 0.1, %v7799_v55  ;;  %vm8053_vm13 = vcmp.ge.f32.partialorder %v7541_v59, 0.0  ;;  %v8565_v0 = vmul.f32 0.1, %v7541_v59  ;;  %vm8309_vm14 = vcmp.ge.f32.partialorder %v7797_v60, 0.0  ;;  %v17065_v11 = vpop.f32.mrf.mxu0  ;;  %v17071_v17 = vpop.f32.mrf.mxu1 }
 0x14c   : > { %v9079_v7 = vsel %vm8055_vm11, %v7543_v48, %v8567_v63  ;;  %v8821_v8 = vmul.f32 0.1, %v7797_v60  ;;  %vm8058_vm15 = vcmp.ge.f32.partialorder %v7546_v53, 0.0  ;;  %v8570_v9 = vmul.f32 0.1, %v7546_v53 }
 0x14d   : > { %v13891_v5 = vpack.c.bf16 %v9079_v7, %v9078_v46  ;;  %v9335_v10 = vsel %vm8311_vm12, %v7799_v55, %v8823_v4  ;;  %v9077_v14 = vsel %vm8053_vm13, %v7541_v59, %v8565_v0  ;;  %v7802_v15 = vadd.f32 %v16822_v25, %v16998_v13  ;;  %v17073_v23 = vpop.f32.mrf.mxu0  ;;  %v17079_v36 = vpop.f32.mrf.mxu1 }
 0x14e   : > { %v14531_v18 = vpack.c.bf16 %v9335_v10, %v9334_v51  ;;  %v13886_v19 = vpack.c.bf16 %v9077_v14, %v9076_v57  ;;  %v9333_v20 = vsel %vm8309_vm14, %v7797_v60, %v8821_v8  ;;  %v9082_v22 = vsel %vm8058_vm15, %v7546_v53, %v8570_v9  ;;  %v16267_v51 = vld [vmem:[%s16440_s24 + $0x690] sm:$0xff]  }
 0x14f   : > { %15717 = vmatmul.mubr.msk.bf16.gmra.mxu0 %vm3096_vm0, %v16260_v62  ;;  %15067 = vst [vmem:[%s16669_s29 + $0xc8] sm:$0xff] %v13891_v5   ;;  %v14526_v24 = vpack.c.bf16 %v9333_v20, %v9332_v58  ;;  %vm8314_vm1 = vcmp.ge.f32.partialorder %v7802_v15, 0.0  ;;  %v8826_v26 = vmul.f32 0.1, %v7802_v15  ;;  %v7544_v13 = vadd.f32 %v16822_v25, %v17003_v16  ;;  %15973 = vmatmul.mubr.msk.bf16.gmra.mxu1 %vm3096_vm0, %v16261_v2  ;;  %v17093_v33 = vpop.f32.mrf.mxu0 }
 0x150   : > { %15720 = vmatprep.mubr.msk.bf16.mxu0 %vm3096_vm0, %v16262_v3  ;;  %15195 = vst [vmem:[%s16669_s29 + $0x4c8] sm:$0xff] %v14531_v18   ;;  %15066 = vst [vmem:[%s16669_s29 + $0xc0] sm:$0xff] %v13886_v19   ;;  %v7800_v27 = vadd.f32 %v16822_v25, %v17010_v21  ;;  %v7547_v29 = vadd.f32 %v16822_v25, %v17016_v28  ;;  %v7803_v30 = vadd.f32 %v16822_v25, %v17019_v31  ;;  %v17099_v28 = vpop.f32.mrf.mxu1  ;;  %v16269_v19 = vld [vmem:[%s16440_s24 + $0x698] sm:$0xff]  }
 0x151   : > { %v7545_v16 = vadd.f32 %v16822_v25, %v17024_v38  ;;  %15976 = vmatprep.mubr.msk.bf16.mxu1 %vm3096_vm0, %v16263_v12  ;;  %15194 = vst [vmem:[%s16669_s29 + $0x4c0] sm:$0xff] %v14526_v24   ;;  %v9338_v32 = vsel %vm8314_vm1, %v7802_v15, %v8826_v26  ;;  %vm8056_vm2 = vcmp.ge.f32.partialorder %v7544_v13, 0.0  ;;  %v8568_v34 = vmul.f32 0.1, %v7544_v13  ;;  %v17102_v38 = vpop.f32.mrf.mxu0  ;;  %v16270_v24 = vld [vmem:[%s16440_s24 + $0x2a0] sm:$0xff]  }
 0x152   : > { %v7801_v21 = vadd.f32 %v16822_v25, %v17030_v42  ;;  %vm8312_vm3 = vcmp.ge.f32.partialorder %v7800_v27, 0.0  ;;  %v8824_v31 = vmul.f32 0.1, %v7800_v27  ;;  %vm8059_vm4 = vcmp.ge.f32.partialorder %v7547_v29, 0.0  ;;  %v17104_v41 = vpop.f32.mrf.mxu1  ;;  %v16271_v26 = vld [vmem:[%s16440_s24 + $0x6a0] sm:$0xff]  }
 0x153   : > { %v8571_v35 = vmul.f32 0.1, %v7547_v29  ;;  %v9080_v39 = vsel %vm8056_vm2, %v7544_v13, %v8568_v34  ;;  %vm8315_vm5 = vcmp.ge.f32.partialorder %v7803_v30, 0.0  ;;  %v8827_v40 = vmul.f32 0.1, %v7803_v30  ;;  %v17108_v50 = vpop.f32.mrf.mxu0 }
 0x154   : > { %vm8057_vm6 = vcmp.ge.f32.partialorder %v7545_v16, 0.0  ;;  %v9336_v46 = vsel %vm8312_vm3, %v7800_v27, %v8824_v31  ;;  %v8569_v47 = vmul.f32 0.1, %v7545_v16  ;;  %vm8313_vm7 = vcmp.ge.f32.partialorder %v7801_v21, 0.0  ;;  %v17113_v57 = vpop.f32.mrf.mxu1 }
 0x155   : > { %v9083_v42 = vsel %vm8059_vm4, %v7547_v29, %v8571_v35  ;;  %v9339_v43 = vsel %vm8315_vm5, %v7803_v30, %v8827_v40  ;;  %v8825_v48 = vmul.f32 0.1, %v7801_v21  ;;  %v7550_v55 = vadd.f32 %v16822_v25, %v17034_v49  ;;  %v17120_v58 = vpop.f32.mrf.mxu0 }
 0x156   : > { %v13901_v52 = vpack.c.bf16 %v9083_v42, %v9082_v22  ;;  %v14541_v59 = vpack.c.bf16 %v9339_v43, %v9338_v32  ;;  %v9081_v60 = vsel %vm8057_vm6, %v7545_v16, %v8569_v47  ;;  %v7806_v53 = vadd.f32 %v16822_v25, %v17037_v54  ;;  %v17125_v3 = vpop.f32.mrf.mxu1 }
 0x157   : > { %v7548_v62 = vadd.f32 %v16822_v25, %v17046_v56  ;;  %15721 = vmatmul.mubr.msk.bf16.gmra.mxu0 %vm3096_vm0, %v16264_v37  ;;  %v13896_v63 = vpack.c.bf16 %v9081_v60, %v9080_v39  ;;  %v9337_v49 = vsel %vm8313_vm7, %v7801_v21, %v8825_v48  ;;  %vm8062_vm8 = vcmp.ge.f32.partialorder %v7550_v55, 0.0  ;;  %15977 = vmatmul.mubr.msk.bf16.gmra.mxu1 %vm3096_vm0, %v16265_v44  ;;  %v17130_v4 = vpop.f32.mrf.mxu0  ;;  %v16272_v60 = vld [vmem:[%s16440_s24 + $0x2a8] sm:$0xff]  }
 0x158   : > { %15069 = vst [vmem:[%s16669_s29 + $0xd8] sm:$0xff] %v13901_v52   ;;  %v8574_v2 = vmul.f32 0.1, %v7550_v55  ;;  %15724 = vmatprep.mubr.msk.bf16.mxu0 %vm3096_vm0, %v16266_v45  ;;  %15197 = vst [vmem:[%s16669_s29 + $0x4d8] sm:$0xff] %v14541_v59   ;;  %v14536_v54 = vpack.c.bf16 %v9337_v49, %v9336_v46  ;;  %vm8318_vm9 = vcmp.ge.f32.partialorder %v7806_v53, 0.0  ;;  %15980 = vmatprep.mubr.msk.bf16.mxu1 %vm3096_vm0, %v16267_v51  ;;  %v17138_v12 = vpop.f32.mrf.mxu1  ;;  %v16274_v49 = vld [vmem:[%s16440_s24 + $0x2b0] sm:$0xff]  }
 0x159   : > { %v8830_v56 = vmul.f32 0.1, %v7806_v53  ;;  %vm8060_vm10 = vcmp.ge.f32.partialorder %v7548_v62, 0.0  ;;  %15068 = vst [vmem:[%s16669_s29 + $0xd0] sm:$0xff] %v13896_v63   ;;  %v8572_v7 = vmul.f32 0.1, %v7548_v62  ;;  %v7804_v8 = vadd.f32 %v16822_v25, %v17056_v61  ;;  %v17147_v18 = vpop.f32.mrf.mxu0 }
 0x15a   : > { %v9086_v0 = vsel %vm8062_vm8, %v7550_v55, %v8574_v2  ;;  %v7551_v9 = vadd.f32 %v16822_v25, %v17059_v1  ;;  %15196 = vst [vmem:[%s16669_s29 + $0x4d0] sm:$0xff] %v14536_v54   ;;  %v7807_v10 = vadd.f32 %v16822_v25, %v17063_v6  ;;  %v7549_v14 = vadd.f32 %v16822_v25, %v17065_v11  ;;  %v16268_v61 = vld [vmem:[%s16440_s24 + $0x298] sm:$0xff]   ;;  %v17152_v22 = vpop.f32.mrf.mxu1  ;;  %v16275_v2 = vld [vmem:[%s16440_s24 + $0x6b0] sm:$0xff]  }
 0x15b   : > { %v9342_v5 = vsel %vm8318_vm9, %v7806_v53, %v8830_v56  ;;  %v7805_v15 = vadd.f32 %v16822_v25, %v17071_v17  ;;  %v9084_v1 = vsel %vm8060_vm10, %v7548_v62, %v8572_v7  ;;  %vm8316_vm11 = vcmp.ge.f32.partialorder %v7804_v8, 0.0  ;;  %v17156_v11 = vpop.f32.mrf.mxu0 }
 0x15c   : > { %v8828_v20 = vmul.f32 0.1, %v7804_v8  ;;  %vm8063_vm12 = vcmp.ge.f32.partialorder %v7551_v9, 0.0  ;;  %v8575_v6 = vmul.f32 0.1, %v7551_v9  ;;  %vm8319_vm13 = vcmp.ge.f32.partialorder %v7807_v10, 0.0  ;;  %v17158_v30 = vpop.f32.mrf.mxu1 }
 0x15d   : > { %v8831_v13 = vmul.f32 0.1, %v7807_v10  ;;  %vm8061_vm14 = vcmp.ge.f32.partialorder %v7549_v14, 0.0  ;;  %v8573_v27 = vmul.f32 0.1, %v7549_v14  ;;  %vm8317_vm15 = vcmp.ge.f32.partialorder %v7805_v15, 0.0  ;;  %v17164_v37 = vpop.f32.mrf.mxu0 }
 0x15e   : > { %v9340_v17 = vsel %vm8316_vm11, %v7804_v8, %v8828_v20  ;;  %v8829_v29 = vmul.f32 0.1, %v7805_v15  ;;  %v9087_v16 = vsel %vm8063_vm12, %v7551_v9, %v8575_v6  ;;  %v7554_v34 = vadd.f32 %v16822_v25, %v17073_v23  ;;  %v17167_v44 = vpop.f32.mrf.mxu1 }
 0x15f   : > { %v9343_v32 = vsel %vm8319_vm13, %v7807_v10, %v8831_v13  ;;  %v7810_v21 = vadd.f32 %v16822_v25, %v17079_v36  ;;  %15725 = vmatmul.mubr.msk.bf16.gmra.mxu0 %vm3096_vm0, %v16268_v61  ;;  %v13911_v31 = vpack.c.bf16 %v9087_v16, %v9086_v0  ;;  %v9085_v39 = vsel %vm8061_vm14, %v7549_v14, %v8573_v27  ;;  %v17170_v46 = vpop.f32.mrf.mxu0 }
 0x160   : > { %v14551_v35 = vpack.c.bf16 %v9343_v32, %v9342_v5  ;;  %v9341_v40 = vsel %vm8317_vm15, %v7805_v15, %v8829_v29  ;;  %15981 = vmatmul.mubr.msk.bf16.gmra.mxu1 %vm3096_vm0, %v16269_v19  ;;  %v13906_v23 = vpack.c.bf16 %v9085_v39, %v9084_v1  ;;  %vm8066_vm1 = vcmp.ge.f32.partialorder %v7554_v34, 0.0  ;;  %15728 = vmatprep.mubr.msk.bf16.mxu0 %vm3096_vm0, %v16270_v24  ;;  %v17180_v52 = vpop.f32.mrf.mxu1 }
 0x161   : > { %v14546_v45 = vpack.c.bf16 %v9341_v40, %v9340_v17  ;;  %v8578_v36 = vmul.f32 0.1, %v7554_v34  ;;  %15984 = vmatprep.mubr.msk.bf16.mxu1 %vm3096_vm0, %v16271_v26  ;;  %15071 = vst [vmem:[%s16669_s29 + $0xe8] sm:$0xff] %v13911_v31   ;;  %vm8322_vm2 = vcmp.ge.f32.partialorder %v7810_v21, 0.0  ;;  %v8834_v42 = vmul.f32 0.1, %v7810_v21 }
 0x162   : > { %15199 = vst [vmem:[%s16669_s29 + $0x4e8] sm:$0xff] %v14551_v35   ;;  %v7552_v47 = vadd.f32 %v16822_v25, %v17093_v33  ;;  %v7808_v51 = vadd.f32 %v16822_v25, %v17099_v28  ;;  %15070 = vst [vmem:[%s16669_s29 + $0xe0] sm:$0xff] %v13906_v23   ;;  %v7555_v48 = vadd.f32 %v16822_v25, %v17102_v38  ;;  %v17190_v33 = vpop.f32.mrf.mxu0  ;;  %v16273_v28 = vld [vmem:[%s16440_s24 + $0x6a8] sm:$0xff]   ;;  %v17194_v63 = vpop.f32.mrf.mxu1  ;;  %v17226_v17 = vld [vmem:[%s19104_s2] ss:$0 sm:$0xff] }
 0x163   : > { %15198 = vst [vmem:[%s16669_s29 + $0x4e0] sm:$0xff] %v14546_v45   ;;  %v9090_v43 = vsel %vm8066_vm1, %v7554_v34, %v8578_v36  ;;  %v7811_v55 = vadd.f32 %v16822_v25, %v17104_v41  ;;  %v7553_v59 = vadd.f32 %v16822_v25, %v17108_v50  ;;  %v9346_v53 = vsel %vm8322_vm2, %v7810_v21, %v8834_v42  ;;  %v16276_v34 = vld [vmem:[%s16440_s24 + $0x2b8] sm:$0xff]   ;;  %v16279_v45 = vld [vmem:[%s16440_s24 + $0x6c0] sm:$0xff]  }
 0x164   : > { %vm8064_vm3 = vcmp.ge.f32.partialorder %v7552_v47, 0.0  ;;  %v8576_v62 = vmul.f32 0.1, %v7552_v47  ;;  %vm8320_vm4 = vcmp.ge.f32.partialorder %v7808_v51, 0.0  ;;  %v8832_v54 = vmul.f32 0.1, %v7808_v51  ;;  %v17198_v41 = vpop.f32.mrf.mxu0  ;;  %v17200_v7 = vpop.f32.mrf.mxu1 }
 0x165   : > { %vm8067_vm5 = vcmp.ge.f32.partialorder %v7555_v48, 0.0  ;;  %v8579_v38 = vmul.f32 0.1, %v7555_v48  ;;  %vm8323_vm6 = vcmp.ge.f32.partialorder %v7811_v55, 0.0  ;;  %v8835_v50 = vmul.f32 0.1, %v7811_v55 }
 0x166   : > { %v9088_v56 = vsel %vm8064_vm3, %v7552_v47, %v8576_v62  ;;  %vm8065_vm7 = vcmp.ge.f32.partialorder %v7553_v59, 0.0  ;;  %v8577_v0 = vmul.f32 0.1, %v7553_v59  ;;  %v9344_v8 = vsel %vm8320_vm4, %v7808_v51, %v8832_v54  ;;  %v17206_v14 = vpop.f32.mrf.mxu0  ;;  %v17211_v20 = vpop.f32.mrf.mxu1  ;;  %v16277_v23 = vld [vmem:[%s16440_s24 + $0x6b8] sm:$0xff]  }
 0x167   : > { %v9091_v9 = vsel %vm8067_vm5, %v7555_v48, %v8579_v38  ;;  %v7809_v5 = vadd.f32 %v16822_v25, %v17113_v57  ;;  %v7558_v10 = vadd.f32 %v16822_v25, %v17120_v58  ;;  %15729 = vmatmul.mubr.msk.bf16.gmra.mxu0 %vm3096_vm0, %v16272_v60  ;;  %v9347_v61 = vsel %vm8323_vm6, %v7811_v55, %v8835_v50 }
 0x168   : > { %v13921_v15 = vpack.c.bf16 %v9091_v9, %v9090_v43  ;;  %v9089_v19 = vsel %vm8065_vm7, %v7553_v59, %v8577_v0  ;;  %v7814_v1 = vadd.f32 %v16822_v25, %v17125_v3  ;;  %15985 = vmatmul.mubr.msk.bf16.gmra.mxu1 %vm3096_vm0, %v16273_v28  ;;  %v14561_v57 = vpack.c.bf16 %v9347_v61, %v9346_v53  ;;  %v17214_v26 = vpop.f32.mrf.mxu0  ;;  %v17219_v6 = vpop.f32.mrf.mxu1  ;;  %v16280_v9 = vld [vmem:[%s16440_s24 + $0x2c8] sm:$0xff]  }
 0x169   : > { %v13916_v24 = vpack.c.bf16 %v9089_v19, %v9088_v56  ;;  %vm8321_vm8 = vcmp.ge.f32.partialorder %v7809_v5, 0.0  ;;  %v8833_v58 = vmul.f32 0.1, %v7809_v5  ;;  %15732 = vmatprep.mubr.msk.bf16.mxu0 %vm3096_vm0, %v16274_v49  ;;  %15988 = vmatprep.mubr.msk.bf16.mxu1 %vm3096_vm0, %v16275_v2  ;;  %vm8070_vm9 = vcmp.ge.f32.partialorder %v7558_v10, 0.0 }
 0x16a   : > { %15073 = vst [vmem:[%s16669_s29 + $0xf8] sm:$0xff] %v13921_v15   ;;  %v8582_v25 = vmul.f32 0.1, %v7558_v10  ;;  %vm8326_vm10 = vcmp.ge.f32.partialorder %v7814_v1, 0.0  ;;  %v8838_v3 = vmul.f32 0.1, %v7814_v1  ;;  %v7556_v27 = vadd.f32 %v17226_v17, %v17130_v4  ;;  %v17234_v32 = vpop.f32.mrf.mxu0  ;;  %v17239_v40 = vpop.f32.mrf.mxu1 }
 0x16b   : > { %15201 = vst [vmem:[%s16669_s29 + $0x4f8] sm:$0xff] %v14561_v57   ;;  %15072 = vst [vmem:[%s16669_s29 + $0xf0] sm:$0xff] %v13916_v24   ;;  %v9345_v13 = vsel %vm8321_vm8, %v7809_v5, %v8833_v58  ;;  %v7812_v29 = vadd.f32 %v17226_v17, %v17138_v12  ;;  %v7559_v16 = vadd.f32 %v17226_v17, %v17147_v18  ;;  %v16278_v4 = vld [vmem:[%s16440_s24 + $0x2c0] sm:$0xff]   ;;  %v16282_v57 = vld [vmem:[%s16440_s24 + $0x2d0] sm:$0xff]  }
 0x16c   : > { %v14556_v21 = vpack.c.bf16 %v9345_v13, %v9344_v8  ;;  %v9094_v31 = vsel %vm8070_vm9, %v7558_v10, %v8582_v25  ;;  %v9350_v35 = vsel %vm8326_vm10, %v7814_v1, %v8838_v3  ;;  %v7815_v39 = vadd.f32 %v17226_v17, %v17152_v22  ;;  %v17244_v18 = vpop.f32.mrf.mxu0  ;;  %v17247_v51 = vpop.f32.mrf.mxu1  ;;  %v16281_v1 = vld [vmem:[%s16440_s24 + $0x6c8] sm:$0xff]   ;;  %v16283_v3 = vld [vmem:[%s16440_s24 + $0x6d0] sm:$0xff]  }
 0x16d   : > { %vm8068_vm11 = vcmp.ge.f32.partialorder %v7556_v27, 0.0  ;;  %v8580_v12 = vmul.f32 0.1, %v7556_v27  ;;  %vm8324_vm12 = vcmp.ge.f32.partialorder %v7812_v29, 0.0  ;;  %v8836_v36 = vmul.f32 0.1, %v7812_v29 }
 0x16e   : > { %15200 = vst [vmem:[%s16669_s29 + $0x4f0] sm:$0xff] %v14556_v21   ;;  %vm8071_vm13 = vcmp.ge.f32.partialorder %v7559_v16, 0.0  ;;  %v8583_v42 = vmul.f32 0.1, %v7559_v16  ;;  %vm8327_vm14 = vcmp.ge.f32.partialorder %v7815_v39, 0.0  ;;  %v7557_v48 = vadd.f32 %v17226_v17, %v17156_v11  ;;  %v17253_v59 = vpop.f32.mrf.mxu0  ;;  %v17260_v49 = vpop.f32.mrf.mxu1 }
 0x16f   : > { %v8839_v47 = vmul.f32 0.1, %v7815_v39  ;;  %v9092_v43 = vsel %vm8068_vm11, %v7556_v27, %v8580_v12  ;;  %v9348_v22 = vsel %vm8324_vm12, %v7812_v29, %v8836_v36  ;;  %v7813_v55 = vadd.f32 %v17226_v17, %v17158_v30  ;;  %15733 = vmatmul.mubr.msk.bf16.gmra.mxu0 %vm3096_vm0, %v16276_v34 }
 0x170   : > { %v9095_v60 = vsel %vm8071_vm13, %v7559_v16, %v8583_v42  ;;  %v7562_v53 = vadd.f32 %v17226_v17, %v17164_v37  ;;  %v7818_v62 = vadd.f32 %v17226_v17, %v17167_v44  ;;  %15989 = vmatmul.mubr.msk.bf16.gmra.mxu1 %vm3096_vm0, %v16277_v23  ;;  %vm8069_vm15 = vcmp.ge.f32.partialorder %v7557_v48, 0.0  ;;  %v17263_v54 = vpop.f32.mrf.mxu0  ;;  %15736 = vmatprep.mubr.msk.bf16.mxu0 %vm3096_vm0, %v16278_v4  ;;  %v17267_v38 = vpop.f32.mrf.mxu1 }
 0x171   : > { %v9351_v28 = vsel %vm8327_vm14, %v7815_v39, %v8839_v47  ;;  %v13931_v11 = vpack.c.bf16 %v9095_v60, %v9094_v31  ;;  %v8581_v2 = vmul.f32 0.1, %v7557_v48  ;;  %15992 = vmatprep.mubr.msk.bf16.mxu1 %vm3096_vm0, %v16279_v45  ;;  %vm8325_vm1 = vcmp.ge.f32.partialorder %v7813_v55, 0.0 }
 0x172   : > { %v14571_v30 = vpack.c.bf16 %v9351_v28, %v9350_v35  ;;  %v8837_v37 = vmul.f32 0.1, %v7813_v55  ;;  %vm8074_vm2 = vcmp.ge.f32.partialorder %v7562_v53, 0.0  ;;  %v8586_v44 = vmul.f32 0.1, %v7562_v53  ;;  %v17273_v8 = vpop.f32.mrf.mxu0  ;;  %v17278_v19 = vpop.f32.mrf.mxu1 }
 0x173   : > { %15075 = vst [vmem:[%s16669_s29 + $0x108] sm:$0xff] %v13931_v11   ;;  %v9093_v56 = vsel %vm8069_vm15, %v7557_v48, %v8581_v2  ;;  %vm8330_vm3 = vcmp.ge.f32.partialorder %v7818_v62, 0.0  ;;  %v8842_v50 = vmul.f32 0.1, %v7818_v62  ;;  %v7560_v0 = vadd.f32 %v17226_v17, %v17170_v46  ;;  %v16284_v48 = vld [vmem:[%s16440_s24 + $0x2d8] sm:$0xff]  }
 0x174   : > { %15203 = vst [vmem:[%s16669_s29 + $0x508] sm:$0xff] %v14571_v30   ;;  %v13926_v5 = vpack.c.bf16 %v9093_v56, %v9092_v43  ;;  %v9349_v10 = vsel %vm8325_vm1, %v7813_v55, %v8837_v37  ;;  %v9098_v15 = vsel %vm8074_vm2, %v7562_v53, %v8586_v44  ;;  %v7816_v61 = vadd.f32 %v17226_v17, %v17180_v52  ;;  %v17282_v46 = vpop.f32.mrf.mxu0  ;;  %v17290_v29 = vpop.f32.mrf.mxu1  ;;  %v16285_v11 = vld [vmem:[%s16440_s24 + $0x6d8] sm:$0xff]   ;;  %v16286_v30 = vld [vmem:[%s16440_s24 + $0x2e0] sm:$0xff]  }
 0x175   : > { %v14566_v24 = vpack.c.bf16 %v9349_v10, %v9348_v22  ;;  %v9354_v58 = vsel %vm8330_vm3, %v7818_v62, %v8842_v50  ;;  %vm8072_vm4 = vcmp.ge.f32.partialorder %v7560_v0, 0.0  ;;  %v8584_v25 = vmul.f32 0.1, %v7560_v0  ;;  %v16287_v56 = vld [vmem:[%s16440_s24 + $0x6e0] sm:$0xff]  }
 0x176   : > { %15074 = vst [vmem:[%s16669_s29 + $0x100] sm:$0xff] %v13926_v5   ;;  %vm8328_vm5 = vcmp.ge.f32.partialorder %v7816_v61, 0.0  ;;  %v8840_v13 = vmul.f32 0.1, %v7816_v61  ;;  %v7563_v27 = vadd.f32 %v17226_v17, %v17190_v33  ;;  %v7819_v52 = vadd.f32 %v17226_v17, %v17194_v63  ;;  %v17299_v35 = vpop.f32.mrf.mxu0  ;;  %v17302_v39 = vpop.f32.mrf.mxu1 }
 0x177   : > { %15202 = vst [vmem:[%s16669_s29 + $0x500] sm:$0xff] %v14566_v24   ;;  %v9096_v16 = vsel %vm8072_vm4, %v7560_v0, %v8584_v25  ;;  %v7561_v34 = vadd.f32 %v17226_v17, %v17198_v41  ;;  %v7817_v21 = vadd.f32 %v17226_v17, %v17200_v7  ;;  %v7566_v31 = vadd.f32 %v17226_v17, %v17206_v14 }
 0x178   : > { %15737 = vmatmul.mubr.msk.bf16.gmra.mxu0 %vm3096_vm0, %v16280_v9  ;;  %v9352_v33 = vsel %vm8328_vm5, %v7816_v61, %v8840_v13  ;;  %vm8075_vm6 = vcmp.ge.f32.partialorder %v7563_v27, 0.0  ;;  %v8587_v63 = vmul.f32 0.1, %v7563_v27  ;;  %vm8331_vm7 = vcmp.ge.f32.partialorder %v7819_v52, 0.0  ;;  %15993 = vmatmul.mubr.msk.bf16.gmra.mxu1 %vm3096_vm0, %v16281_v1  ;;  %v17306_v14 = vpop.f32.mrf.mxu0  ;;  %v17309_v12 = vpop.f32.mrf.mxu1 }
 0x179   : > { %15740 = vmatprep.mubr.msk.bf16.mxu0 %vm3096_vm0, %v16282_v57  ;;  %v8843_v41 = vmul.f32 0.1, %v7819_v52  ;;  %vm8073_vm8 = vcmp.ge.f32.partialorder %v7561_v34, 0.0  ;;  %v8585_v7 = vmul.f32 0.1, %v7561_v34  ;;  %vm8329_vm9 = vcmp.ge.f32.partialorder %v7817_v21, 0.0  ;;  %15996 = vmatprep.mubr.msk.bf16.mxu1 %vm3096_vm0, %v16283_v3 }
 0x17a   : > { %v9099_v23 = vsel %vm8075_vm6, %v7563_v27, %v8587_v63  ;;  %v8841_v4 = vmul.f32 0.1, %v7817_v21  ;;  %vm8078_vm10 = vcmp.ge.f32.partialorder %v7566_v31, 0.0  ;;  %v8590_v45 = vmul.f32 0.1, %v7566_v31  ;;  %v17314_v22 = vpop.f32.mrf.mxu0  ;;  %v17318_v62 = vpop.f32.mrf.mxu1 }
 0x17b   : > { %v13941_v36 = vpack.c.bf16 %v9099_v23, %v9098_v15  ;;  %v9355_v42 = vsel %vm8331_vm7, %v7819_v52, %v8843_v41  ;;  %v9097_v47 = vsel %vm8073_vm8, %v7561_v34, %v8585_v7  ;;  %v7822_v43 = vadd.f32 %v17226_v17, %v17211_v20  ;;  %v16289_v23 = vld [vmem:[%s16440_s24 + $0x6e8] sm:$0xff]  }
 0x17c   : > { %v14581_v55 = vpack.c.bf16 %v9355_v42, %v9354_v58  ;;  %v13936_v60 = vpack.c.bf16 %v9097_v47, %v9096_v16  ;;  %v9353_v28 = vsel %vm8329_vm9, %v7817_v21, %v8841_v4  ;;  %v9102_v53 = vsel %vm8078_vm10, %v7566_v31, %v8590_v45  ;;  %v17325_v44 = vpop.f32.mrf.mxu0  ;;  %v17338_v10 = vpop.f32.mrf.mxu1  ;;  %v16288_v21 = vld [vmem:[%s16440_s24 + $0x2e8] sm:$0xff]   ;;  %v16290_v42 = vld [vmem:[%s16440_s24 + $0x2f0] sm:$0xff]  }
 0x17d   : > { %15077 = vst [vmem:[%s16669_s29 + $0x118] sm:$0xff] %v13941_v36   ;;  %v14576_v2 = vpack.c.bf16 %v9353_v28, %v9352_v33  ;;  %vm8334_vm11 = vcmp.ge.f32.partialorder %v7822_v43, 0.0  ;;  %v8846_v20 = vmul.f32 0.1, %v7822_v43  ;;  %v7564_v37 = vadd.f32 %v17226_v17, %v17214_v26  ;;  %v16291_v47 = vld [vmem:[%s16440_s24 + $0x6f0] sm:$0xff]  }
 0x17e   : > { %15205 = vst [vmem:[%s16669_s29 + $0x518] sm:$0xff] %v14581_v55   ;;  %15076 = vst [vmem:[%s16669_s29 + $0x110] sm:$0xff] %v13936_v60   ;;  %v7820_v50 = vadd.f32 %v17226_v17, %v17219_v6  ;;  %v7567_v0 = vadd.f32 %v17226_v17, %v17234_v32  ;;  %v7823_v9 = vadd.f32 %v17226_v17, %v17239_v40  ;;  %v17343_v1 = vpop.f32.mrf.mxu0  ;;  %v17346_v40 = vpop.f32.mrf.mxu1 }
 0x17f   : > { %v7565_v5 = vadd.f32 %v17226_v17, %v17244_v18  ;;  %15204 = vst [vmem:[%s16669_s29 + $0x510] sm:$0xff] %v14576_v2   ;;  %v9358_v26 = vsel %vm8334_vm11, %v7822_v43, %v8846_v20  ;;  %vm8076_vm12 = vcmp.ge.f32.partialorder %v7564_v37, 0.0  ;;  %v8588_v15 = vmul.f32 0.1, %v7564_v37 }
 0x180   : > { %v7821_v61 = vadd.f32 %v17226_v17, %v17247_v51  ;;  %15741 = vmatmul.mubr.msk.bf16.gmra.mxu0 %vm3096_vm0, %v16284_v48  ;;  %vm8332_vm13 = vcmp.ge.f32.partialorder %v7820_v50, 0.0  ;;  %v8844_v6 = vmul.f32 0.1, %v7820_v50  ;;  %vm8079_vm14 = vcmp.ge.f32.partialorder %v7567_v0, 0.0  ;;  %15997 = vmatmul.mubr.msk.bf16.gmra.mxu1 %vm3096_vm0, %v16285_v11  ;;  %v17350_v51 = vpop.f32.mrf.mxu0  ;;  %v17353_v3 = vpop.f32.mrf.mxu1 }
 0x181   : > { %v8591_v32 = vmul.f32 0.1, %v7567_v0  ;;  %15744 = vmatprep.mubr.msk.bf16.mxu0 %vm3096_vm0, %v16286_v30  ;;  %v9100_v18 = vsel %vm8076_vm12, %v7564_v37, %v8588_v15  ;;  %vm8335_vm15 = vcmp.ge.f32.partialorder %v7823_v9, 0.0  ;;  %v8847_v57 = vmul.f32 0.1, %v7823_v9  ;;  %16000 = vmatprep.mubr.msk.bf16.mxu1 %vm3096_vm0, %v16287_v56 }
 0x182   : > { %vm8077_vm1 = vcmp.ge.f32.partialorder %v7565_v5, 0.0  ;;  %v9356_v24 = vsel %vm8332_vm13, %v7820_v50, %v8844_v6  ;;  %v8589_v25 = vmul.f32 0.1, %v7565_v5  ;;  %vm8333_vm2 = vcmp.ge.f32.partialorder %v7821_v61, 0.0  ;;  %v17357_v34 = vpop.f32.mrf.mxu0  ;;  %v17364_v7 = vpop.f32.mrf.mxu1 }
 0x183   : > { %v9103_v58 = vsel %vm8079_vm14, %v7567_v0, %v8591_v32  ;;  %v9359_v27 = vsel %vm8335_vm15, %v7823_v9, %v8847_v57  ;;  %v8845_v52 = vmul.f32 0.1, %v7821_v61  ;;  %v7570_v16 = vadd.f32 %v17226_v17, %v17253_v59  ;;  %v16293_v57 = vld [vmem:[%s16440_s24 + $0x6f8] sm:$0xff]  }
 0x184   : > { %v13951_v13 = vpack.c.bf16 %v9103_v58, %v9102_v53  ;;  %v14591_v31 = vpack.c.bf16 %v9359_v27, %v9358_v26  ;;  %v9101_v33 = vsel %vm8077_vm1, %v7565_v5, %v8589_v25  ;;  %v7826_v63 = vadd.f32 %v17226_v17, %v17260_v49  ;;  %v17369_v36 = vpop.f32.mrf.mxu0  ;;  %v16292_v26 = vld [vmem:[%s16440_s24 + $0x2f8] sm:$0xff]  }
 0x185   : > { %v7568_v41 = vadd.f32 %v17226_v17, %v17263_v54  ;;  %v13946_v4 = vpack.c.bf16 %v9101_v33, %v9100_v18  ;;  %v9357_v59 = vsel %vm8333_vm2, %v7821_v61, %v8845_v52  ;;  %vm8082_vm3 = vcmp.ge.f32.partialorder %v7570_v16, 0.0  ;;  %v17374_v54 = vpop.f32.mrf.mxu1  ;;  %v16294_v52 = vld [vmem:[%s16440_s24 + $0x300] sm:$0xff]  }
 0x186   : > { %15079 = vst [vmem:[%s16669_s29 + $0x128] sm:$0xff] %v13951_v13   ;;  %v8594_v45 = vmul.f32 0.1, %v7570_v16  ;;  %15207 = vst [vmem:[%s16669_s29 + $0x528] sm:$0xff] %v14591_v31   ;;  %v14586_v49 = vpack.c.bf16 %v9357_v59, %v9356_v24  ;;  %vm8338_vm4 = vcmp.ge.f32.partialorder %v7826_v63, 0.0  ;;  %v7824_v60 = vadd.f32 %v17226_v17, %v17267_v38  ;;  %v17381_v53 = vpop.f32.mrf.mxu0 }
 0x187   : > { %v8850_v43 = vmul.f32 0.1, %v7826_v63  ;;  %vm8080_vm5 = vcmp.ge.f32.partialorder %v7568_v41, 0.0  ;;  %15078 = vst [vmem:[%s16669_s29 + $0x120] sm:$0xff] %v13946_v4   ;;  %v8592_v55 = vmul.f32 0.1, %v7568_v41  ;;  %v7571_v28 = vadd.f32 %v17226_v17, %v17273_v8  ;;  %v17391_v37 = vpop.f32.mrf.mxu1 }
 0x188   : > { %v9106_v48 = vsel %vm8082_vm3, %v7570_v16, %v8594_v45  ;;  %15745 = vmatmul.mubr.msk.bf16.gmra.mxu0 %vm3096_vm0, %v16288_v21  ;;  %15206 = vst [vmem:[%s16669_s29 + $0x520] sm:$0xff] %v14586_v49   ;;  %v7827_v30 = vadd.f32 %v17226_v17, %v17278_v19  ;;  %v7569_v2 = vadd.f32 %v17226_v17, %v17282_v46  ;;  %vm8336_vm6 = vcmp.ge.f32.partialorder %v7824_v60, 0.0  ;;  %v17395_v56 = vpop.f32.mrf.mxu0  ;;  %v16295_v16 = vld [vmem:[%s16440_s24 + $0x700] sm:$0xff]  }
 0x189   : > { %v9362_v11 = vsel %vm8338_vm4, %v7826_v63, %v8850_v43  ;;  %v7825_v20 = vadd.f32 %v17226_v17, %v17290_v29  ;;  %16001 = vmatmul.mubr.msk.bf16.gmra.mxu1 %vm3096_vm0, %v16289_v23  ;;  %v9104_v38 = vsel %vm8080_vm5, %v7568_v41, %v8592_v55  ;;  %v8848_v8 = vmul.f32 0.1, %v7824_v60  ;;  %15748 = vmatprep.mubr.msk.bf16.mxu0 %vm3096_vm0, %v16290_v42  ;;  %v17399_v29 = vpop.f32.mrf.mxu1 }
 0x18a   : > { %vm8083_vm7 = vcmp.ge.f32.partialorder %v7571_v28, 0.0  ;;  %16004 = vmatprep.mubr.msk.bf16.mxu1 %vm3096_vm0, %v16291_v47  ;;  %v8595_v19 = vmul.f32 0.1, %v7571_v28  ;;  %vm8339_vm8 = vcmp.ge.f32.partialorder %v7827_v30, 0.0  ;;  %v8851_v46 = vmul.f32 0.1, %v7827_v30  ;;  %v17401_v5 = vpop.f32.mrf.mxu0 }
 0x18b   : > { %vm8081_vm9 = vcmp.ge.f32.partialorder %v7569_v2, 0.0  ;;  %v9360_v50 = vsel %vm8336_vm6, %v7824_v60, %v8848_v8  ;;  %v8593_v0 = vmul.f32 0.1, %v7569_v2  ;;  %vm8337_vm10 = vcmp.ge.f32.partialorder %v7825_v20, 0.0  ;;  %v17408_v18 = vpop.f32.mrf.mxu1  ;;  %v16297_v8 = vld [vmem:[%s16440_s24 + $0x708] sm:$0xff]  }
 0x18c   : > { %v8849_v9 = vmul.f32 0.1, %v7825_v20  ;;  %v9107_v15 = vsel %vm8083_vm7, %v7571_v28, %v8595_v19  ;;  %v9363_v61 = vsel %vm8339_vm8, %v7827_v30, %v8851_v46  ;;  %v7574_v6 = vadd.f32 %v17226_v17, %v17299_v35  ;;  %v17412_v27 = vpop.f32.mrf.mxu0  ;;  %v16296_v28 = vld [vmem:[%s16440_s24 + $0x308] sm:$0xff]  }
 0x18d   : > { %v7830_v32 = vadd.f32 %v17226_v17, %v17302_v39  ;;  %v13961_v24 = vpack.c.bf16 %v9107_v15, %v9106_v48  ;;  %v14601_v58 = vpack.c.bf16 %v9363_v61, %v9362_v11  ;;  %v9105_v25 = vsel %vm8081_vm9, %v7569_v2, %v8593_v0  ;;  %v17416_v39 = vpop.f32.mrf.mxu1 }
 0x18e   : > { %v9361_v13 = vsel %vm8337_vm10, %v7825_v20, %v8849_v9  ;;  %v13956_v35 = vpack.c.bf16 %v9105_v25, %v9104_v38  ;;  %vm8086_vm11 = vcmp.ge.f32.partialorder %v7574_v6, 0.0  ;;  %v8598_v31 = vmul.f32 0.1, %v7574_v6  ;;  %v17424_v23 = vpop.f32.mrf.mxu0 }
 0x18f   : > { %v14596_v21 = vpack.c.bf16 %v9361_v13, %v9360_v50  ;;  %15081 = vst [vmem:[%s16669_s29 + $0x138] sm:$0xff] %v13961_v24   ;;  %15209 = vst [vmem:[%s16669_s29 + $0x538] sm:$0xff] %v14601_v58   ;;  %vm8342_vm12 = vcmp.ge.f32.partialorder %v7830_v32, 0.0  ;;  %v8854_v33 = vmul.f32 0.1, %v7830_v32  ;;  %v7572_v63 = vadd.f32 %v17226_v17, %v17306_v14  ;;  %v17435_v14 = vpop.f32.mrf.mxu1 }
 0x190   : > { %v7828_v41 = vadd.f32 %v17226_v17, %v17309_v12  ;;  %15749 = vmatmul.mubr.msk.bf16.gmra.mxu0 %vm3096_vm0, %v16292_v26  ;;  %15080 = vst [vmem:[%s16669_s29 + $0x130] sm:$0xff] %v13956_v35   ;;  %v9110_v4 = vsel %vm8086_vm11, %v7574_v6, %v8598_v31  ;;  %v7575_v59 = vadd.f32 %v17226_v17, %v17314_v22  ;;  %v17438_v49 = vpop.f32.mrf.mxu0  ;;  %v16298_v26 = vld [vmem:[%s16440_s24 + $0x310] sm:$0xff]  }
 0x191   : > { %15208 = vst [vmem:[%s16669_s29 + $0x530] sm:$0xff] %v14596_v21   ;;  %v7831_v45 = vadd.f32 %v17226_v17, %v17318_v62  ;;  %v7573_v42 = vadd.f32 %v17226_v17, %v17325_v44  ;;  %16005 = vmatmul.mubr.msk.bf16.gmra.mxu1 %vm3096_vm0, %v16293_v57  ;;  %v9366_v12 = vsel %vm8342_vm12, %v7830_v32, %v8854_v33  ;;  %vm8084_vm13 = vcmp.ge.f32.partialorder %v7572_v63, 0.0  ;;  %v17442_v44 = vpop.f32.mrf.mxu1 }
 0x192   : > { %v8596_v47 = vmul.f32 0.1, %v7572_v63  ;;  %vm8340_vm14 = vcmp.ge.f32.partialorder %v7828_v41, 0.0  ;;  %15752 = vmatprep.mubr.msk.bf16.mxu0 %vm3096_vm0, %v16294_v52  ;;  %16008 = vmatprep.mubr.msk.bf16.mxu1 %vm3096_vm0, %v16295_v16  ;;  %v8852_v22 = vmul.f32 0.1, %v7828_v41  ;;  %vm8087_vm15 = vcmp.ge.f32.partialorder %v7575_v59, 0.0  ;;  %v17444_v60 = vpop.f32.mrf.mxu0 }
 0x193   : > { %v8599_v62 = vmul.f32 0.1, %v7575_v59  ;;  %vm8343_vm1 = vcmp.ge.f32.partialorder %v7831_v45, 0.0  ;;  %v8855_v48 = vmul.f32 0.1, %v7831_v45  ;;  %vm8085_vm2 = vcmp.ge.f32.partialorder %v7573_v42, 0.0  ;;  %v17451_v38 = vpop.f32.mrf.mxu1 }
 0x194   : > { %v9108_v43 = vsel %vm8084_vm13, %v7572_v63, %v8596_v47  ;;  %v8597_v55 = vmul.f32 0.1, %v7573_v42  ;;  %v9364_v11 = vsel %vm8340_vm14, %v7828_v41, %v8852_v22  ;;  %v7829_v2 = vadd.f32 %v17226_v17, %v17338_v10  ;;  %v17456_v9 = vpop.f32.mrf.mxu0  ;;  %v16301_v22 = vld [vmem:[%s16440_s24 + $0x718] sm:$0xff]  }
 0x195   : > { %v9111_v30 = vsel %vm8087_vm15, %v7575_v59, %v8599_v62  ;;  %v7578_v20 = vadd.f32 %v17226_v17, %v17343_v1  ;;  %v9367_v46 = vsel %vm8343_vm1, %v7831_v45, %v8855_v48  ;;  %v7834_v0 = vadd.f32 %v17226_v17, %v17346_v40  ;;  %v17459_v6 = vpop.f32.mrf.mxu1  ;;  %v16299_v1 = vld [vmem:[%s16440_s24 + $0x710] sm:$0xff]   ;;  %v16302_v62 = vld [vmem:[%s16440_s24 + $0x320] sm:$0xff]  }
 0x196   : > { %v13971_v19 = vpack.c.bf16 %v9111_v30, %v9110_v4  ;;  %v9109_v50 = vsel %vm8085_vm2, %v7573_v42, %v8597_v55  ;;  %v14611_v15 = vpack.c.bf16 %v9367_v46, %v9366_v12  ;;  %vm8341_vm3 = vcmp.ge.f32.partialorder %v7829_v2, 0.0  ;;  %v17463_v24 = vpop.f32.mrf.mxu0 }
 0x197   : > { %v13966_v10 = vpack.c.bf16 %v9109_v50, %v9108_v43  ;;  %v8853_v61 = vmul.f32 0.1, %v7829_v2  ;;  %vm8090_vm4 = vcmp.ge.f32.partialorder %v7578_v20, 0.0  ;;  %v8602_v32 = vmul.f32 0.1, %v7578_v20  ;;  %v17474_v52 = vpop.f32.mrf.mxu1 }
 0x198   : > { %15083 = vst [vmem:[%s16669_s29 + $0x148] sm:$0xff] %v13971_v19   ;;  %vm8346_vm5 = vcmp.ge.f32.partialorder %v7834_v0, 0.0  ;;  %v8858_v57 = vmul.f32 0.1, %v7834_v0  ;;  %15753 = vmatmul.mubr.msk.bf16.gmra.mxu0 %vm3096_vm0, %v16296_v28  ;;  %15211 = vst [vmem:[%s16669_s29 + $0x548] sm:$0xff] %v14611_v15   ;;  %v7576_v58 = vadd.f32 %v17226_v17, %v17350_v51  ;;  %v7832_v25 = vadd.f32 %v17226_v17, %v17353_v3  ;;  %v17479_v33 = vpop.f32.mrf.mxu0  ;;  %v16300_v51 = vld [vmem:[%s16440_s24 + $0x318] sm:$0xff]  }
 0x199   : > { %15082 = vst [vmem:[%s16669_s29 + $0x140] sm:$0xff] %v13966_v10   ;;  %v9365_v40 = vsel %vm8341_vm3, %v7829_v2, %v8853_v61  ;;  %v7579_v13 = vadd.f32 %v17226_v17, %v17357_v34  ;;  %16009 = vmatmul.mubr.msk.bf16.gmra.mxu1 %vm3096_vm0, %v16297_v8  ;;  %v9114_v35 = vsel %vm8090_vm4, %v7578_v20, %v8602_v32  ;;  %v17483_v63 = vpop.f32.mrf.mxu1 }
 0x19a   : > { %v14606_v16 = vpack.c.bf16 %v9365_v40, %v9364_v11  ;;  %v9370_v21 = vsel %vm8346_vm5, %v7834_v0, %v8858_v57  ;;  %v7835_v31 = vadd.f32 %v17226_v17, %v17364_v7  ;;  %15756 = vmatprep.mubr.msk.bf16.mxu0 %vm3096_vm0, %v16298_v26  ;;  %vm8088_vm6 = vcmp.ge.f32.partialorder %v7576_v58, 0.0  ;;  %16012 = vmatprep.mubr.msk.bf16.mxu1 %vm3096_vm0, %v16299_v1  ;;  %v17487_v4 = vpop.f32.mrf.mxu0 }
 0x19b   : > { %v8600_v3 = vmul.f32 0.1, %v7576_v58  ;;  %vm8344_vm7 = vcmp.ge.f32.partialorder %v7832_v25, 0.0  ;;  %v8856_v34 = vmul.f32 0.1, %v7832_v25  ;;  %vm8091_vm8 = vcmp.ge.f32.partialorder %v7579_v13, 0.0  ;;  %v17493_v47 = vpop.f32.mrf.mxu1 }
 0x19c   : > { %15210 = vst [vmem:[%s16669_s29 + $0x540] sm:$0xff] %v14606_v16   ;;  %v8603_v41 = vmul.f32 0.1, %v7579_v13  ;;  %vm8347_vm9 = vcmp.ge.f32.partialorder %v7835_v31, 0.0  ;;  %v8859_v7 = vmul.f32 0.1, %v7835_v31  ;;  %v7577_v42 = vadd.f32 %v17226_v17, %v17369_v36  ;;  %v17501_v11 = vpop.f32.mrf.mxu0 }
 0x19d   : > { %v9112_v59 = vsel %vm8088_vm6, %v7576_v58, %v8600_v3  ;;  %v9368_v45 = vsel %vm8344_vm7, %v7832_v25, %v8856_v34  ;;  %v7833_v12 = vadd.f32 %v17226_v17, %v17374_v54  ;;  %v7582_v55 = vadd.f32 %v17226_v17, %v17381_v53  ;;  %v16303_v36 = vld [vmem:[%s16440_s24 + $0x720] sm:$0xff]   ;;  %v17504_v20 = vpop.f32.mrf.mxu1  ;;  %v16304_v16 = vld [vmem:[%s16440_s24 + $0x328] sm:$0xff]  }
 0x19e   : > { %v9115_v43 = vsel %vm8091_vm8, %v7579_v13, %v8603_v41  ;;  %v9371_v48 = vsel %vm8347_vm9, %v7835_v31, %v8859_v7  ;;  %v7838_v28 = vadd.f32 %v17226_v17, %v17391_v37  ;;  %vm8089_vm10 = vcmp.ge.f32.partialorder %v7577_v42, 0.0  ;;  %v17506_v46 = vpop.f32.mrf.mxu0  ;;  %v16305_v3 = vld [vmem:[%s16440_s24 + $0x728] sm:$0xff]   ;;  %v16306_v7 = vld [vmem:[%s16440_s24 + $0x330] sm:$0xff]  }
 0x19f   : > { %v13981_v30 = vpack.c.bf16 %v9115_v43, %v9114_v35  ;;  %v14621_v2 = vpack.c.bf16 %v9371_v48, %v9370_v21  ;;  %v8601_v54 = vmul.f32 0.1, %v7577_v42  ;;  %vm8345_vm11 = vcmp.ge.f32.partialorder %v7833_v12, 0.0  ;;  %v17513_v0 = vpop.f32.mrf.mxu1 }
 0x1a0   : > { %v8857_v8 = vmul.f32 0.1, %v7833_v12  ;;  %vm8094_vm12 = vcmp.ge.f32.partialorder %v7582_v55, 0.0  ;;  %v8606_v19 = vmul.f32 0.1, %v7582_v55  ;;  %15757 = vmatmul.mubr.msk.bf16.gmra.mxu0 %vm3096_vm0, %v16300_v51  ;;  %vm8350_vm13 = vcmp.ge.f32.partialorder %v7838_v28, 0.0  ;;  %v17520_v1 = vpop.f32.mrf.mxu0 }
 0x1a1   : > { %15085 = vst [vmem:[%s16669_s29 + $0x158] sm:$0xff] %v13981_v30   ;;  %15213 = vst [vmem:[%s16669_s29 + $0x558] sm:$0xff] %v14621_v2   ;;  %v9113_v53 = vsel %vm8089_vm10, %v7577_v42, %v8601_v54  ;;  %v8862_v37 = vmul.f32 0.1, %v7838_v28  ;;  %v7580_v50 = vadd.f32 %v17226_v17, %v17395_v56  ;;  %16013 = vmatmul.mubr.msk.bf16.gmra.mxu1 %vm3096_vm0, %v16301_v22  ;;  %15760 = vmatprep.mubr.msk.bf16.mxu0 %vm3096_vm0, %v16302_v62  ;;  %v17523_v40 = vpop.f32.mrf.mxu1 }
 0x1a2   : > { %v13976_v26 = vpack.c.bf16 %v9113_v53, %v9112_v59  ;;  %v9369_v15 = vsel %vm8345_vm11, %v7833_v12, %v8857_v8  ;;  %v9118_v10 = vsel %vm8094_vm12, %v7582_v55, %v8606_v19  ;;  %v7836_v61 = vadd.f32 %v17226_v17, %v17399_v29  ;;  %16016 = vmatprep.mubr.msk.bf16.mxu1 %vm3096_vm0, %v16303_v36  ;;  %v17530_v13 = vpop.f32.mrf.mxu0  ;;  %v16307_v59 = vld [vmem:[%s16440_s24 + $0x730] sm:$0xff]  }
 0x1a3   : > { %v14616_v56 = vpack.c.bf16 %v9369_v15, %v9368_v45  ;;  %v9374_v32 = vsel %vm8350_vm13, %v7838_v28, %v8862_v37  ;;  %vm8092_vm14 = vcmp.ge.f32.partialorder %v7580_v50, 0.0  ;;  %v8604_v57 = vmul.f32 0.1, %v7580_v50 }
 0x1a4   : > { %15084 = vst [vmem:[%s16669_s29 + $0x150] sm:$0xff] %v13976_v26   ;;  %vm8348_vm15 = vcmp.ge.f32.partialorder %v7836_v61, 0.0  ;;  %v8860_v58 = vmul.f32 0.1, %v7836_v61  ;;  %v7583_v25 = vadd.f32 %v17226_v17, %v17401_v5  ;;  %v7839_v29 = vadd.f32 %v17226_v17, %v17408_v18  ;;  %v17540_v5 = vpop.f32.mrf.mxu1  ;;  %v17543_v41 = vpop.f32.mrf.mxu0 }
 0x1a5   : > { %15212 = vst [vmem:[%s16669_s29 + $0x550] sm:$0xff] %v14616_v56   ;;  %v9116_v35 = vsel %vm8092_vm14, %v7580_v50, %v8604_v57  ;;  %v7581_v21 = vadd.f32 %v17226_v17, %v17412_v27  ;;  %v7837_v31 = vadd.f32 %v17226_v17, %v17416_v39  ;;  %v7586_v51 = vadd.f32 %v17226_v17, %v17424_v23 }
 0x1a6   : > { %v9372_v34 = vsel %vm8348_vm15, %v7836_v61, %v8860_v58  ;;  %vm8095_vm1 = vcmp.ge.f32.partialorder %v7583_v25, 0.0  ;;  %v8607_v18 = vmul.f32 0.1, %v7583_v25  ;;  %vm8351_vm2 = vcmp.ge.f32.partialorder %v7839_v29, 0.0  ;;  %v17547_v42 = vpop.f32.mrf.mxu1  ;;  %v17549_v22 = vpop.f32.mrf.mxu0  ;;  %v16308_v61 = vld [vmem:[%s16440_s24 + $0x338] sm:$0xff]  }
 0x1a7   : > { %v8863_v45 = vmul.f32 0.1, %v7839_v29  ;;  %vm8093_vm3 = vcmp.ge.f32.partialorder %v7581_v21, 0.0  ;;  %v8605_v27 = vmul.f32 0.1, %v7581_v21  ;;  %vm8349_vm4 = vcmp.ge.f32.partialorder %v7837_v31, 0.0 }
 0x1a8   : > { %v9119_v39 = vsel %vm8095_vm1, %v7583_v25, %v8607_v18  ;;  %v8861_v12 = vmul.f32 0.1, %v7837_v31  ;;  %vm8098_vm5 = vcmp.ge.f32.partialorder %v7586_v51, 0.0  ;;  %v8610_v23 = vmul.f32 0.1, %v7586_v51  ;;  %15761 = vmatmul.mubr.msk.bf16.gmra.mxu0 %vm3096_vm0, %v16304_v16  ;;  %v17555_v28 = vpop.f32.mrf.mxu1  ;;  %v17559_v8 = vpop.f32.mrf.mxu0  ;;  %v16309_v58 = vld [vmem:[%s16440_s24 + $0x738] sm:$0xff]  }
 0x1a9   : > { %v13991_v62 = vpack.c.bf16 %v9119_v39, %v9118_v10  ;;  %v9375_v43 = vsel %vm8351_vm2, %v7839_v29, %v8863_v45  ;;  %v9117_v48 = vsel %vm8093_vm3, %v7581_v21, %v8605_v27  ;;  %v7842_v55 = vadd.f32 %v17226_v17, %v17435_v14  ;;  %16017 = vmatmul.mubr.msk.bf16.gmra.mxu1 %vm3096_vm0, %v16305_v3  ;;  %v16311_v25 = vld [vmem:[%s16440_s24 + $0x740] sm:$0xff]  }
 0x1aa   : > { %v14631_v36 = vpack.c.bf16 %v9375_v43, %v9374_v32  ;;  %v13986_v30 = vpack.c.bf16 %v9117_v48, %v9116_v35  ;;  %v9373_v2 = vsel %vm8349_vm4, %v7837_v31, %v8861_v12  ;;  %v9122_v54 = vsel %vm8098_vm5, %v7586_v51, %v8610_v23  ;;  %15764 = vmatprep.mubr.msk.bf16.mxu0 %vm3096_vm0, %v16306_v7  ;;  %v17565_v37 = vpop.f32.mrf.mxu1  ;;  %v17578_v10 = vpop.f32.mrf.mxu0 }
 0x1ab   : > { %15087 = vst [vmem:[%s16669_s29 + $0x168] sm:$0xff] %v13991_v62   ;;  %v14626_v19 = vpack.c.bf16 %v9373_v2, %v9372_v34  ;;  %vm8354_vm6 = vcmp.ge.f32.partialorder %v7842_v55, 0.0  ;;  %v8866_v14 = vmul.f32 0.1, %v7842_v55  ;;  %v7584_v53 = vadd.f32 %v17226_v17, %v17438_v49  ;;  %16020 = vmatprep.mubr.msk.bf16.mxu1 %vm3096_vm0, %v16307_v59 }
 0x1ac   : > { %15215 = vst [vmem:[%s16669_s29 + $0x568] sm:$0xff] %v14631_v36   ;;  %15086 = vst [vmem:[%s16669_s29 + $0x160] sm:$0xff] %v13986_v30   ;;  %v7840_v50 = vadd.f32 %v17226_v17, %v17442_v44  ;;  %v7587_v26 = vadd.f32 %v17226_v17, %v17444_v60  ;;  %v7843_v15 = vadd.f32 %v17226_v17, %v17451_v38  ;;  %v17584_v44 = vpop.f32.mrf.mxu1  ;;  %v16310_v60 = vld [vmem:[%s16440_s24 + $0x340] sm:$0xff]   ;;  %v16312_v30 = vld [vmem:[%s16440_s24 + $0x348] sm:$0xff]  }
 0x1ad   : > { %v7585_v49 = vadd.f32 %v17226_v17, %v17456_v9  ;;  %15214 = vst [vmem:[%s16669_s29 + $0x560] sm:$0xff] %v14626_v19   ;;  %v9378_v56 = vsel %vm8354_vm6, %v7842_v55, %v8866_v14  ;;  %vm8096_vm7 = vcmp.ge.f32.partialorder %v7584_v53, 0.0  ;;  %v8608_v32 = vmul.f32 0.1, %v7584_v53  ;;  %v17589_v9 = vpop.f32.mrf.mxu0 }
 0x1ae   : > { %v7841_v57 = vadd.f32 %v17226_v17, %v17459_v6  ;;  %vm8352_vm8 = vcmp.ge.f32.partialorder %v7840_v50, 0.0  ;;  %v8864_v38 = vmul.f32 0.1, %v7840_v50  ;;  %vm8099_vm9 = vcmp.ge.f32.partialorder %v7587_v26, 0.0  ;;  %v17591_v21 = vpop.f32.mrf.mxu1 }
 0x1af   : > { %v8611_v29 = vmul.f32 0.1, %v7587_v26  ;;  %v9120_v16 = vsel %vm8096_vm7, %v7584_v53, %v8608_v32  ;;  %vm8355_vm10 = vcmp.ge.f32.partialorder %v7843_v15, 0.0  ;;  %v8867_v35 = vmul.f32 0.1, %v7843_v15  ;;  %v17593_v3 = vpop.f32.mrf.mxu0 }
 0x1b0   : > { %vm8097_vm11 = vcmp.ge.f32.partialorder %v7585_v49, 0.0  ;;  %v9376_v31 = vsel %vm8352_vm8, %v7840_v50, %v8864_v38  ;;  %v8609_v6 = vmul.f32 0.1, %v7585_v49  ;;  %vm8353_vm12 = vcmp.ge.f32.partialorder %v7841_v57, 0.0  ;;  %15765 = vmatmul.mubr.msk.bf16.gmra.mxu0 %vm3096_vm0, %v16308_v61  ;;  %v17598_v45 = vpop.f32.mrf.mxu1  ;;  %v16313_v50 = vld [vmem:[%s16440_s24 + $0x748] sm:$0xff]  }
 0x1b1   : > { %v9123_v51 = vsel %vm8099_vm9, %v7587_v26, %v8611_v29  ;;  %v9379_v18 = vsel %vm8355_vm10, %v7843_v15, %v8867_v35  ;;  %v8865_v7 = vmul.f32 0.1, %v7841_v57  ;;  %v7590_v59 = vadd.f32 %v17226_v17, %v17463_v24  ;;  %16021 = vmatmul.mubr.msk.bf16.gmra.mxu1 %vm3096_vm0, %v16309_v58  ;;  %15768 = vmatprep.mubr.msk.bf16.mxu0 %vm3096_vm0, %v16310_v60  ;;  %v17607_v62 = vpop.f32.mrf.mxu0  ;;  %v16314_v26 = vld [vmem:[%s16440_s24 + $0x350] sm:$0xff]  }
 0x1b2   : > { %v14001_v34 = vpack.c.bf16 %v9123_v51, %v9122_v54  ;;  %v14641_v27 = vpack.c.bf16 %v9379_v18, %v9378_v56  ;;  %v9121_v39 = vsel %vm8097_vm11, %v7585_v49, %v8609_v6  ;;  %v7846_v12 = vadd.f32 %v17226_v17, %v17474_v52  ;;  %16024 = vmatprep.mubr.msk.bf16.mxu1 %vm3096_vm0, %v16311_v25  ;;  %v17612_v55 = vpop.f32.mrf.mxu1 }
 0x1b3   : > { %v7588_v23 = vadd.f32 %v17226_v17, %v17479_v33  ;;  %v13996_v24 = vpack.c.bf16 %v9121_v39, %v9120_v16  ;;  %v9377_v43 = vsel %vm8353_vm12, %v7841_v57, %v8865_v7  ;;  %vm8102_vm13 = vcmp.ge.f32.partialorder %v7590_v59, 0.0  ;;  %v17615_v36 = vpop.f32.mrf.mxu0 }
 0x1b4   : > { %15089 = vst [vmem:[%s16669_s29 + $0x178] sm:$0xff] %v14001_v34   ;;  %v8614_v48 = vmul.f32 0.1, %v7590_v59  ;;  %15217 = vst [vmem:[%s16669_s29 + $0x578] sm:$0xff] %v14641_v27   ;;  %v14636_v52 = vpack.c.bf16 %v9377_v43, %v9376_v31  ;;  %vm8358_vm14 = vcmp.ge.f32.partialorder %v7846_v12, 0.0  ;;  %v7844_v19 = vadd.f32 %v17226_v17, %v17483_v63  ;;  %v17623_v53 = vpop.f32.mrf.mxu1  ;;  %v16315_v63 = vld [vmem:[%s16440_s24 + $0x750] sm:$0xff]  }
 0x1b5   : > { %v8870_v33 = vmul.f32 0.1, %v7846_v12  ;;  %vm8100_vm15 = vcmp.ge.f32.partialorder %v7588_v23, 0.0  ;;  %15088 = vst [vmem:[%s16669_s29 + $0x170] sm:$0xff] %v13996_v24   ;;  %v8612_v54 = vmul.f32 0.1, %v7588_v23  ;;  %v7591_v14 = vadd.f32 %v17226_v17, %v17487_v4  ;;  %v17634_v32 = vpop.f32.mrf.mxu0 }
 0x1b6   : > { %v9126_v2 = vsel %vm8102_vm13, %v7590_v59, %v8614_v48  ;;  %15216 = vst [vmem:[%s16669_s29 + $0x570] sm:$0xff] %v14636_v52   ;;  %v7847_v49 = vadd.f32 %v17226_v17, %v17493_v47  ;;  %v7589_v61 = vadd.f32 %v17226_v17, %v17501_v11  ;;  %v7845_v56 = vadd.f32 %v17226_v17, %v17504_v20  ;;  %v17638_v58 = vpop.f32.mrf.mxu1  ;;  %v17665_v24 = vld [vmem:[%s19104_s2] ss:$0 sm:$0xff] }
 0x1b7   : > { %v9382_v15 = vsel %vm8358_vm14, %v7846_v12, %v8870_v33  ;;  %v9124_v4 = vsel %vm8100_vm15, %v7588_v23, %v8612_v54  ;;  %vm8356_vm1 = vcmp.ge.f32.partialorder %v7844_v19, 0.0  ;;  %v8868_v57 = vmul.f32 0.1, %v7844_v19  ;;  %v17640_v47 = vpop.f32.mrf.mxu0  ;;  %v16317_v33 = vld [vmem:[%s16440_s24 + $0x758] sm:$0xff]  }
 0x1b8   : > { %vm8103_vm2 = vcmp.ge.f32.partialorder %v7591_v14, 0.0  ;;  %v8615_v60 = vmul.f32 0.1, %v7591_v14  ;;  %vm8359_vm3 = vcmp.ge.f32.partialorder %v7847_v49, 0.0  ;;  %v8871_v25 = vmul.f32 0.1, %v7847_v49  ;;  %15769 = vmatmul.mubr.msk.bf16.gmra.mxu0 %vm3096_vm0, %v16312_v30  ;;  %v17643_v29 = vpop.f32.mrf.mxu1 }
 0x1b9   : > { %vm8101_vm4 = vcmp.ge.f32.partialorder %v7589_v61, 0.0  ;;  %v9380_v11 = vsel %vm8356_vm1, %v7844_v19, %v8868_v57  ;;  %v8613_v20 = vmul.f32 0.1, %v7589_v61  ;;  %vm8357_vm5 = vcmp.ge.f32.partialorder %v7845_v56, 0.0  ;;  %16025 = vmatmul.mubr.msk.bf16.gmra.mxu1 %vm3096_vm0, %v16313_v50  ;;  %15772 = vmatprep.mubr.msk.bf16.mxu0 %vm3096_vm0, %v16314_v26  ;;  %v17651_v6 = vpop.f32.mrf.mxu0  ;;  %v16318_v30 = vld [vmem:[%s16440_s24 + $0x360] sm:$0xff]  }
 0x1ba   : > { %v8869_v38 = vmul.f32 0.1, %v7845_v56  ;;  %v9127_v16 = vsel %vm8103_vm2, %v7591_v14, %v8615_v60  ;;  %v9383_v35 = vsel %vm8359_vm3, %v7847_v49, %v8871_v25  ;;  %v7594_v31 = vadd.f32 %v17226_v17, %v17506_v46  ;;  %16028 = vmatprep.mubr.msk.bf16.mxu1 %vm3096_vm0, %v16315_v63  ;;  %v17655_v27 = vpop.f32.mrf.mxu1 }
 0x1bb   : > { %v7850_v51 = vadd.f32 %v17226_v17, %v17513_v0  ;;  %v14011_v34 = vpack.c.bf16 %v9127_v16, %v9126_v2  ;;  %v14651_v18 = vpack.c.bf16 %v9383_v35, %v9382_v15  ;;  %v9125_v7 = vsel %vm8101_vm4, %v7589_v61, %v8613_v20  ;;  %v17657_v17 = vpop.f32.mrf.mxu0  ;;  %v16316_v0 = vld [vmem:[%s16440_s24 + $0x358] sm:$0xff]  }
 0x1bc   : > { %v9381_v59 = vsel %vm8357_vm5, %v7845_v56, %v8869_v38  ;;  %v14006_v39 = vpack.c.bf16 %v9125_v7, %v9124_v4  ;;  %vm8106_vm6 = vcmp.ge.f32.partialorder %v7594_v31, 0.0  ;;  %v8618_v12 = vmul.f32 0.1, %v7594_v31  ;;  %v17671_v52 = vpop.f32.mrf.mxu1  ;;  %v16321_v7 = vld [vmem:[%s16440_s24 + $0x768] sm:$0xff]  }
 0x1bd   : > { %v14646_v46 = vpack.c.bf16 %v9381_v59, %v9380_v11  ;;  %15091 = vst [vmem:[%s16669_s29 + $0x188] sm:$0xff] %v14011_v34   ;;  %15219 = vst [vmem:[%s16669_s29 + $0x588] sm:$0xff] %v14651_v18   ;;  %vm8362_vm7 = vcmp.ge.f32.partialorder %v7850_v51, 0.0  ;;  %v8874_v23 = vmul.f32 0.1, %v7850_v51  ;;  %v7592_v43 = vadd.f32 %v17665_v24, %v17520_v1  ;;  %v17684_v14 = vpop.f32.mrf.mxu0  ;;  %v16320_v18 = vld [vmem:[%s16440_s24 + $0x368] sm:$0xff]  }
 0x1be   : > { %v7848_v48 = vadd.f32 %v17665_v24, %v17523_v40  ;;  %15090 = vst [vmem:[%s16669_s29 + $0x180] sm:$0xff] %v14006_v39   ;;  %v9130_v2 = vsel %vm8106_vm6, %v7594_v31, %v8618_v12  ;;  %v7595_v54 = vadd.f32 %v17665_v24, %v17530_v13  ;;  %v7851_v19 = vadd.f32 %v17665_v24, %v17540_v5  ;;  %v16319_v40 = vld [vmem:[%s16440_s24 + $0x760] sm:$0xff]   ;;  %v17688_v15 = vpop.f32.mrf.mxu1  ;;  %v16322_v59 = vld [vmem:[%s16440_s24 + $0x370] sm:$0xff]  }
 0x1bf   : > { %15218 = vst [vmem:[%s16669_s29 + $0x580] sm:$0xff] %v14646_v46   ;;  %v7593_v1 = vadd.f32 %v17665_v24, %v17543_v41  ;;  %v9386_v50 = vsel %vm8362_vm7, %v7850_v51, %v8874_v23  ;;  %vm8104_vm8 = vcmp.ge.f32.partialorder %v7592_v43, 0.0  ;;  %v8616_v26 = vmul.f32 0.1, %v7592_v43  ;;  %v17690_v13 = vpop.f32.mrf.mxu0 }
 0x1c0   : > { %vm8360_vm9 = vcmp.ge.f32.partialorder %v7848_v48, 0.0  ;;  %v8872_v49 = vmul.f32 0.1, %v7848_v48  ;;  %vm8107_vm10 = vcmp.ge.f32.partialorder %v7595_v54, 0.0  ;;  %v8619_v61 = vmul.f32 0.1, %v7595_v54  ;;  %15773 = vmatmul.mubr.msk.bf16.gmra.mxu0 %vm3096_vm0, %v16316_v0  ;;  %v17693_v63 = vpop.f32.mrf.mxu1 }
 0x1c1   : > { %vm8363_vm11 = vcmp.ge.f32.partialorder %v7851_v19, 0.0  ;;  %v9128_v5 = vsel %vm8104_vm8, %v7592_v43, %v8616_v26  ;;  %v8875_v41 = vmul.f32 0.1, %v7851_v19  ;;  %vm8105_vm12 = vcmp.ge.f32.partialorder %v7593_v1, 0.0  ;;  %16029 = vmatmul.mubr.msk.bf16.gmra.mxu1 %vm3096_vm0, %v16317_v33  ;;  %15776 = vmatprep.mubr.msk.bf16.mxu0 %vm3096_vm0, %v16318_v30  ;;  %v17701_v11 = vpop.f32.mrf.mxu0  ;;  %v16323_v33 = vld [vmem:[%s16440_s24 + $0x770] sm:$0xff]  }
 0x1c2   : > { %v8617_v56 = vmul.f32 0.1, %v7593_v1  ;;  %v9384_v4 = vsel %vm8360_vm9, %v7848_v48, %v8872_v49  ;;  %v9131_v57 = vsel %vm8107_vm10, %v7595_v54, %v8619_v61  ;;  %v7849_v60 = vadd.f32 %v17665_v24, %v17547_v42  ;;  %16032 = vmatprep.mubr.msk.bf16.mxu1 %vm3096_vm0, %v16319_v40  ;;  %v17707_v31 = vpop.f32.mrf.mxu1 }
 0x1c3   : > { %v7598_v25 = vadd.f32 %v17665_v24, %v17549_v22  ;;  %v14021_v20 = vpack.c.bf16 %v9131_v57, %v9130_v2  ;;  %v9387_v38 = vsel %vm8363_vm11, %v7851_v19, %v8875_v41  ;;  %v7854_v35 = vadd.f32 %v17665_v24, %v17555_v28  ;;  %v17709_v34 = vpop.f32.mrf.mxu0 }
 0x1c4   : > { %v9129_v16 = vsel %vm8105_vm12, %v7593_v1, %v8617_v56  ;;  %v14661_v42 = vpack.c.bf16 %v9387_v38, %v9386_v50  ;;  %vm8361_vm13 = vcmp.ge.f32.partialorder %v7849_v60, 0.0  ;;  %v8873_v22 = vmul.f32 0.1, %v7849_v60  ;;  %v17715_v28 = vpop.f32.mrf.mxu1 }
 0x1c5   : > { %v14016_v51 = vpack.c.bf16 %v9129_v16, %v9128_v5  ;;  %15093 = vst [vmem:[%s16669_s29 + $0x198] sm:$0xff] %v14021_v20   ;;  %vm8110_vm14 = vcmp.ge.f32.partialorder %v7598_v25, 0.0  ;;  %v8622_v39 = vmul.f32 0.1, %v7598_v25  ;;  %vm8366_vm15 = vcmp.ge.f32.partialorder %v7854_v35, 0.0  ;;  %v17725_v48 = vpop.f32.mrf.mxu0  ;;  %v16324_v16 = vld [vmem:[%s16440_s24 + $0x378] sm:$0xff]  }
 0x1c6   : > { %v8878_v46 = vmul.f32 0.1, %v7854_v35  ;;  %15221 = vst [vmem:[%s16669_s29 + $0x598] sm:$0xff] %v14661_v42   ;;  %v9385_v12 = vsel %vm8361_vm13, %v7849_v60, %v8873_v22  ;;  %v7596_v0 = vadd.f32 %v17665_v24, %v17559_v8  ;;  %v7852_v23 = vadd.f32 %v17665_v24, %v17565_v37  ;;  %v17730_v1 = vpop.f32.mrf.mxu1  ;;  %v16326_v42 = vld [vmem:[%s16440_s24 + $0x380] sm:$0xff]  }
 0x1c7   : > { %15092 = vst [vmem:[%s16669_s29 + $0x190] sm:$0xff] %v14016_v51   ;;  %v7599_v43 = vadd.f32 %v17665_v24, %v17578_v10  ;;  %v14656_v30 = vpack.c.bf16 %v9385_v12, %v9384_v4  ;;  %v9134_v2 = vsel %vm8110_vm14, %v7598_v25, %v8622_v39  ;;  %v7855_v19 = vadd.f32 %v17665_v24, %v17584_v44  ;;  %v17732_v50 = vpop.f32.mrf.mxu0  ;;  %v16327_v39 = vld [vmem:[%s16440_s24 + $0x780] sm:$0xff]  }
 0x1c8   : > { %v9390_v54 = vsel %vm8366_vm15, %v7854_v35, %v8878_v46  ;;  %vm8108_vm1 = vcmp.ge.f32.partialorder %v7596_v0, 0.0  ;;  %v8620_v8 = vmul.f32 0.1, %v7596_v0  ;;  %vm8364_vm2 = vcmp.ge.f32.partialorder %v7852_v23, 0.0  ;;  %15777 = vmatmul.mubr.msk.bf16.gmra.mxu0 %vm3096_vm0, %v16320_v18  ;;  %v17736_v26 = vpop.f32.mrf.mxu1  ;;  %v16325_v35 = vld [vmem:[%s16440_s24 + $0x778] sm:$0xff]  }
 0x1c9   : > { %v8876_v40 = vmul.f32 0.1, %v7852_v23  ;;  %15220 = vst [vmem:[%s16669_s29 + $0x590] sm:$0xff] %v14656_v30   ;;  %vm8111_vm3 = vcmp.ge.f32.partialorder %v7599_v43, 0.0  ;;  %v8623_v37 = vmul.f32 0.1, %v7599_v43  ;;  %16033 = vmatmul.mubr.msk.bf16.gmra.mxu1 %vm3096_vm0, %v16321_v7  ;;  %15780 = vmatprep.mubr.msk.bf16.mxu0 %vm3096_vm0, %v16322_v59  ;;  %v7597_v61 = vadd.f32 %v17665_v24, %v17589_v9  ;;  %v17744_v41 = vpop.f32.mrf.mxu0 }
 0x1ca   : > { %vm8367_vm4 = vcmp.ge.f32.partialorder %v7855_v19, 0.0  ;;  %v8879_v10 = vmul.f32 0.1, %v7855_v19  ;;  %v9132_v44 = vsel %vm8108_vm1, %v7596_v0, %v8620_v8  ;;  %v7853_v5 = vadd.f32 %v17665_v24, %v17591_v21  ;;  %16036 = vmatprep.mubr.msk.bf16.mxu1 %vm3096_vm0, %v16323_v33  ;;  %v17751_v25 = vpop.f32.mrf.mxu1 }
 0x1cb   : > { %v9388_v49 = vsel %vm8364_vm2, %v7852_v23, %v8876_v40  ;;  %v9135_v56 = vsel %vm8111_vm3, %v7599_v43, %v8623_v37  ;;  %v7602_v57 = vadd.f32 %v17665_v24, %v17593_v3  ;;  %v7858_v60 = vadd.f32 %v17665_v24, %v17598_v45  ;;  %v17753_v38 = vpop.f32.mrf.mxu0 }
 0x1cc   : > { %v9391_v4 = vsel %vm8367_vm4, %v7855_v19, %v8879_v10  ;;  %v14031_v9 = vpack.c.bf16 %v9135_v56, %v9134_v2  ;;  %vm8109_vm5 = vcmp.ge.f32.partialorder %v7597_v61, 0.0  ;;  %v8621_v21 = vmul.f32 0.1, %v7597_v61  ;;  %v17758_v22 = vpop.f32.mrf.mxu1 }
 0x1cd   : > { %v14671_v20 = vpack.c.bf16 %v9391_v4, %v9390_v54  ;;  %vm8365_vm6 = vcmp.ge.f32.partialorder %v7853_v5, 0.0  ;;  %v8877_v51 = vmul.f32 0.1, %v7853_v5  ;;  %vm8114_vm7 = vcmp.ge.f32.partialorder %v7602_v57, 0.0  ;;  %v17764_v59 = vpop.f32.mrf.mxu0 }
 0x1ce   : > { %v8626_v3 = vmul.f32 0.1, %v7602_v57  ;;  %15095 = vst [vmem:[%s16669_s29 + $0x1a8] sm:$0xff] %v14031_v9   ;;  %v9133_v45 = vsel %vm8109_vm5, %v7597_v61, %v8621_v21  ;;  %vm8370_vm8 = vcmp.ge.f32.partialorder %v7858_v60, 0.0  ;;  %v8882_v18 = vmul.f32 0.1, %v7858_v60  ;;  %v17769_v43 = vpop.f32.mrf.mxu1 }
 0x1cf   : > { %15223 = vst [vmem:[%s16669_s29 + $0x5a8] sm:$0xff] %v14671_v20   ;;  %v7600_v7 = vadd.f32 %v17665_v24, %v17607_v62  ;;  %v14026_v46 = vpack.c.bf16 %v9133_v45, %v9132_v44  ;;  %v9389_v12 = vsel %vm8365_vm6, %v7853_v5, %v8877_v51  ;;  %v7856_v23 = vadd.f32 %v17665_v24, %v17612_v55  ;;  %v17771_v54 = vpop.f32.mrf.mxu0  ;;  %v16328_v5 = vld [vmem:[%s16440_s24 + $0x388] sm:$0xff]   ;;  %v16330_v51 = vld [vmem:[%s16440_s24 + $0x390] sm:$0xff]  }
 0x1d0   : > { %v9138_v0 = vsel %vm8114_vm7, %v7602_v57, %v8626_v3  ;;  %v14666_v33 = vpack.c.bf16 %v9389_v12, %v9388_v49  ;;  %v9394_v30 = vsel %vm8370_vm8, %v7858_v60, %v8882_v18  ;;  %15781 = vmatmul.mubr.msk.bf16.gmra.mxu0 %vm3096_vm0, %v16324_v16  ;;  %v7603_v19 = vadd.f32 %v17665_v24, %v17615_v36  ;;  %v17779_v8 = vpop.f32.mrf.mxu1  ;;  %v16329_v9 = vld [vmem:[%s16440_s24 + $0x788] sm:$0xff]   ;;  %v16331_v3 = vld [vmem:[%s16440_s24 + $0x790] sm:$0xff]  }
 0x1d1   : > { %vm8112_vm9 = vcmp.ge.f32.partialorder %v7600_v7, 0.0  ;;  %v8624_v2 = vmul.f32 0.1, %v7600_v7  ;;  %15094 = vst [vmem:[%s16669_s29 + $0x1a0] sm:$0xff] %v14026_v46   ;;  %vm8368_vm10 = vcmp.ge.f32.partialorder %v7856_v23, 0.0  ;;  %v7859_v55 = vadd.f32 %v17665_v24, %v17623_v53  ;;  %16037 = vmatmul.mubr.msk.bf16.gmra.mxu1 %vm3096_vm0, %v16325_v35  ;;  %15784 = vmatprep.mubr.msk.bf16.mxu0 %vm3096_vm0, %v16326_v42  ;;  %v17790_v44 = vpop.f32.mrf.mxu0 }
 0x1d2   : > { %v8880_v62 = vmul.f32 0.1, %v7856_v23  ;;  %15222 = vst [vmem:[%s16669_s29 + $0x5a0] sm:$0xff] %v14666_v33   ;;  %v7601_v37 = vadd.f32 %v17665_v24, %v17634_v32  ;;  %v7857_v10 = vadd.f32 %v17665_v24, %v17638_v58  ;;  %v7606_v36 = vadd.f32 %v17665_v24, %v17640_v47  ;;  %16040 = vmatprep.mubr.msk.bf16.mxu1 %vm3096_vm0, %v16327_v39  ;;  %v17793_v61 = vpop.f32.mrf.mxu1 }
 0x1d3   : > { %v9136_v40 = vsel %vm8112_vm9, %v7600_v7, %v8624_v2  ;;  %vm8115_vm11 = vcmp.ge.f32.partialorder %v7603_v19, 0.0  ;;  %v8627_v49 = vmul.f32 0.1, %v7603_v19  ;;  %vm8371_vm12 = vcmp.ge.f32.partialorder %v7859_v55, 0.0  ;;  %v17796_v58 = vpop.f32.mrf.mxu0 }
 0x1d4   : > { %v9392_v53 = vsel %vm8368_vm10, %v7856_v23, %v8880_v62  ;;  %v8883_v56 = vmul.f32 0.1, %v7859_v55  ;;  %vm8113_vm13 = vcmp.ge.f32.partialorder %v7601_v37, 0.0  ;;  %v8625_v32 = vmul.f32 0.1, %v7601_v37  ;;  %v17798_v60 = vpop.f32.mrf.mxu1 }
 0x1d5   : > { %vm8369_vm14 = vcmp.ge.f32.partialorder %v7857_v10, 0.0  ;;  %v9139_v47 = vsel %vm8115_vm11, %v7603_v19, %v8627_v49  ;;  %v8881_v4 = vmul.f32 0.1, %v7857_v10  ;;  %vm8118_vm15 = vcmp.ge.f32.partialorder %v7606_v36, 0.0  ;;  %v17803_v42 = vpop.f32.mrf.mxu0 }
 0x1d6   : > { %v8630_v57 = vmul.f32 0.1, %v7606_v36  ;;  %v14041_v20 = vpack.c.bf16 %v9139_v47, %v9138_v0  ;;  %v9395_v21 = vsel %vm8371_vm12, %v7859_v55, %v8883_v56  ;;  %v9137_v16 = vsel %vm8113_vm13, %v7601_v37, %v8625_v32  ;;  %v17808_v46 = vpop.f32.mrf.mxu1  ;;  %v16333_v32 = vld [vmem:[%s16440_s24 + $0x798] sm:$0xff]   ;;  %v16334_v47 = vld [vmem:[%s16440_s24 + $0x3a0] sm:$0xff]  }
 0x1d7   : > { %v7862_v35 = vadd.f32 %v17665_v24, %v17643_v29  ;;  %v14681_v45 = vpack.c.bf16 %v9395_v21, %v9394_v30  ;;  %v14036_v18 = vpack.c.bf16 %v9137_v16, %v9136_v40  ;;  %v9393_v7 = vsel %vm8369_vm14, %v7857_v10, %v8881_v4  ;;  %v17813_v23 = vpop.f32.mrf.mxu0  ;;  %v16335_v16 = vld [vmem:[%s16440_s24 + $0x7a0] sm:$0xff]  }
 0x1d8   : > { %v9142_v39 = vsel %vm8118_vm15, %v7606_v36, %v8630_v57  ;;  %15097 = vst [vmem:[%s16669_s29 + $0x1b8] sm:$0xff] %v14041_v20   ;;  %v14676_v12 = vpack.c.bf16 %v9393_v7, %v9392_v53  ;;  %v7604_v29 = vadd.f32 %v17665_v24, %v17651_v6  ;;  %15785 = vmatmul.mubr.msk.bf16.gmra.mxu0 %vm3096_vm0, %v16328_v5  ;;  %v17826_v19 = vpop.f32.mrf.mxu1  ;;  %v16332_v36 = vld [vmem:[%s16440_s24 + $0x398] sm:$0xff]  }
 0x1d9   : > { %vm8374_vm1 = vcmp.ge.f32.partialorder %v7862_v35, 0.0  ;;  %v8886_v0 = vmul.f32 0.1, %v7862_v35  ;;  %15225 = vst [vmem:[%s16669_s29 + $0x5b8] sm:$0xff] %v14681_v45   ;;  %15096 = vst [vmem:[%s16669_s29 + $0x1b0] sm:$0xff] %v14036_v18   ;;  %v7860_v33 = vadd.f32 %v17665_v24, %v17655_v27  ;;  %v7607_v30 = vadd.f32 %v17665_v24, %v17657_v17  ;;  %16041 = vmatmul.mubr.msk.bf16.gmra.mxu1 %vm3096_vm0, %v16329_v9  ;;  %v17832_v40 = vpop.f32.mrf.mxu0 }
 0x1da   : > { %v7863_v2 = vadd.f32 %v17665_v24, %v17671_v52  ;;  %v7605_v62 = vadd.f32 %v17665_v24, %v17684_v14  ;;  %15224 = vst [vmem:[%s16669_s29 + $0x5b0] sm:$0xff] %v14676_v12   ;;  %vm8116_vm2 = vcmp.ge.f32.partialorder %v7604_v29, 0.0  ;;  %v8628_v55 = vmul.f32 0.1, %v7604_v29  ;;  %15788 = vmatprep.mubr.msk.bf16.mxu0 %vm3096_vm0, %v16330_v51  ;;  %16044 = vmatprep.mubr.msk.bf16.mxu1 %vm3096_vm0, %v16331_v3  ;;  %v17836_v14 = vpop.f32.mrf.mxu1 }
 0x1db   : > { %v9398_v6 = vsel %vm8374_vm1, %v7862_v35, %v8886_v0  ;;  %v7861_v27 = vadd.f32 %v17665_v24, %v17688_v15  ;;  %vm8372_vm3 = vcmp.ge.f32.partialorder %v7860_v33, 0.0  ;;  %v8884_v17 = vmul.f32 0.1, %v7860_v33  ;;  %v17838_v15 = vpop.f32.mrf.mxu0 }
 0x1dc   : > { %vm8119_vm4 = vcmp.ge.f32.partialorder %v7607_v30, 0.0  ;;  %v8631_v52 = vmul.f32 0.1, %v7607_v30  ;;  %v9140_v37 = vsel %vm8116_vm2, %v7604_v29, %v8628_v55  ;;  %vm8375_vm5 = vcmp.ge.f32.partialorder %v7863_v2, 0.0  ;;  %v17841_v56 = vpop.f32.mrf.mxu1 }
 0x1dd   : > { %v8887_v10 = vmul.f32 0.1, %v7863_v2  ;;  %vm8117_vm6 = vcmp.ge.f32.partialorder %v7605_v62, 0.0  ;;  %v9396_v53 = vsel %vm8372_vm3, %v7860_v33, %v8884_v17  ;;  %v8629_v5 = vmul.f32 0.1, %v7605_v62  ;;  %v17847_v21 = vpop.f32.mrf.mxu0 }
 0x1de   : > { %v9143_v49 = vsel %vm8119_vm4, %v7607_v30, %v8631_v52  ;;  %vm8373_vm7 = vcmp.ge.f32.partialorder %v7861_v27, 0.0  ;;  %v8885_v9 = vmul.f32 0.1, %v7861_v27  ;;  %v7610_v20 = vadd.f32 %v17665_v24, %v17690_v13  ;;  %v17855_v18 = vpop.f32.mrf.mxu1  ;;  %v16336_v52 = vld [vmem:[%s16440_s24 + $0x3a8] sm:$0xff]  }
 0x1df   : > { %v14051_v4 = vpack.c.bf16 %v9143_v49, %v9142_v39  ;;  %v9399_v57 = vsel %vm8375_vm5, %v7863_v2, %v8887_v10  ;;  %v9141_v51 = vsel %vm8117_vm6, %v7605_v62, %v8629_v5  ;;  %v7866_v3 = vadd.f32 %v17665_v24, %v17693_v63  ;;  %v17859_v12 = vpop.f32.mrf.mxu0 }
 0x1e0   : > { %v14691_v35 = vpack.c.bf16 %v9399_v57, %v9398_v6  ;;  %v7608_v45 = vadd.f32 %v17665_v24, %v17701_v11  ;;  %v14046_v7 = vpack.c.bf16 %v9141_v51, %v9140_v37  ;;  %v9397_v39 = vsel %vm8373_vm7, %v7861_v27, %v8885_v9  ;;  %15789 = vmatmul.mubr.msk.bf16.gmra.mxu0 %vm3096_vm0, %v16332_v36  ;;  %v17863_v11 = vpop.f32.mrf.mxu1  ;;  %v16337_v36 = vld [vmem:[%s16440_s24 + $0x7a8] sm:$0xff]  }
 0x1e1   : > { %15099 = vst [vmem:[%s16669_s29 + $0x1c8] sm:$0xff] %v14051_v4   ;;  %vm8122_vm8 = vcmp.ge.f32.partialorder %v7610_v20, 0.0  ;;  %v8634_v13 = vmul.f32 0.1, %v7610_v20  ;;  %v14686_v0 = vpack.c.bf16 %v9397_v39, %v9396_v53  ;;  %vm8378_vm9 = vcmp.ge.f32.partialorder %v7866_v3, 0.0  ;;  %16045 = vmatmul.mubr.msk.bf16.gmra.mxu1 %vm3096_vm0, %v16333_v32  ;;  %15792 = vmatprep.mubr.msk.bf16.mxu0 %vm3096_vm0, %v16334_v47  ;;  %v17872_v62 = vpop.f32.mrf.mxu0  ;;  %v16338_v53 = vld [vmem:[%s16440_s24 + $0x3b0] sm:$0xff]  }
 0x1e2   : > { %15227 = vst [vmem:[%s16669_s29 + $0x5c8] sm:$0xff] %v14691_v35   ;;  %v8890_v63 = vmul.f32 0.1, %v7866_v3  ;;  %vm8120_vm10 = vcmp.ge.f32.partialorder %v7608_v45, 0.0  ;;  %15098 = vst [vmem:[%s16669_s29 + $0x1c0] sm:$0xff] %v14046_v7   ;;  %v7864_v30 = vadd.f32 %v17665_v24, %v17707_v31  ;;  %v7611_v2 = vadd.f32 %v17665_v24, %v17709_v34  ;;  %16048 = vmatprep.mubr.msk.bf16.mxu1 %vm3096_vm0, %v16335_v16  ;;  %v17882_v17 = vpop.f32.mrf.mxu1  ;;  %v16339_v4 = vld [vmem:[%s16440_s24 + $0x7b0] sm:$0xff]  }
 0x1e3   : > { %v9146_v29 = vsel %vm8122_vm8, %v7610_v20, %v8634_v13  ;;  %v8632_v33 = vmul.f32 0.1, %v7608_v45  ;;  %15226 = vst [vmem:[%s16669_s29 + $0x5c0] sm:$0xff] %v14686_v0   ;;  %v7867_v55 = vadd.f32 %v17665_v24, %v17715_v28  ;;  %v7609_v27 = vadd.f32 %v17665_v24, %v17725_v48  ;;  %v17886_v10 = vpop.f32.mrf.mxu0 }
 0x1e4   : > { %v9402_v6 = vsel %vm8378_vm9, %v7866_v3, %v8890_v63  ;;  %v7865_v31 = vadd.f32 %v17665_v24, %v17730_v1  ;;  %vm8376_vm11 = vcmp.ge.f32.partialorder %v7864_v30, 0.0  ;;  %v8888_v37 = vmul.f32 0.1, %v7864_v30  ;;  %v17890_v48 = vpop.f32.mrf.mxu1 }
 0x1e5   : > { %v9144_v34 = vsel %vm8120_vm10, %v7608_v45, %v8632_v33  ;;  %vm8123_vm12 = vcmp.ge.f32.partialorder %v7611_v2, 0.0  ;;  %v8635_v28 = vmul.f32 0.1, %v7611_v2  ;;  %vm8379_vm13 = vcmp.ge.f32.partialorder %v7867_v55, 0.0  ;;  %v17892_v47 = vpop.f32.mrf.mxu0 }
 0x1e6   : > { %v8891_v49 = vmul.f32 0.1, %v7867_v55  ;;  %vm8121_vm14 = vcmp.ge.f32.partialorder %v7609_v27, 0.0  ;;  %v9400_v1 = vsel %vm8376_vm11, %v7864_v30, %v8888_v37  ;;  %v8633_v5 = vmul.f32 0.1, %v7609_v27  ;;  %v17899_v35 = vpop.f32.mrf.mxu1  ;;  %v16341_v37 = vld [vmem:[%s16440_s24 + $0x7b8] sm:$0xff]  }
 0x1e7   : > { %vm8377_vm15 = vcmp.ge.f32.partialorder %v7865_v31, 0.0  ;;  %v8889_v32 = vmul.f32 0.1, %v7865_v31  ;;  %v9147_v57 = vsel %vm8123_vm12, %v7611_v2, %v8635_v28  ;;  %v7614_v20 = vadd.f32 %v17665_v24, %v17732_v50  ;;  %v17901_v39 = vpop.f32.mrf.mxu0 }
 0x1e8   : > { %v9403_v9 = vsel %vm8379_vm13, %v7867_v55, %v8891_v49  ;;  %v7870_v16 = vadd.f32 %v17665_v24, %v17736_v26  ;;  %v14061_v51 = vpack.c.bf16 %v9147_v57, %v9146_v29  ;;  %v9145_v45 = vsel %vm8121_vm14, %v7609_v27, %v8633_v5  ;;  %15793 = vmatmul.mubr.msk.bf16.gmra.mxu0 %vm3096_vm0, %v16336_v52  ;;  %v17904_v63 = vpop.f32.mrf.mxu1  ;;  %v16343_v5 = vld [vmem:[%s16440_s24 + $0x7c0] sm:$0xff]  }
 0x1e9   : > { %v14701_v3 = vpack.c.bf16 %v9403_v9, %v9402_v6  ;;  %v9401_v7 = vsel %vm8377_vm15, %v7865_v31, %v8889_v32  ;;  %v14056_v13 = vpack.c.bf16 %v9145_v45, %v9144_v34  ;;  %vm8126_vm1 = vcmp.ge.f32.partialorder %v7614_v20, 0.0  ;;  %16049 = vmatmul.mubr.msk.bf16.gmra.mxu1 %vm3096_vm0, %v16337_v36  ;;  %15796 = vmatprep.mubr.msk.bf16.mxu0 %vm3096_vm0, %v16338_v53  ;;  %v17914_v30 = vpop.f32.mrf.mxu0  ;;  %v16342_v36 = vld [vmem:[%s16440_s24 + $0x3c0] sm:$0xff]  }
 0x1ea   : > { %v14696_v0 = vpack.c.bf16 %v9401_v7, %v9400_v1  ;;  %v8638_v50 = vmul.f32 0.1, %v7614_v20  ;;  %15101 = vst [vmem:[%s16669_s29 + $0x1d8] sm:$0xff] %v14061_v51   ;;  %vm8382_vm2 = vcmp.ge.f32.partialorder %v7870_v16, 0.0  ;;  %v8894_v26 = vmul.f32 0.1, %v7870_v16  ;;  %16052 = vmatprep.mubr.msk.bf16.mxu1 %vm3096_vm0, %v16339_v4  ;;  %v17925_v27 = vpop.f32.mrf.mxu1 }
 0x1eb   : > { %15229 = vst [vmem:[%s16669_s29 + $0x5d8] sm:$0xff] %v14701_v3   ;;  %v7612_v29 = vadd.f32 %v17665_v24, %v17744_v41  ;;  %v7868_v33 = vadd.f32 %v17665_v24, %v17751_v25  ;;  %15100 = vst [vmem:[%s16669_s29 + $0x1d0] sm:$0xff] %v14056_v13   ;;  %v7615_v6 = vadd.f32 %v17665_v24, %v17753_v38  ;;  %v16340_v25 = vld [vmem:[%s16440_s24 + $0x3b8] sm:$0xff]   ;;  %v17928_v34 = vpop.f32.mrf.mxu0 }
 0x1ec   : > { %15228 = vst [vmem:[%s16669_s29 + $0x5d0] sm:$0xff] %v14696_v0   ;;  %v9150_v2 = vsel %vm8126_vm1, %v7614_v20, %v8638_v50  ;;  %v7871_v55 = vadd.f32 %v17665_v24, %v17758_v22  ;;  %v7613_v41 = vadd.f32 %v17665_v24, %v17764_v59  ;;  %v9406_v31 = vsel %vm8382_vm2, %v7870_v16, %v8894_v26  ;;  %v17932_v22 = vpop.f32.mrf.mxu1 }
 0x1ed   : > { %vm8124_vm3 = vcmp.ge.f32.partialorder %v7612_v29, 0.0  ;;  %v8636_v52 = vmul.f32 0.1, %v7612_v29  ;;  %vm8380_vm4 = vcmp.ge.f32.partialorder %v7868_v33, 0.0  ;;  %v8892_v53 = vmul.f32 0.1, %v7868_v33  ;;  %v17934_v1 = vpop.f32.mrf.mxu0 }
 0x1ee   : > { %vm8127_vm5 = vcmp.ge.f32.partialorder %v7615_v6, 0.0  ;;  %v8639_v38 = vmul.f32 0.1, %v7615_v6  ;;  %vm8383_vm6 = vcmp.ge.f32.partialorder %v7871_v55, 0.0  ;;  %v8895_v59 = vmul.f32 0.1, %v7871_v55  ;;  %v17941_v20 = vpop.f32.mrf.mxu1 }
 0x1ef   : > { %v9148_v28 = vsel %vm8124_vm3, %v7612_v29, %v8636_v52  ;;  %vm8125_vm7 = vcmp.ge.f32.partialorder %v7613_v41, 0.0  ;;  %v8637_v49 = vmul.f32 0.1, %v7613_v41  ;;  %v9404_v32 = vsel %vm8380_vm4, %v7868_v33, %v8892_v53  ;;  %v17945_v7 = vpop.f32.mrf.mxu0  ;;  %v16345_v53 = vld [vmem:[%s16440_s24 + $0x7c8] sm:$0xff]  }
 0x1f0   : > { %v9151_v4 = vsel %vm8127_vm5, %v7615_v6, %v8639_v38  ;;  %v7869_v57 = vadd.f32 %v17665_v24, %v17769_v43  ;;  %v7618_v9 = vadd.f32 %v17665_v24, %v17771_v54  ;;  %v9407_v51 = vsel %vm8383_vm6, %v7871_v55, %v8895_v59  ;;  %15797 = vmatmul.mubr.msk.bf16.gmra.mxu0 %vm3096_vm0, %v16340_v25  ;;  %v17948_v50 = vpop.f32.mrf.mxu1  ;;  %v16347_v38 = vld [vmem:[%s16440_s24 + $0x7d0] sm:$0xff]  }
 0x1f1   : > { %v14071_v16 = vpack.c.bf16 %v9151_v4, %v9150_v2  ;;  %v9149_v3 = vsel %vm8125_vm7, %v7613_v41, %v8637_v49  ;;  %v7874_v45 = vadd.f32 %v17665_v24, %v17779_v8  ;;  %v14711_v13 = vpack.c.bf16 %v9407_v51, %v9406_v31  ;;  %16053 = vmatmul.mubr.msk.bf16.gmra.mxu1 %vm3096_vm0, %v16341_v37  ;;  %v17953_v26 = vpop.f32.mrf.mxu0  ;;  %v16344_v41 = vld [vmem:[%s16440_s24 + $0x3c8] sm:$0xff]  }
 0x1f2   : > { %v14066_v43 = vpack.c.bf16 %v9149_v3, %v9148_v28  ;;  %vm8381_vm8 = vcmp.ge.f32.partialorder %v7869_v57, 0.0  ;;  %v8893_v0 = vmul.f32 0.1, %v7869_v57  ;;  %15800 = vmatprep.mubr.msk.bf16.mxu0 %vm3096_vm0, %v16342_v36  ;;  %vm8130_vm9 = vcmp.ge.f32.partialorder %v7618_v9, 0.0  ;;  %16056 = vmatprep.mubr.msk.bf16.mxu1 %vm3096_vm0, %v16343_v5  ;;  %v17964_v55 = vpop.f32.mrf.mxu1 }
 0x1f3   : > { %15103 = vst [vmem:[%s16669_s29 + $0x1e8] sm:$0xff] %v14071_v16   ;;  %v8642_v54 = vmul.f32 0.1, %v7618_v9  ;;  %vm8386_vm10 = vcmp.ge.f32.partialorder %v7874_v45, 0.0  ;;  %v8898_v8 = vmul.f32 0.1, %v7874_v45  ;;  %v7616_v33 = vadd.f32 %v17665_v24, %v17790_v44  ;;  %v17969_v36 = vpop.f32.mrf.mxu0 }
 0x1f4   : > { %15231 = vst [vmem:[%s16669_s29 + $0x5e8] sm:$0xff] %v14711_v13   ;;  %15102 = vst [vmem:[%s16669_s29 + $0x1e0] sm:$0xff] %v14066_v43   ;;  %v9405_v29 = vsel %vm8381_vm8, %v7869_v57, %v8893_v0  ;;  %v7872_v2 = vadd.f32 %v17665_v24, %v17793_v61  ;;  %v7619_v6 = vadd.f32 %v17665_v24, %v17796_v58  ;;  %v16346_v44 = vld [vmem:[%s16440_s24 + $0x3d0] sm:$0xff]   ;;  %v17974_v58 = vpop.f32.mrf.mxu1 }
 0x1f5   : > { %v14706_v25 = vpack.c.bf16 %v9405_v29, %v9404_v32  ;;  %v9154_v31 = vsel %vm8130_vm9, %v7618_v9, %v8642_v54  ;;  %v9410_v52 = vsel %vm8386_vm10, %v7874_v45, %v8898_v8  ;;  %v7875_v37 = vadd.f32 %v17665_v24, %v17798_v60  ;;  %v17977_v5 = vpop.f32.mrf.mxu0 }
 0x1f6   : > { %vm8128_vm11 = vcmp.ge.f32.partialorder %v7616_v33, 0.0  ;;  %v8640_v61 = vmul.f32 0.1, %v7616_v33  ;;  %vm8384_vm12 = vcmp.ge.f32.partialorder %v7872_v2, 0.0  ;;  %v8896_v28 = vmul.f32 0.1, %v7872_v2  ;;  %v17983_v9 = vpop.f32.mrf.mxu1 }
 0x1f7   : > { %15230 = vst [vmem:[%s16669_s29 + $0x5e0] sm:$0xff] %v14706_v25   ;;  %vm8131_vm13 = vcmp.ge.f32.partialorder %v7619_v6, 0.0  ;;  %v8643_v59 = vmul.f32 0.1, %v7619_v6  ;;  %vm8387_vm14 = vcmp.ge.f32.partialorder %v7875_v37, 0.0  ;;  %v7617_v4 = vadd.f32 %v17665_v24, %v17803_v42  ;;  %v17989_v13 = vpop.f32.mrf.mxu0 }
 0x1f8   : > { %v8899_v49 = vmul.f32 0.1, %v7875_v37  ;;  %v9152_v32 = vsel %vm8128_vm11, %v7616_v33, %v8640_v61  ;;  %v9408_v60 = vsel %vm8384_vm12, %v7872_v2, %v8896_v28  ;;  %v7873_v57 = vadd.f32 %v17665_v24, %v17808_v46  ;;  %15801 = vmatmul.mubr.msk.bf16.gmra.mxu0 %vm3096_vm0, %v16344_v41  ;;  %v17992_v0 = vpop.f32.mrf.mxu1  ;;  %v16350_v28 = vld [vmem:[%s16440_s24 + $0x3e0] sm:$0xff]  }
 0x1f9   : > { %v9155_v16 = vsel %vm8131_vm13, %v7619_v6, %v8643_v59  ;;  %v7622_v3 = vadd.f32 %v17665_v24, %v17813_v23  ;;  %v7878_v45 = vadd.f32 %v17665_v24, %v17826_v19  ;;  %vm8129_vm15 = vcmp.ge.f32.partialorder %v7617_v4, 0.0  ;;  %16057 = vmatmul.mubr.msk.bf16.gmra.mxu1 %vm3096_vm0, %v16345_v53  ;;  %15804 = vmatprep.mubr.msk.bf16.mxu0 %vm3096_vm0, %v16346_v44  ;;  %v17996_v54 = vpop.f32.mrf.mxu0 }
 0x1fa   : > { %v9411_v51 = vsel %vm8387_vm14, %v7875_v37, %v8899_v49  ;;  %v14081_v42 = vpack.c.bf16 %v9155_v16, %v9154_v31  ;;  %v8641_v46 = vmul.f32 0.1, %v7617_v4  ;;  %vm8385_vm1 = vcmp.ge.f32.partialorder %v7873_v57, 0.0  ;;  %16060 = vmatprep.mubr.msk.bf16.mxu1 %vm3096_vm0, %v16347_v38  ;;  %v18003_v2 = vpop.f32.mrf.mxu1  ;;  %v16348_v37 = vld [vmem:[%s16440_s24 + $0x3d8] sm:$0xff]  }
 0x1fb   : > { %v14721_v43 = vpack.c.bf16 %v9411_v51, %v9410_v52  ;;  %v8897_v23 = vmul.f32 0.1, %v7873_v57  ;;  %vm8134_vm2 = vcmp.ge.f32.partialorder %v7622_v3, 0.0  ;;  %v8646_v19 = vmul.f32 0.1, %v7622_v3  ;;  %v18007_v52 = vpop.f32.mrf.mxu0 }
 0x1fc   : > { %15105 = vst [vmem:[%s16669_s29 + $0x1f8] sm:$0xff] %v14081_v42   ;;  %v9153_v8 = vsel %vm8129_vm15, %v7617_v4, %v8641_v46  ;;  %vm8390_vm3 = vcmp.ge.f32.partialorder %v7878_v45, 0.0  ;;  %v8902_v29 = vmul.f32 0.1, %v7878_v45  ;;  %v7620_v33 = vadd.f32 %v17665_v24, %v17832_v40  ;;  %v18010_v61 = vpop.f32.mrf.mxu1  ;;  %v16349_v40 = vld [vmem:[%s16440_s24 + $0x7d8] sm:$0xff]   ;;  %v16351_v4 = vld [vmem:[%s16440_s24 + $0x7e0] sm:$0xff]  }
 0x1fd   : > { %15233 = vst [vmem:[%s16669_s29 + $0x5f8] sm:$0xff] %v14721_v43   ;;  %v14076_v6 = vpack.c.bf16 %v9153_v8, %v9152_v32  ;;  %v9409_v41 = vsel %vm8385_vm1, %v7873_v57, %v8897_v23  ;;  %v9158_v25 = vsel %vm8134_vm2, %v7622_v3, %v8646_v19  ;;  %v7876_v31 = vadd.f32 %v17665_v24, %v17836_v14  ;;  %v18019_v32 = vpop.f32.mrf.mxu0 }
 0x1fe   : > { %v14716_v53 = vpack.c.bf16 %v9409_v41, %v9408_v60  ;;  %v9414_v44 = vsel %vm8390_vm3, %v7878_v45, %v8902_v29  ;;  %vm8132_vm4 = vcmp.ge.f32.partialorder %v7620_v33, 0.0  ;;  %v8644_v38 = vmul.f32 0.1, %v7620_v33  ;;  %v18029_v3 = vpop.f32.mrf.mxu1 }
 0x1ff   : > { %15104 = vst [vmem:[%s16669_s29 + $0x1f0] sm:$0xff] %v14076_v6   ;;  %vm8388_vm5 = vcmp.ge.f32.partialorder %v7876_v31, 0.0  ;;  %v8900_v59 = vmul.f32 0.1, %v7876_v31  ;;  %v7623_v49 = vadd.f32 %v17665_v24, %v17838_v15  ;;  %v7879_v14 = vadd.f32 %v17665_v24, %v17841_v56  ;;  %v18031_v56 = vpop.f32.mrf.mxu0 }
 0x200   : > { %15232 = vst [vmem:[%s16669_s29 + $0x5f0] sm:$0xff] %v14716_v53   ;;  %v9156_v60 = vsel %vm8132_vm4, %v7620_v33, %v8644_v38  ;;  %v7621_v57 = vadd.f32 %v17665_v24, %v17847_v21  ;;  %v7877_v16 = vadd.f32 %v17665_v24, %v17855_v18  ;;  %v7626_v51 = vadd.f32 %v17665_v24, %v17859_v12  ;;  %v18034_v21 = vpop.f32.mrf.mxu1 }
 0x201   : > { %v9412_v15 = vsel %vm8388_vm5, %v7876_v31, %v8900_v59  ;;  %vm8135_vm6 = vcmp.ge.f32.partialorder %v7623_v49, 0.0  ;;  %v8647_v45 = vmul.f32 0.1, %v7623_v49  ;;  %vm8391_vm7 = vcmp.ge.f32.partialorder %v7879_v14, 0.0  ;;  %15805 = vmatmul.mubr.msk.bf16.gmra.mxu0 %vm3096_vm0, %v16348_v37  ;;  %16061 = vmatmul.mubr.msk.bf16.gmra.mxu1 %vm3096_vm0, %v16349_v40  ;;  %v18038_v23 = vpop.f32.mrf.mxu0 }
 0x202   : > { %v8903_v42 = vmul.f32 0.1, %v7879_v14  ;;  %vm8133_vm8 = vcmp.ge.f32.partialorder %v7621_v57, 0.0  ;;  %v8645_v43 = vmul.f32 0.1, %v7621_v57  ;;  %vm8389_vm9 = vcmp.ge.f32.partialorder %v7877_v16, 0.0  ;;  %15808 = vmatprep.mubr.msk.bf16.mxu0 %vm3096_vm0, %v16350_v28  ;;  %16064 = vmatprep.mubr.msk.bf16.mxu1 %vm3096_vm0, %v16351_v4  ;;  %v18044_v6 = vpop.f32.mrf.mxu1 }
 0x203   : > { %v9159_v18 = vsel %vm8135_vm6, %v7623_v49, %v8647_v45  ;;  %v8901_v12 = vmul.f32 0.1, %v7877_v16  ;;  %vm8138_vm10 = vcmp.ge.f32.partialorder %v7626_v51, 0.0  ;;  %v8650_v46 = vmul.f32 0.1, %v7626_v51  ;;  %v18047_v38 = vpop.f32.mrf.mxu0  ;;  %v16353_v49 = vld [vmem:[%s16440_s24 + $0x7e8] sm:$0xff]  }
 0x204   : > { %v14091_v19 = vpack.c.bf16 %v9159_v18, %v9158_v25  ;;  %v9415_v8 = vsel %vm8391_vm7, %v7879_v14, %v8903_v42  ;;  %v9157_v29 = vsel %vm8133_vm8, %v7621_v57, %v8645_v43  ;;  %v7882_v33 = vadd.f32 %v17665_v24, %v17863_v11  ;;  %v16352_v25 = vld [vmem:[%s16440_s24 + $0x3e8] sm:$0xff]   ;;  %v18053_v59 = vpop.f32.mrf.mxu1 }
 0x205   : > { %v14731_v41 = vpack.c.bf16 %v9415_v8, %v9414_v44  ;;  %v14086_v31 = vpack.c.bf16 %v9157_v29, %v9156_v60  ;;  %v9413_v37 = vsel %vm8389_vm9, %v7877_v16, %v8901_v12  ;;  %v9162_v53 = vsel %vm8138_vm10, %v7626_v51, %v8650_v46  ;;  %v16354_v44 = vld [vmem:[%s16440_s24 + $0x3f0] sm:$0xff]   ;;  %v18067_v16 = vpop.f32.mrf.mxu0 }
 0x206   : > { %15107 = vst [vmem:[%s16669_s29 + $0x208] sm:$0xff] %v14091_v19   ;;  %v14726_v40 = vpack.c.bf16 %v9413_v37, %v9412_v15  ;;  %vm8394_vm11 = vcmp.ge.f32.partialorder %v7882_v33, 0.0  ;;  %v8906_v28 = vmul.f32 0.1, %v7882_v33  ;;  %v7624_v11 = vadd.f32 %v17665_v24, %v17872_v62  ;;  %v16355_v62 = vld [vmem:[%s16440_s24 + $0x7f0] sm:$0xff]  }
 0x207   : > { %15235 = vst [vmem:[%s16669_s29 + $0x608] sm:$0xff] %v14731_v41   ;;  %15106 = vst [vmem:[%s16669_s29 + $0x200] sm:$0xff] %v14086_v31   ;;  %v7880_v14 = vadd.f32 %v17665_v24, %v17882_v17  ;;  %v7627_v4 = vadd.f32 %v17665_v24, %v17886_v10  ;;  %v7883_v60 = vadd.f32 %v17665_v24, %v17890_v48  ;;  %v18073_v17 = vpop.f32.mrf.mxu1  ;;  %v18075_v48 = vpop.f32.mrf.mxu0 }
 0x208   : > { %v7625_v57 = vadd.f32 %v17665_v24, %v17892_v47  ;;  %15234 = vst [vmem:[%s16669_s29 + $0x600] sm:$0xff] %v14726_v40   ;;  %v9418_v51 = vsel %vm8394_vm11, %v7882_v33, %v8906_v28  ;;  %vm8136_vm12 = vcmp.ge.f32.partialorder %v7624_v11, 0.0  ;;  %v8648_v15 = vmul.f32 0.1, %v7624_v11 }
 0x209   : > { %v7881_v45 = vadd.f32 %v17665_v24, %v17899_v35  ;;  %vm8392_vm13 = vcmp.ge.f32.partialorder %v7880_v14, 0.0  ;;  %v8904_v10 = vmul.f32 0.1, %v7880_v14  ;;  %vm8139_vm14 = vcmp.ge.f32.partialorder %v7627_v4, 0.0  ;;  %15809 = vmatmul.mubr.msk.bf16.gmra.mxu0 %vm3096_vm0, %v16352_v25  ;;  %v18078_v18 = vpop.f32.mrf.mxu1  ;;  %16065 = vmatmul.mubr.msk.bf16.gmra.mxu1 %vm3096_vm0, %v16353_v49  ;;  %v18082_v19 = vpop.f32.mrf.mxu0 }
 0x20a   : > { %v8651_v42 = vmul.f32 0.1, %v7627_v4  ;;  %v9160_v47 = vsel %vm8136_vm12, %v7624_v11, %v8648_v15  ;;  %vm8395_vm15 = vcmp.ge.f32.partialorder %v7883_v60, 0.0  ;;  %v8907_v43 = vmul.f32 0.1, %v7883_v60  ;;  %15812 = vmatprep.mubr.msk.bf16.mxu0 %vm3096_vm0, %v16354_v44  ;;  %16068 = vmatprep.mubr.msk.bf16.mxu1 %vm3096_vm0, %v16355_v62  ;;  %v16356_v11 = vld [vmem:[%s16440_s24 + $0x3f8] sm:$0xff]  }
 0x20b   : > { %vm8137_vm1 = vcmp.ge.f32.partialorder %v7625_v57, 0.0  ;;  %v9416_v35 = vsel %vm8392_vm13, %v7880_v14, %v8904_v10  ;;  %v8649_v46 = vmul.f32 0.1, %v7625_v57  ;;  %vm8393_vm2 = vcmp.ge.f32.partialorder %v7881_v45, 0.0  ;;  %v18087_v31 = vpop.f32.mrf.mxu1  ;;  %v18109_v62 = vld [vmem:[%s19104_s2] ss:$0 sm:$0xff] }
 0x20c   : > { %v9163_v12 = vsel %vm8139_vm14, %v7627_v4, %v8651_v42  ;;  %v9419_v29 = vsel %vm8395_vm15, %v7883_v60, %v8907_v43  ;;  %v8905_v33 = vmul.f32 0.1, %v7881_v45  ;;  %v7630_v41 = vadd.f32 %v17665_v24, %v17901_v39  ;;  %v16357_v4 = vld [vmem:[%s16440_s24 + $0x7f8] sm:$0xff]  }
 0x20d   : > { %v14101_v8 = vpack.c.bf16 %v9163_v12, %v9162_v53  ;;  %v14741_v37 = vpack.c.bf16 %v9419_v29, %v9418_v51  ;;  %v9161_v25 = vsel %vm8137_vm1, %v7625_v57, %v8649_v46  ;;  %v7886_v40 = vadd.f32 %v17665_v24, %v17904_v63  ;;  %v18094_v53 = vpop.f32.mrf.mxu0  ;;  %v18099_v14 = vpop.f32.mrf.mxu1 }
 0x20e   : > { %v7628_v28 = vadd.f32 %v17665_v24, %v17914_v30  ;;  %v14096_v49 = vpack.c.bf16 %v9161_v25, %v9160_v47  ;;  %v9417_v44 = vsel %vm8393_vm2, %v7881_v45, %v8905_v33  ;;  %vm8142_vm3 = vcmp.ge.f32.partialorder %v7630_v41, 0.0 }
 0x20f   : > { %15109 = vst [vmem:[%s16669_s29 + $0x218] sm:$0xff] %v14101_v8   ;;  %v8654_v39 = vmul.f32 0.1, %v7630_v41  ;;  %15237 = vst [vmem:[%s16669_s29 + $0x618] sm:$0xff] %v14741_v37   ;;  %v14736_v60 = vpack.c.bf16 %v9417_v44, %v9416_v35  ;;  %vm8398_vm4 = vcmp.ge.f32.partialorder %v7886_v40, 0.0  ;;  %v18103_v24 = vpop.f32.mrf.mxu0  ;;  %v7884_v51 = vadd.f32 %v18109_v62, %v17925_v27  ;;  %v18115_v45 = vpop.f32.mrf.mxu1 }
 0x210   : > { %v8910_v63 = vmul.f32 0.1, %v7886_v40  ;;  %vm8140_vm5 = vcmp.ge.f32.partialorder %v7628_v28, 0.0  ;;  %15108 = vst [vmem:[%s16669_s29 + $0x210] sm:$0xff] %v14096_v49   ;;  %v8652_v57 = vmul.f32 0.1, %v7628_v28  ;;  %v7631_v15 = vadd.f32 %v18109_v62, %v17928_v34 }
 0x211   : > { %v9166_v30 = vsel %vm8142_vm3, %v7630_v41, %v8654_v39  ;;  %15236 = vst [vmem:[%s16669_s29 + $0x610] sm:$0xff] %v14736_v60   ;;  %v7887_v42 = vadd.f32 %v18109_v62, %v17932_v22  ;;  %v7629_v47 = vadd.f32 %v18109_v62, %v17934_v1  ;;  %v7885_v43 = vadd.f32 %v18109_v62, %v17941_v20  ;;  %v18124_v35 = vpop.f32.mrf.mxu0  ;;  %v18128_v12 = vpop.f32.mrf.mxu1 }
 0x212   : > { %v9422_v10 = vsel %vm8398_vm4, %v7886_v40, %v8910_v63  ;;  %15813 = vmatmul.mubr.msk.bf16.gmra.mxu0 %vm3096_vm0, %v16356_v11  ;;  %v9164_v27 = vsel %vm8140_vm5, %v7628_v28, %v8652_v57  ;;  %vm8396_vm6 = vcmp.ge.f32.partialorder %v7884_v51, 0.0  ;;  %v8908_v34 = vmul.f32 0.1, %v7884_v51  ;;  %16069 = vmatmul.mubr.msk.bf16.gmra.mxu1 %vm3096_vm0, %v16357_v4 }
 0x213   : > { %vm8143_vm7 = vcmp.ge.f32.partialorder %v7631_v15, 0.0  ;;  %v8655_v22 = vmul.f32 0.1, %v7631_v15  ;;  %vm8399_vm8 = vcmp.ge.f32.partialorder %v7887_v42, 0.0  ;;  %v8911_v46 = vmul.f32 0.1, %v7887_v42  ;;  %v18131_v1 = vpop.f32.mrf.mxu0  ;;  %v18133_v33 = vpop.f32.mrf.mxu1 }
 0x214   : > { %vm8141_vm9 = vcmp.ge.f32.partialorder %v7629_v47, 0.0  ;;  %v9420_v20 = vsel %vm8396_vm6, %v7884_v51, %v8908_v34  ;;  %v8653_v8 = vmul.f32 0.1, %v7629_v47  ;;  %vm8397_vm10 = vcmp.ge.f32.partialorder %v7885_v43, 0.0 }
 0x215   : > { %v8909_v29 = vmul.f32 0.1, %v7885_v43  ;;  %v9167_v41 = vsel %vm8143_vm7, %v7631_v15, %v8655_v22  ;;  %v9423_v37 = vsel %vm8399_vm8, %v7887_v42, %v8911_v46  ;;  %v7634_v25 = vadd.f32 %v18109_v62, %v17945_v7  ;;  %v18139_v28 = vpop.f32.mrf.mxu0  ;;  %v18141_v4 = vpop.f32.mrf.mxu1 }
 0x216   : > { %v7890_v40 = vadd.f32 %v18109_v62, %v17948_v50  ;;  %v14111_v11 = vpack.c.bf16 %v9167_v41, %v9166_v30  ;;  %v14751_v49 = vpack.c.bf16 %v9423_v37, %v9422_v10  ;;  %v9165_v44 = vsel %vm8141_vm9, %v7629_v47, %v8653_v8 }
 0x217   : > { %v9421_v39 = vsel %vm8397_vm10, %v7885_v43, %v8909_v29  ;;  %v14106_v60 = vpack.c.bf16 %v9165_v44, %v9164_v27  ;;  %vm8146_vm0 = vcmp.ge.f32.partialorder %v7634_v25, 0.0  ;;  %v8658_v57 = vmul.f32 0.1, %v7634_v25  ;;  %v18143_v51 = vpop.f32.mrf.mxu0  ;;  %v18151_v15 = vpop.f32.mrf.mxu1 }
 0x218   : > { %v14746_v63 = vpack.c.bf16 %v9421_v39, %v9420_v20  ;;  %15111 = vst [vmem:[%s16669_s29 + $0x228] sm:$0xff] %v14111_v11   ;;  %15239 = vst [vmem:[%s16669_s29 + $0x628] sm:$0xff] %v14751_v49   ;;  %vm8402_vm11 = vcmp.ge.f32.partialorder %v7890_v40, 0.0  ;;  %v8914_v7 = vmul.f32 0.1, %v7890_v40  ;;  %v7632_v50 = vadd.f32 %v18109_v62, %v17953_v26 }
 0x219   : > { %v7888_v30 = vadd.f32 %v18109_v62, %v17964_v55  ;;  %15110 = vst [vmem:[%s16669_s29 + $0x220] sm:$0xff] %v14106_v60   ;;  %v9170_v10 = vsel %vm8146_vm0, %v7634_v25, %v8658_v57  ;;  %v7635_v42 = vadd.f32 %v18109_v62, %v17969_v36  ;;  %v7891_v47 = vadd.f32 %v18109_v62, %v17974_v58  ;;  %v18161_v27 = vpop.f32.mrf.mxu0  ;;  %v18163_v55 = vpop.f32.mrf.mxu1 }
 0x21a   : > { %15238 = vst [vmem:[%s16669_s29 + $0x620] sm:$0xff] %v14746_v63   ;;  %v7633_v43 = vadd.f32 %v18109_v62, %v17977_v5  ;;  %v9426_v26 = vsel %vm8402_vm11, %v7890_v40, %v8914_v7  ;;  %vm8144_vm12 = vcmp.ge.f32.partialorder %v7632_v50, 0.0  ;;  %v8656_v34 = vmul.f32 0.1, %v7632_v50 }
 0x21b   : > { %vm8400_vm13 = vcmp.ge.f32.partialorder %v7888_v30, 0.0  ;;  %v8912_v22 = vmul.f32 0.1, %v7888_v30  ;;  %vm8147_vm14 = vcmp.ge.f32.partialorder %v7635_v42, 0.0  ;;  %v8659_v46 = vmul.f32 0.1, %v7635_v42  ;;  %v18165_v20 = vpop.f32.mrf.mxu0  ;;  %v18167_v29 = vpop.f32.mrf.mxu1 }
 0x21c   : > { %vm8403_vm15 = vcmp.ge.f32.partialorder %v7891_v47, 0.0  ;;  %v9168_v36 = vsel %vm8144_vm12, %v7632_v50, %v8656_v34  ;;  %v8915_v8 = vmul.f32 0.1, %v7891_v47  ;;  %vm8145_vm1 = vcmp.ge.f32.partialorder %v7633_v43, 0.0 }
 0x21d   : > { %v8657_v58 = vmul.f32 0.1, %v7633_v43  ;;  %v9424_v5 = vsel %vm8400_vm13, %v7888_v30, %v8912_v22  ;;  %v9171_v41 = vsel %vm8147_vm14, %v7635_v42, %v8659_v46  ;;  %v7889_v37 = vadd.f32 %v18109_v62, %v17983_v9  ;;  %v18173_v40 = vpop.f32.mrf.mxu0  ;;  %v18177_v60 = vpop.f32.mrf.mxu1 }
 0x21e   : > { %v7638_v25 = vadd.f32 %v18109_v62, %v17989_v13  ;;  %v14121_v11 = vpack.c.bf16 %v9171_v41, %v9170_v10  ;;  %v9427_v49 = vsel %vm8403_vm15, %v7891_v47, %v8915_v8  ;;  %v7894_v39 = vadd.f32 %v18109_v62, %v17992_v0 }
 0x21f   : > { %v9169_v44 = vsel %vm8145_vm1, %v7633_v43, %v8657_v58  ;;  %v14761_v63 = vpack.c.bf16 %v9427_v49, %v9426_v26  ;;  %vm8401_vm2 = vcmp.ge.f32.partialorder %v7889_v37, 0.0  ;;  %v8913_v7 = vmul.f32 0.1, %v7889_v37  ;;  %v18179_v9 = vpop.f32.mrf.mxu0  ;;  %v18182_v30 = vpop.f32.mrf.mxu1 }
 0x220   : > { %v14116_v57 = vpack.c.bf16 %v9169_v44, %v9168_v36  ;;  %15113 = vst [vmem:[%s16669_s29 + $0x238] sm:$0xff] %v14121_v11   ;;  %vm8150_vm3 = vcmp.ge.f32.partialorder %v7638_v25, 0.0  ;;  %v8662_v13 = vmul.f32 0.1, %v7638_v25  ;;  %vm8406_vm4 = vcmp.ge.f32.partialorder %v7894_v39, 0.0 }
 0x221   : > { %v8918_v50 = vmul.f32 0.1, %v7894_v39  ;;  %15241 = vst [vmem:[%s16669_s29 + $0x638] sm:$0xff] %v14761_v63   ;;  %v9425_v10 = vsel %vm8401_vm2, %v7889_v37, %v8913_v7  ;;  %v7636_v0 = vadd.f32 %v18109_v62, %v17996_v54  ;;  %v7892_v42 = vadd.f32 %v18109_v62, %v18003_v2  ;;  %v18192_v43 = vpop.f32.mrf.mxu0  ;;  %v18196_v36 = vpop.f32.mrf.mxu1 }
 0x222   : > { %15112 = vst [vmem:[%s16669_s29 + $0x230] sm:$0xff] %v14116_v57   ;;  %v7639_v47 = vadd.f32 %v18109_v62, %v18007_v52  ;;  %v14756_v26 = vpack.c.bf16 %v9425_v10, %v9424_v5  ;;  %v9174_v34 = vsel %vm8150_vm3, %v7638_v25, %v8662_v13  ;;  %v7895_v46 = vadd.f32 %v18109_v62, %v18010_v61 }
 0x223   : > { %v9430_v22 = vsel %vm8406_vm4, %v7894_v39, %v8918_v50  ;;  %vm8148_vm5 = vcmp.ge.f32.partialorder %v7636_v0, 0.0  ;;  %v8660_v8 = vmul.f32 0.1, %v7636_v0  ;;  %vm8404_vm6 = vcmp.ge.f32.partialorder %v7892_v42, 0.0  ;;  %v18198_v58 = vpop.f32.mrf.mxu0  ;;  %v18201_v41 = vpop.f32.mrf.mxu1 }
 0x224   : > { %v8916_v54 = vmul.f32 0.1, %v7892_v42  ;;  %15240 = vst [vmem:[%s16669_s29 + $0x630] sm:$0xff] %v14756_v26   ;;  %vm8151_vm7 = vcmp.ge.f32.partialorder %v7639_v47, 0.0  ;;  %v8663_v2 = vmul.f32 0.1, %v7639_v47  ;;  %v7637_v61 = vadd.f32 %v18109_v62, %v18019_v32 }
 0x225   : > { %vm8407_vm8 = vcmp.ge.f32.partialorder %v7895_v46, 0.0  ;;  %v8919_v52 = vmul.f32 0.1, %v7895_v46  ;;  %v9172_v5 = vsel %vm8148_vm5, %v7636_v0, %v8660_v8  ;;  %v7893_v25 = vadd.f32 %v18109_v62, %v18029_v3  ;;  %v18207_v11 = vpop.f32.mrf.mxu0  ;;  %v18213_v57 = vpop.f32.mrf.mxu1 }
 0x226   : > { %v9428_v37 = vsel %vm8404_vm6, %v7892_v42, %v8916_v54  ;;  %v9175_v49 = vsel %vm8151_vm7, %v7639_v47, %v8663_v2  ;;  %v7642_v39 = vadd.f32 %v18109_v62, %v18031_v56  ;;  %v7898_v63 = vadd.f32 %v18109_v62, %v18034_v21 }
 0x227   : > { %v9431_v44 = vsel %vm8407_vm8, %v7895_v46, %v8919_v52  ;;  %v14131_v7 = vpack.c.bf16 %v9175_v49, %v9174_v34  ;;  %vm8149_vm9 = vcmp.ge.f32.partialorder %v7637_v61, 0.0  ;;  %v8661_v32 = vmul.f32 0.1, %v7637_v61  ;;  %v18215_v50 = vpop.f32.mrf.mxu0  ;;  %v18217_v0 = vpop.f32.mrf.mxu1 }
 0x228   : > { %v14771_v13 = vpack.c.bf16 %v9431_v44, %v9430_v22  ;;  %vm8405_vm10 = vcmp.ge.f32.partialorder %v7893_v25, 0.0  ;;  %v8917_v3 = vmul.f32 0.1, %v7893_v25  ;;  %vm8154_vm0 = vcmp.ge.f32.partialorder %v7642_v39, 0.0 }
 0x229   : > { %v8666_v10 = vmul.f32 0.1, %v7642_v39  ;;  %15115 = vst [vmem:[%s16669_s29 + $0x248] sm:$0xff] %v14131_v7   ;;  %v9173_v56 = vsel %vm8149_vm9, %v7637_v61, %v8661_v32  ;;  %vm8410_vm11 = vcmp.ge.f32.partialorder %v7898_v63, 0.0  ;;  %v8922_v21 = vmul.f32 0.1, %v7898_v63  ;;  %v18223_v47 = vpop.f32.mrf.mxu0  ;;  %v18227_v8 = vpop.f32.mrf.mxu1 }
 0x22a   : > { %15243 = vst [vmem:[%s16669_s29 + $0x648] sm:$0xff] %v14771_v13   ;;  %v7640_v42 = vadd.f32 %v18109_v62, %v18038_v23  ;;  %v14126_v26 = vpack.c.bf16 %v9173_v56, %v9172_v5  ;;  %v9429_v34 = vsel %vm8405_vm10, %v7893_v25, %v8917_v3  ;;  %v7896_v46 = vadd.f32 %v18109_v62, %v18044_v6 }
 0x22b   : > { %v9178_v22 = vsel %vm8154_vm0, %v7642_v39, %v8666_v10  ;;  %v14766_v54 = vpack.c.bf16 %v9429_v34, %v9428_v37  ;;  %v9434_v2 = vsel %vm8410_vm11, %v7898_v63, %v8922_v21  ;;  %v18229_v61 = vpop.f32.mrf.mxu0  ;;  %v7643_v5 = vadd.f32 %v18109_v62, %v18047_v38  ;;  %v18236_v49 = vpop.f32.mrf.mxu1 }
 0x22c   : > { %vm8152_vm12 = vcmp.ge.f32.partialorder %v7640_v42, 0.0  ;;  %v8664_v52 = vmul.f32 0.1, %v7640_v42  ;;  %15114 = vst [vmem:[%s16669_s29 + $0x240] sm:$0xff] %v14126_v26   ;;  %vm8408_vm13 = vcmp.ge.f32.partialorder %v7896_v46, 0.0  ;;  %v7899_v25 = vadd.f32 %v18109_v62, %v18053_v59 }
 0x22d   : > { %v8920_v23 = vmul.f32 0.1, %v7896_v46  ;;  %15242 = vst [vmem:[%s16669_s29 + $0x640] sm:$0xff] %v14766_v54   ;;  %v7641_v37 = vadd.f32 %v18109_v62, %v18067_v16  ;;  %v7897_v44 = vadd.f32 %v18109_v62, %v18073_v17  ;;  %v7646_v39 = vadd.f32 %v18109_v62, %v18075_v48  ;;  %v18245_v63 = vpop.f32.mrf.mxu0  ;;  %v18247_v59 = vpop.f32.mrf.mxu1 }
 0x22e   : > { %v9176_v6 = vsel %vm8152_vm12, %v7640_v42, %v8664_v52  ;;  %vm8155_vm14 = vcmp.ge.f32.partialorder %v7643_v5, 0.0  ;;  %v8667_v38 = vmul.f32 0.1, %v7643_v5  ;;  %vm8411_vm15 = vcmp.ge.f32.partialorder %v7899_v25, 0.0 }
 0x22f   : > { %v9432_v7 = vsel %vm8408_vm13, %v7896_v46, %v8920_v23  ;;  %v8923_v13 = vmul.f32 0.1, %v7899_v25  ;;  %vm8153_vm1 = vcmp.ge.f32.partialorder %v7641_v37, 0.0  ;;  %v8665_v32 = vmul.f32 0.1, %v7641_v37  ;;  %v18249_v3 = vpop.f32.mrf.mxu0  ;;  %v18251_v48 = vpop.f32.mrf.mxu1 }
 0x230   : > { %vm8409_vm2 = vcmp.ge.f32.partialorder %v7897_v44, 0.0  ;;  %v9179_v16 = vsel %vm8155_vm14, %v7643_v5, %v8667_v38  ;;  %v8921_v17 = vmul.f32 0.1, %v7897_v44  ;;  %vm8158_vm3 = vcmp.ge.f32.partialorder %v7646_v39, 0.0 }
 0x231   : > { %v8670_v10 = vmul.f32 0.1, %v7646_v39  ;;  %v14141_v56 = vpack.c.bf16 %v9179_v16, %v9178_v22  ;;  %v9435_v21 = vsel %vm8411_vm15, %v7899_v25, %v8923_v13  ;;  %v9177_v42 = vsel %vm8153_vm1, %v7641_v37, %v8665_v32  ;;  %v18255_v34 = vpop.f32.mrf.mxu0  ;;  %v18257_v5 = vpop.f32.mrf.mxu1 }
 0x232   : > { %v7902_v26 = vadd.f32 %v18109_v62, %v18078_v18  ;;  %v14781_v46 = vpack.c.bf16 %v9435_v21, %v9434_v2  ;;  %v14136_v54 = vpack.c.bf16 %v9177_v42, %v9176_v6  ;;  %v9433_v52 = vsel %vm8409_vm2, %v7897_v44, %v8921_v17 }
 0x233   : > { %v9182_v23 = vsel %vm8158_vm3, %v7646_v39, %v8670_v10  ;;  %15117 = vst [vmem:[%s16669_s29 + $0x258] sm:$0xff] %v14141_v56   ;;  %v14776_v38 = vpack.c.bf16 %v9433_v52, %v9432_v7  ;;  %v7644_v25 = vadd.f32 %v18109_v62, %v18082_v19  ;;  %v18262_v37 = vpop.f32.mrf.mxu0  ;;  %v7900_v18 = vadd.f32 %v18109_v62, %v18087_v31  ;;  %v18274_v39 = vpop.f32.mrf.mxu1 }
 0x234   : > { %vm8414_vm4 = vcmp.ge.f32.partialorder %v7902_v26, 0.0  ;;  %v8926_v22 = vmul.f32 0.1, %v7902_v26  ;;  %15245 = vst [vmem:[%s16669_s29 + $0x658] sm:$0xff] %v14781_v46   ;;  %15116 = vst [vmem:[%s16669_s29 + $0x250] sm:$0xff] %v14136_v54   ;;  %v7647_v2 = vadd.f32 %v18109_v62, %v18094_v53  ;;  %v7903_v6 = vadd.f32 %v18109_v62, %v18099_v14 }
 0x235   : > { %v7645_v44 = vadd.f32 %v18109_v62, %v18103_v24  ;;  %15244 = vst [vmem:[%s16669_s29 + $0x650] sm:$0xff] %v14776_v38   ;;  %vm8156_vm5 = vcmp.ge.f32.partialorder %v7644_v25, 0.0  ;;  %v8668_v7 = vmul.f32 0.1, %v7644_v25  ;;  %v7901_v13 = vadd.f32 %v18109_v62, %v18115_v45  ;;  %v18279_v32 = vpop.f32.mrf.mxu0  ;;  %v18281_v16 = vpop.f32.mrf.mxu1 }
 0x236   : > { %v9438_v19 = vsel %vm8414_vm4, %v7902_v26, %v8926_v22  ;;  %vm8412_vm6 = vcmp.ge.f32.partialorder %v7900_v18, 0.0  ;;  %v8924_v31 = vmul.f32 0.1, %v7900_v18  ;;  %vm8159_vm7 = vcmp.ge.f32.partialorder %v7647_v2, 0.0 }
 0x237   : > { %v8671_v53 = vmul.f32 0.1, %v7647_v2  ;;  %v9180_v14 = vsel %vm8156_vm5, %v7644_v25, %v8668_v7  ;;  %vm8415_vm8 = vcmp.ge.f32.partialorder %v7903_v6, 0.0  ;;  %v8927_v24 = vmul.f32 0.1, %v7903_v6  ;;  %v18283_v17 = vpop.f32.mrf.mxu0  ;;  %v18285_v45 = vpop.f32.mrf.mxu1 }
 0x238   : > { %vm8157_vm9 = vcmp.ge.f32.partialorder %v7645_v44, 0.0  ;;  %v9436_v10 = vsel %vm8412_vm6, %v7900_v18, %v8924_v31  ;;  %v8669_v21 = vmul.f32 0.1, %v7645_v44  ;;  %vm8413_vm10 = vcmp.ge.f32.partialorder %v7901_v13, 0.0 }
 0x239   : > { %v9183_v56 = vsel %vm8159_vm7, %v7647_v2, %v8671_v53  ;;  %v9439_v26 = vsel %vm8415_vm8, %v7903_v6, %v8927_v24  ;;  %v8925_v46 = vmul.f32 0.1, %v7901_v13  ;;  %v7650_v54 = vadd.f32 %v18109_v62, %v18124_v35  ;;  %v18289_v52 = vpop.f32.mrf.mxu0  ;;  %v18295_v2 = vpop.f32.mrf.mxu1 }
 0x23a   : > { %v14151_v42 = vpack.c.bf16 %v9183_v56, %v9182_v23  ;;  %v14791_v38 = vpack.c.bf16 %v9439_v26, %v9438_v19  ;;  %v9181_v22 = vsel %vm8157_vm9, %v7645_v44, %v8669_v21  ;;  %v7906_v25 = vadd.f32 %v18109_v62, %v18128_v12 }
 0x23b   : > { %v7648_v18 = vadd.f32 %v18109_v62, %v18131_v1  ;;  %v14146_v23 = vpack.c.bf16 %v9181_v22, %v9180_v14  ;;  %v9437_v6 = vsel %vm8413_vm10, %v7901_v13, %v8925_v46  ;;  %vm8162_vm0 = vcmp.ge.f32.partialorder %v7650_v54, 0.0  ;;  %v18298_v35 = vpop.f32.mrf.mxu0  ;;  %v18301_v31 = vpop.f32.mrf.mxu1 }
 0x23c   : > { %15119 = vst [vmem:[%s16669_s29 + $0x268] sm:$0xff] %v14151_v42   ;;  %v8674_v7 = vmul.f32 0.1, %v7650_v54  ;;  %15247 = vst [vmem:[%s16669_s29 + $0x668] sm:$0xff] %v14791_v38   ;;  %v14786_v19 = vpack.c.bf16 %v9437_v6, %v9436_v10  ;;  %vm8418_vm11 = vcmp.ge.f32.partialorder %v7906_v25, 0.0  ;;  %v7904_v53 = vadd.f32 %v18109_v62, %v18133_v33 }
 0x23d   : > { %v8930_v44 = vmul.f32 0.1, %v7906_v25  ;;  %vm8160_vm12 = vcmp.ge.f32.partialorder %v7648_v18, 0.0  ;;  %15118 = vst [vmem:[%s16669_s29 + $0x260] sm:$0xff] %v14146_v23   ;;  %v8672_v1 = vmul.f32 0.1, %v7648_v18  ;;  %v7651_v13 = vadd.f32 %v18109_v62, %v18139_v28  ;;  %v18308_v14 = vpop.f32.mrf.mxu0  ;;  %v18317_v42 = vpop.f32.mrf.mxu1 }
 0x23e   : > { %v9186_v12 = vsel %vm8162_vm0, %v7650_v54, %v8674_v7  ;;  %15246 = vst [vmem:[%s16669_s29 + $0x660] sm:$0xff] %v14786_v19   ;;  %v7907_v10 = vadd.f32 %v18109_v62, %v18141_v4  ;;  %v7649_v56 = vadd.f32 %v18109_v62, %v18143_v51  ;;  %v7905_v21 = vadd.f32 %v18109_v62, %v18151_v15 }
 0x23f   : > { %v9442_v24 = vsel %vm8418_vm11, %v7906_v25, %v8930_v44  ;;  %v9184_v26 = vsel %vm8160_vm12, %v7648_v18, %v8672_v1  ;;  %vm8416_vm13 = vcmp.ge.f32.partialorder %v7904_v53, 0.0  ;;  %v8928_v33 = vmul.f32 0.1, %v7904_v53  ;;  %v18319_v28 = vpop.f32.mrf.mxu0  ;;  %v18321_v38 = vpop.f32.mrf.mxu1 }
 0x240   : > { %vm8163_vm14 = vcmp.ge.f32.partialorder %v7651_v13, 0.0  ;;  %v8675_v46 = vmul.f32 0.1, %v7651_v13  ;;  %vm8419_vm15 = vcmp.ge.f32.partialorder %v7907_v10, 0.0  ;;  %v8931_v54 = vmul.f32 0.1, %v7907_v10 }
 0x241   : > { %vm8161_vm1 = vcmp.ge.f32.partialorder %v7649_v56, 0.0  ;;  %v9440_v4 = vsel %vm8416_vm13, %v7904_v53, %v8928_v33  ;;  %v8673_v22 = vmul.f32 0.1, %v7649_v56  ;;  %vm8417_vm2 = vcmp.ge.f32.partialorder %v7905_v21, 0.0  ;;  %v18323_v25 = vpop.f32.mrf.mxu0  ;;  %v18329_v7 = vpop.f32.mrf.mxu1 }
 0x242   : > { %v8929_v51 = vmul.f32 0.1, %v7905_v21  ;;  %19106 = vst [vmem:[#allocation3_spill] sm:$0xff] %v18323_v25  ;;  %v9187_v15 = vsel %vm8163_vm14, %v7651_v13, %v8675_v46  ;;  %v9443_v18 = vsel %vm8419_vm15, %v7907_v10, %v8931_v54  ;;  %v7654_v23 = vadd.f32 %v18109_v62, %v18161_v27 }
 0x243   : > { %v7910_v6 = vadd.f32 %v18109_v62, %v18163_v55  ;;  %v14161_v19 = vpack.c.bf16 %v9187_v15, %v9186_v12  ;;  %v14801_v44 = vpack.c.bf16 %v9443_v18, %v9442_v24  ;;  %v9185_v1 = vsel %vm8161_vm1, %v7649_v56, %v8673_v22  ;;  %v18331_v33 = vpop.f32.mrf.mxu0  ;;  %v18333_v46 = vpop.f32.mrf.mxu1 }
 0x244   : > { %v9441_v53 = vsel %vm8417_vm2, %v7905_v21, %v8929_v51  ;;  %v14156_v25 = vpack.c.bf16 %v9185_v1, %v9184_v26  ;;  %vm8166_vm3 = vcmp.ge.f32.partialorder %v7654_v23, 0.0  ;;  %v8678_v10 = vmul.f32 0.1, %v7654_v23 }
 0x245   : > { %v14796_v13 = vpack.c.bf16 %v9441_v53, %v9440_v4  ;;  %15121 = vst [vmem:[%s16669_s29 + $0x278] sm:$0xff] %v14161_v19   ;;  %15249 = vst [vmem:[%s16669_s29 + $0x678] sm:$0xff] %v14801_v44   ;;  %vm8422_vm4 = vcmp.ge.f32.partialorder %v7910_v6, 0.0  ;;  %v8934_v27 = vmul.f32 0.1, %v7910_v6  ;;  %v7652_v55 = vadd.f32 %v18109_v62, %v18165_v20  ;;  %v18341_v24 = vpop.f32.mrf.mxu0  ;;  %v18351_v4 = vpop.f32.mrf.mxu1 }
 0x246   : > { %v7908_v12 = vadd.f32 %v18109_v62, %v18167_v29  ;;  %15120 = vst [vmem:[%s16669_s29 + $0x270] sm:$0xff] %v14156_v25   ;;  %v9190_v56 = vsel %vm8166_vm3, %v7654_v23, %v8678_v10  ;;  %v7655_v21 = vadd.f32 %v18109_v62, %v18173_v40  ;;  %v7911_v26 = vadd.f32 %v18109_v62, %v18177_v60 }
 0x247   : > { %15248 = vst [vmem:[%s16669_s29 + $0x670] sm:$0xff] %v14796_v13   ;;  %v7653_v54 = vadd.f32 %v18109_v62, %v18179_v9  ;;  %v9446_v20 = vsel %vm8422_vm4, %v7910_v6, %v8934_v27  ;;  %vm8164_vm5 = vcmp.ge.f32.partialorder %v7652_v55, 0.0  ;;  %v8676_v22 = vmul.f32 0.1, %v7652_v55  ;;  %v18353_v29 = vpop.f32.mrf.mxu0  ;;  %v18355_v15 = vpop.f32.mrf.mxu1 }
 0x248   : > { %vm8420_vm6 = vcmp.ge.f32.partialorder %v7908_v12, 0.0  ;;  %v8932_v51 = vmul.f32 0.1, %v7908_v12  ;;  %vm8167_vm7 = vcmp.ge.f32.partialorder %v7655_v21, 0.0  ;;  %v8679_v25 = vmul.f32 0.1, %v7655_v21 }
 0x249   : > { %vm8423_vm8 = vcmp.ge.f32.partialorder %v7911_v26, 0.0  ;;  %v9188_v40 = vsel %vm8164_vm5, %v7652_v55, %v8676_v22  ;;  %v8935_v18 = vmul.f32 0.1, %v7911_v26  ;;  %vm8165_vm9 = vcmp.ge.f32.partialorder %v7653_v54, 0.0  ;;  %v18357_v23 = vpop.f32.mrf.mxu0  ;;  %v18363_v1 = vpop.f32.mrf.mxu1 }
 0x24a   : > { %v8677_v60 = vmul.f32 0.1, %v7653_v54  ;;  %v9444_v9 = vsel %vm8420_vm6, %v7908_v12, %v8932_v51  ;;  %v9191_v6 = vsel %vm8167_vm7, %v7655_v21, %v8679_v25  ;;  %v7909_v19 = vadd.f32 %v18109_v62, %v18182_v30 }
 0x24b   : > { %v7658_v44 = vadd.f32 %v18109_v62, %v18192_v43  ;;  %v14171_v53 = vpack.c.bf16 %v9191_v6, %v9190_v56  ;;  %v9447_v13 = vsel %vm8423_vm8, %v7911_v26, %v8935_v18  ;;  %v7914_v27 = vadd.f32 %v18109_v62, %v18196_v36  ;;  %v18367_v55 = vpop.f32.mrf.mxu0  ;;  %v18369_v30 = vpop.f32.mrf.mxu1 }
 0x24c   : > { %v9189_v10 = vsel %vm8165_vm9, %v7653_v54, %v8677_v60  ;;  %v14811_v12 = vpack.c.bf16 %v9447_v13, %v9446_v20  ;;  %vm8421_vm10 = vcmp.ge.f32.partialorder %v7909_v19, 0.0  ;;  %v8933_v22 = vmul.f32 0.1, %v7909_v19 }
 0x24d   : > { %v14166_v21 = vpack.c.bf16 %v9189_v10, %v9188_v40  ;;  %15123 = vst [vmem:[%s16669_s29 + $0x288] sm:$0xff] %v14171_v53   ;;  %vm8170_vm0 = vcmp.ge.f32.partialorder %v7658_v44, 0.0  ;;  %v8682_v43 = vmul.f32 0.1, %v7658_v44  ;;  %vm8426_vm11 = vcmp.ge.f32.partialorder %v7914_v27, 0.0  ;;  %v18372_v51 = vpop.f32.mrf.mxu0  ;;  %v18382_v25 = vpop.f32.mrf.mxu1 }
 0x24e   : > { %v8938_v56 = vmul.f32 0.1, %v7914_v27  ;;  %15251 = vst [vmem:[%s16669_s29 + $0x688] sm:$0xff] %v14811_v12   ;;  %v9445_v26 = vsel %vm8421_vm10, %v7909_v19, %v8933_v22  ;;  %v7656_v36 = vadd.f32 %v18109_v62, %v18198_v58  ;;  %v7912_v54 = vadd.f32 %v18109_v62, %v18201_v41 }
 0x24f   : > { %15122 = vst [vmem:[%s16669_s29 + $0x280] sm:$0xff] %v14166_v21   ;;  %v7659_v20 = vadd.f32 %v18109_v62, %v18207_v11  ;;  %v14806_v40 = vpack.c.bf16 %v9445_v26, %v9444_v9  ;;  %v9194_v18 = vsel %vm8170_vm0, %v7658_v44, %v8682_v43  ;;  %v7915_v6 = vadd.f32 %v18109_v62, %v18213_v57  ;;  %v18386_v53 = vpop.f32.mrf.mxu0  ;;  %v18388_v13 = vpop.f32.mrf.mxu1 }
 0x250   : > { %v9450_v60 = vsel %vm8426_vm11, %v7914_v27, %v8938_v56  ;;  %vm8168_vm12 = vcmp.ge.f32.partialorder %v7656_v36, 0.0  ;;  %v8680_v19 = vmul.f32 0.1, %v7656_v36  ;;  %vm8424_vm13 = vcmp.ge.f32.partialorder %v7912_v54, 0.0 }
 0x251   : > { %v8936_v58 = vmul.f32 0.1, %v7912_v54  ;;  %15250 = vst [vmem:[%s16669_s29 + $0x680] sm:$0xff] %v14806_v40   ;;  %vm8171_vm14 = vcmp.ge.f32.partialorder %v7659_v20, 0.0  ;;  %v8683_v41 = vmul.f32 0.1, %v7659_v20  ;;  %v18391_v10 = vpop.f32.mrf.mxu0  ;;  %v7657_v57 = vadd.f32 %v18109_v62, %v18215_v50  ;;  %v18397_v12 = vpop.f32.mrf.mxu1 }
 0x252   : > { %vm8427_vm15 = vcmp.ge.f32.partialorder %v7915_v6, 0.0  ;;  %v8939_v11 = vmul.f32 0.1, %v7915_v6  ;;  %v9192_v9 = vsel %vm8168_vm12, %v7656_v36, %v8680_v19  ;;  %v7913_v27 = vadd.f32 %v18109_v62, %v18217_v0 }
 0x253   : > { %v9448_v44 = vsel %vm8424_vm13, %v7912_v54, %v8936_v58  ;;  %v9195_v21 = vsel %vm8171_vm14, %v7659_v20, %v8683_v41  ;;  %v7662_v43 = vadd.f32 %v18109_v62, %v18223_v47  ;;  %v7918_v56 = vadd.f32 %v18109_v62, %v18227_v8  ;;  %v18403_v26 = vpop.f32.mrf.mxu0  ;;  %v18405_v40 = vpop.f32.mrf.mxu1 }
 0x254   : > { %v9451_v22 = vsel %vm8427_vm15, %v7915_v6, %v8939_v11  ;;  %v14181_v36 = vpack.c.bf16 %v9195_v21, %v9194_v18  ;;  %vm8169_vm1 = vcmp.ge.f32.partialorder %v7657_v57, 0.0  ;;  %v8681_v50 = vmul.f32 0.1, %v7657_v57 }
 0x255   : > { %v14821_v54 = vpack.c.bf16 %v9451_v22, %v9450_v60  ;;  %vm8425_vm2 = vcmp.ge.f32.partialorder %v7913_v27, 0.0  ;;  %v8937_v0 = vmul.f32 0.1, %v7913_v27  ;;  %vm8174_vm3 = vcmp.ge.f32.partialorder %v7662_v43, 0.0  ;;  %v18407_v19 = vpop.f32.mrf.mxu0  ;;  %v18413_v60 = vpop.f32.mrf.mxu1 }
 0x256   : > { %v8686_v20 = vmul.f32 0.1, %v7662_v43  ;;  %15125 = vst [vmem:[%s16669_s29 + $0x298] sm:$0xff] %v14181_v36   ;;  %v9193_v47 = vsel %vm8169_vm1, %v7657_v57, %v8681_v50  ;;  %vm8430_vm4 = vcmp.ge.f32.partialorder %v7918_v56, 0.0  ;;  %v8942_v8 = vmul.f32 0.1, %v7918_v56 }
 0x257   : > { %15253 = vst [vmem:[%s16669_s29 + $0x698] sm:$0xff] %v14821_v54   ;;  %v7660_v18 = vadd.f32 %v18109_v62, %v18229_v61  ;;  %v14176_v6 = vpack.c.bf16 %v9193_v47, %v9192_v9  ;;  %v9449_v58 = vsel %vm8425_vm2, %v7913_v27, %v8937_v0  ;;  %v7916_v11 = vadd.f32 %v18109_v62, %v18236_v49  ;;  %v18417_v21 = vpop.f32.mrf.mxu0  ;;  %v18419_v54 = vpop.f32.mrf.mxu1 }
 0x258   : > { %v9198_v41 = vsel %vm8174_vm3, %v7662_v43, %v8686_v20  ;;  %v14816_v22 = vpack.c.bf16 %v9449_v58, %v9448_v44  ;;  %v9454_v36 = vsel %vm8430_vm4, %v7918_v56, %v8942_v8  ;;  %v7663_v9 = vadd.f32 %v18109_v62, %v18245_v63 }
 0x259   : > { %vm8172_vm5 = vcmp.ge.f32.partialorder %v7660_v18, 0.0  ;;  %v8684_v57 = vmul.f32 0.1, %v7660_v18  ;;  %15124 = vst [vmem:[%s16669_s29 + $0x290] sm:$0xff] %v14176_v6   ;;  %vm8428_vm6 = vcmp.ge.f32.partialorder %v7916_v11, 0.0  ;;  %v7919_v27 = vadd.f32 %v18109_v62, %v18247_v59  ;;  %v18426_v43 = vpop.f32.mrf.mxu0  ;;  %v18435_v0 = vpop.f32.mrf.mxu1 }
 0x25a   : > { %v8940_v61 = vmul.f32 0.1, %v7916_v11  ;;  %19107 = vst [vmem:[#allocation4_spill] sm:$0xff] %v18426_v43  ;;  %15252 = vst [vmem:[%s16669_s29 + $0x690] sm:$0xff] %v14816_v22   ;;  %v7661_v44 = vadd.f32 %v18109_v62, %v18249_v3  ;;  %v7917_v56 = vadd.f32 %v18109_v62, %v18251_v48  ;;  %v7666_v50 = vadd.f32 %v18109_v62, %v18255_v34 }
 0x25b   : > { %v9196_v49 = vsel %vm8172_vm5, %v7660_v18, %v8684_v57  ;;  %19108 = vst [vmem:[#allocation5_spill] sm:$0xff] %v18435_v0  ;;  %vm8175_vm7 = vcmp.ge.f32.partialorder %v7663_v9, 0.0  ;;  %v8687_v63 = vmul.f32 0.1, %v7663_v9  ;;  %vm8431_vm8 = vcmp.ge.f32.partialorder %v7919_v27, 0.0  ;;  %v18437_v59 = vpop.f32.mrf.mxu0  ;;  %v18439_v18 = vpop.f32.mrf.mxu1 }
 0x25c   : > { %v9452_v20 = vsel %vm8428_vm6, %v7916_v11, %v8940_v61  ;;  %19109 = vst [vmem:[#allocation6_spill] sm:$0xff] %v18437_v59  ;;  %v8943_v47 = vmul.f32 0.1, %v7919_v27  ;;  %vm8173_vm9 = vcmp.ge.f32.partialorder %v7661_v44, 0.0  ;;  %v8685_v8 = vmul.f32 0.1, %v7661_v44 }
 0x25d   : > { %vm8429_vm10 = vcmp.ge.f32.partialorder %v7917_v56, 0.0  ;;  %19110 = vst [vmem:[#allocation7_spill] sm:$0xff] %v18439_v18  ;;  %v9199_v3 = vsel %vm8175_vm7, %v7663_v9, %v8687_v63  ;;  %v8941_v48 = vmul.f32 0.1, %v7917_v56  ;;  %vm8178_vm0 = vcmp.ge.f32.partialorder %v7666_v50, 0.0  ;;  %v18441_v34 = vpop.f32.mrf.mxu0  ;;  %v18445_v61 = vpop.f32.mrf.mxu1 }
 0x25e   : > { %v8690_v6 = vmul.f32 0.1, %v7666_v50  ;;  %v14191_v58 = vpack.c.bf16 %v9199_v3, %v9198_v41  ;;  %v9455_v11 = vsel %vm8431_vm8, %v7919_v27, %v8943_v47  ;;  %v9197_v22 = vsel %vm8173_vm9, %v7661_v44, %v8685_v8 }
 0x25f   : > { %v7922_v57 = vadd.f32 %v18109_v62, %v18257_v5  ;;  %v14831_v59 = vpack.c.bf16 %v9455_v11, %v9454_v36  ;;  %v14186_v0 = vpack.c.bf16 %v9197_v22, %v9196_v49  ;;  %v9453_v18 = vsel %vm8429_vm10, %v7917_v56, %v8941_v48  ;;  %v18447_v63 = vpop.f32.mrf.mxu0  ;;  %v18452_v44 = vpop.f32.mrf.mxu1 }
 0x260   : > { %v9202_v9 = vsel %vm8178_vm0, %v7666_v50, %v8690_v6  ;;  %15127 = vst [vmem:[%s16669_s29 + $0x2a8] sm:$0xff] %v14191_v58   ;;  %v14826_v43 = vpack.c.bf16 %v9453_v18, %v9452_v20  ;;  %v7664_v27 = vadd.f32 %v18109_v62, %v18262_v37  ;;  %v7920_v5 = vadd.f32 %v18109_v62, %v18274_v39 }
 0x261   : > { %vm8434_vm11 = vcmp.ge.f32.partialorder %v7922_v57, 0.0  ;;  %v8946_v41 = vmul.f32 0.1, %v7922_v57  ;;  %15255 = vst [vmem:[%s16669_s29 + $0x6a8] sm:$0xff] %v14831_v59   ;;  %15126 = vst [vmem:[%s16669_s29 + $0x2a0] sm:$0xff] %v14186_v0   ;;  %v7667_v36 = vadd.f32 %v18109_v62, %v18279_v32  ;;  %v7923_v49 = vadd.f32 %v18109_v62, %v18281_v16  ;;  %v18464_v50 = vpop.f32.mrf.mxu0  ;;  %v18469_v59 = vpop.f32.mrf.mxu1 }
 0x262   : > { %v7665_v56 = vadd.f32 %v18109_v62, %v18283_v17  ;;  %15254 = vst [vmem:[%s16669_s29 + $0x6a0] sm:$0xff] %v14826_v43   ;;  %vm8176_vm12 = vcmp.ge.f32.partialorder %v7664_v27, 0.0  ;;  %v8688_v20 = vmul.f32 0.1, %v7664_v27  ;;  %v7921_v0 = vadd.f32 %v18109_v62, %v18285_v45 }
 0x263   : > { %v9458_v37 = vsel %vm8434_vm11, %v7922_v57, %v8946_v41  ;;  %vm8432_vm13 = vcmp.ge.f32.partialorder %v7920_v5, 0.0  ;;  %v8944_v39 = vmul.f32 0.1, %v7920_v5  ;;  %vm8179_vm14 = vcmp.ge.f32.partialorder %v7667_v36, 0.0  ;;  %v18471_v47 = vpop.f32.mrf.mxu0  ;;  %v18473_v8 = vpop.f32.mrf.mxu1 }
 0x264   : > { %v8691_v32 = vmul.f32 0.1, %v7667_v36  ;;  %v9200_v16 = vsel %vm8176_vm12, %v7664_v27, %v8688_v20  ;;  %vm8435_vm15 = vcmp.ge.f32.partialorder %v7923_v49, 0.0  ;;  %v8947_v17 = vmul.f32 0.1, %v7923_v49 }
 0x265   : > { %vm8177_vm1 = vcmp.ge.f32.partialorder %v7665_v56, 0.0  ;;  %v9456_v43 = vsel %vm8432_vm13, %v7920_v5, %v8944_v39  ;;  %v8689_v3 = vmul.f32 0.1, %v7665_v56  ;;  %vm8433_vm2 = vcmp.ge.f32.partialorder %v7921_v0, 0.0  ;;  %v18475_v45 = vpop.f32.mrf.mxu0  ;;  %v18479_v22 = vpop.f32.mrf.mxu1 }
 0x266   : > { %v9203_v18 = vsel %vm8179_vm14, %v7667_v36, %v8691_v32  ;;  %v9459_v6 = vsel %vm8435_vm15, %v7923_v49, %v8947_v17  ;;  %v8945_v58 = vmul.f32 0.1, %v7921_v0  ;;  %v7670_v11 = vadd.f32 %v18109_v62, %v18289_v52 }
 0x267   : > { %v14201_v48 = vpack.c.bf16 %v9203_v18, %v9202_v9  ;;  %v14841_v57 = vpack.c.bf16 %v9459_v6, %v9458_v37  ;;  %v9201_v41 = vsel %vm8177_vm1, %v7665_v56, %v8689_v3  ;;  %v7926_v27 = vadd.f32 %v18109_v62, %v18295_v2  ;;  %v18485_v36 = vpop.f32.mrf.mxu0  ;;  %v18488_v52 = vpop.f32.mrf.mxu1 }
 0x268   : > { %v7668_v5 = vadd.f32 %v18109_v62, %v18298_v35  ;;  %v14196_v9 = vpack.c.bf16 %v9201_v41, %v9200_v16  ;;  %v9457_v49 = vsel %vm8433_vm2, %v7921_v0, %v8945_v58  ;;  %vm8182_vm3 = vcmp.ge.f32.partialorder %v7670_v11, 0.0 }
 0x269   : > { %15129 = vst [vmem:[%s16669_s29 + $0x2b8] sm:$0xff] %v14201_v48   ;;  %v8694_v20 = vmul.f32 0.1, %v7670_v11  ;;  %15257 = vst [vmem:[%s16669_s29 + $0x6b8] sm:$0xff] %v14841_v57   ;;  %v14836_v37 = vpack.c.bf16 %v9457_v49, %v9456_v43  ;;  %vm8438_vm4 = vcmp.ge.f32.partialorder %v7926_v27, 0.0  ;;  %v18491_v39 = vpop.f32.mrf.mxu0  ;;  %v7924_v32 = vadd.f32 %v18109_v62, %v18301_v31  ;;  %v18498_v16 = vpop.f32.mrf.mxu1 }
 0x26a   : > { %v8950_v56 = vmul.f32 0.1, %v7926_v27  ;;  %vm8180_vm5 = vcmp.ge.f32.partialorder %v7668_v5, 0.0  ;;  %15128 = vst [vmem:[%s16669_s29 + $0x2b0] sm:$0xff] %v14196_v9   ;;  %v8692_v35 = vmul.f32 0.1, %v7668_v5  ;;  %v7671_v0 = vadd.f32 %v18109_v62, %v18308_v14 }
 0x26b   : > { %v9206_v2 = vsel %vm8182_vm3, %v7670_v11, %v8694_v20  ;;  %15256 = vst [vmem:[%s16669_s29 + $0x6b0] sm:$0xff] %v14836_v37   ;;  %v7927_v43 = vadd.f32 %v18109_v62, %v18317_v42  ;;  %v7669_v18 = vadd.f32 %v18109_v62, %v18319_v28  ;;  %v7925_v3 = vadd.f32 %v18109_v62, %v18321_v38  ;;  %v18507_v48 = vpop.f32.mrf.mxu0  ;;  %v18509_v14 = vpop.f32.mrf.mxu1  ;;  %v19112_v9 = vld [vmem:[#allocation3_spill] sm:$0xff] }
 0x26c   : > { %v9462_v17 = vsel %vm8438_vm4, %v7926_v27, %v8950_v56  ;;  %v9204_v6 = vsel %vm8180_vm5, %v7668_v5, %v8692_v35  ;;  %vm8436_vm6 = vcmp.ge.f32.partialorder %v7924_v32, 0.0  ;;  %v8948_v31 = vmul.f32 0.1, %v7924_v32  ;;  %v18518_v5 = vld [vmem:[%s19104_s2] ss:$0 sm:$0xff] }
 0x26d   : > { %vm8183_vm7 = vcmp.ge.f32.partialorder %v7671_v0, 0.0  ;;  %v8695_v58 = vmul.f32 0.1, %v7671_v0  ;;  %vm8439_vm8 = vcmp.ge.f32.partialorder %v7927_v43, 0.0  ;;  %v8951_v11 = vmul.f32 0.1, %v7927_v43  ;;  %v18511_v57 = vpop.f32.mrf.mxu0  ;;  %v18513_v27 = vpop.f32.mrf.mxu1 }
 0x26e   : > { %vm8181_vm9 = vcmp.ge.f32.partialorder %v7669_v18, 0.0  ;;  %v9460_v42 = vsel %vm8436_vm6, %v7924_v32, %v8948_v31  ;;  %v8693_v41 = vmul.f32 0.1, %v7669_v18  ;;  %vm8437_vm10 = vcmp.ge.f32.partialorder %v7925_v3, 0.0  ;;  %19111 = vst [vmem:[#allocation8_spill] sm:$0xff] %v18513_v27 }
 0x26f   : > { %v8949_v28 = vmul.f32 0.1, %v7925_v3  ;;  %v9207_v62 = vsel %vm8183_vm7, %v7671_v0, %v8695_v58  ;;  %v9463_v38 = vsel %vm8439_vm8, %v7927_v43, %v8951_v11  ;;  %v7674_v49 = vadd.f32 %v18518_v5, %v19112_v9  ;;  %v18524_v37 = vpop.f32.mrf.mxu0  ;;  %v18526_v43 = vpop.f32.mrf.mxu1 }
 0x270   : > { %v7930_v20 = vadd.f32 %v18518_v5, %v18329_v7  ;;  %v14211_v56 = vpack.c.bf16 %v9207_v62, %v9206_v2  ;;  %v14851_v35 = vpack.c.bf16 %v9463_v38, %v9462_v17  ;;  %v9205_v32 = vsel %vm8181_vm9, %v7669_v18, %v8693_v41 }
 0x271   : > { %v9461_v0 = vsel %vm8437_vm10, %v7925_v3, %v8949_v28  ;;  %v14206_v31 = vpack.c.bf16 %v9205_v32, %v9204_v6  ;;  %vm8186_vm0 = vcmp.ge.f32.partialorder %v7674_v49, 0.0  ;;  %v8698_v11 = vmul.f32 0.1, %v7674_v49  ;;  %v18528_v27 = vpop.f32.mrf.mxu0  ;;  %v18536_v18 = vpop.f32.mrf.mxu1 }
 0x272   : > { %v14846_v58 = vpack.c.bf16 %v9461_v0, %v9460_v42  ;;  %15131 = vst [vmem:[%s16669_s29 + $0x2c8] sm:$0xff] %v14211_v56   ;;  %15259 = vst [vmem:[%s16669_s29 + $0x6c8] sm:$0xff] %v14851_v35   ;;  %vm8442_vm11 = vcmp.ge.f32.partialorder %v7930_v20, 0.0  ;;  %v8954_v7 = vmul.f32 0.1, %v7930_v20  ;;  %v7672_v2 = vadd.f32 %v18518_v5, %v18331_v33 }
 0x273   : > { %v7928_v17 = vadd.f32 %v18518_v5, %v18333_v46  ;;  %15130 = vst [vmem:[%s16669_s29 + $0x2c0] sm:$0xff] %v14206_v31   ;;  %v9210_v3 = vsel %vm8186_vm0, %v7674_v49, %v8698_v11  ;;  %v7675_v6 = vadd.f32 %v18518_v5, %v18341_v24  ;;  %v7931_v42 = vadd.f32 %v18518_v5, %v18351_v4  ;;  %v18546_v28 = vpop.f32.mrf.mxu0  ;;  %v18548_v46 = vpop.f32.mrf.mxu1 }
 0x274   : > { %15258 = vst [vmem:[%s16669_s29 + $0x6c0] sm:$0xff] %v14846_v58   ;;  %v7673_v41 = vadd.f32 %v18518_v5, %v18353_v29  ;;  %v9466_v33 = vsel %vm8442_vm11, %v7930_v20, %v8954_v7  ;;  %vm8184_vm12 = vcmp.ge.f32.partialorder %v7672_v2, 0.0  ;;  %v8696_v62 = vmul.f32 0.1, %v7672_v2 }
 0x275   : > { %vm8440_vm13 = vcmp.ge.f32.partialorder %v7928_v17, 0.0  ;;  %v8952_v38 = vmul.f32 0.1, %v7928_v17  ;;  %vm8187_vm14 = vcmp.ge.f32.partialorder %v7675_v6, 0.0  ;;  %v8699_v9 = vmul.f32 0.1, %v7675_v6  ;;  %v18550_v49 = vpop.f32.mrf.mxu0  ;;  %v18552_v35 = vpop.f32.mrf.mxu1 }
 0x276   : > { %vm8443_vm15 = vcmp.ge.f32.partialorder %v7931_v42, 0.0  ;;  %v9208_v24 = vsel %vm8184_vm12, %v7672_v2, %v8696_v62  ;;  %v8955_v56 = vmul.f32 0.1, %v7931_v42  ;;  %vm8185_vm1 = vcmp.ge.f32.partialorder %v7673_v41, 0.0 }
 0x277   : > { %v8697_v4 = vmul.f32 0.1, %v7673_v41  ;;  %v9464_v29 = vsel %vm8440_vm13, %v7928_v17, %v8952_v38  ;;  %v9211_v20 = vsel %vm8187_vm14, %v7675_v6, %v8699_v9  ;;  %v7929_v32 = vadd.f32 %v18518_v5, %v18355_v15  ;;  %v18558_v31 = vpop.f32.mrf.mxu0  ;;  %v18562_v62 = vpop.f32.mrf.mxu1 }
 0x278   : > { %v7678_v0 = vadd.f32 %v18518_v5, %v18357_v23  ;;  %v14221_v58 = vpack.c.bf16 %v9211_v20, %v9210_v3  ;;  %v9467_v11 = vsel %vm8443_vm15, %v7931_v42, %v8955_v56  ;;  %v7934_v2 = vadd.f32 %v18518_v5, %v18363_v1 }
 0x279   : > { %v9209_v7 = vsel %vm8185_vm1, %v7673_v41, %v8697_v4  ;;  %v14861_v17 = vpack.c.bf16 %v9467_v11, %v9466_v33  ;;  %vm8441_vm2 = vcmp.ge.f32.partialorder %v7929_v32, 0.0  ;;  %v8953_v38 = vmul.f32 0.1, %v7929_v32  ;;  %v18564_v15 = vpop.f32.mrf.mxu0  ;;  %v18567_v9 = vpop.f32.mrf.mxu1 }
 0x27a   : > { %v14216_v6 = vpack.c.bf16 %v9209_v7, %v9208_v24  ;;  %15133 = vst [vmem:[%s16669_s29 + $0x2d8] sm:$0xff] %v14221_v58   ;;  %vm8190_vm3 = vcmp.ge.f32.partialorder %v7678_v0, 0.0  ;;  %v8702_v23 = vmul.f32 0.1, %v7678_v0  ;;  %vm8446_vm4 = vcmp.ge.f32.partialorder %v7934_v2, 0.0 }
 0x27b   : > { %v8958_v3 = vmul.f32 0.1, %v7934_v2  ;;  %15261 = vst [vmem:[%s16669_s29 + $0x6d8] sm:$0xff] %v14861_v17   ;;  %v9465_v42 = vsel %vm8441_vm2, %v7929_v32, %v8953_v38  ;;  %v7676_v1 = vadd.f32 %v18518_v5, %v18367_v55  ;;  %v7932_v41 = vadd.f32 %v18518_v5, %v18369_v30  ;;  %v18577_v24 = vpop.f32.mrf.mxu0  ;;  %v18581_v11 = vpop.f32.mrf.mxu1 }
 0x27c   : > { %15132 = vst [vmem:[%s16669_s29 + $0x2d0] sm:$0xff] %v14216_v6   ;;  %v7679_v33 = vadd.f32 %v18518_v5, %v18372_v51  ;;  %v14856_v56 = vpack.c.bf16 %v9465_v42, %v9464_v29  ;;  %v9214_v4 = vsel %vm8190_vm3, %v7678_v0, %v8702_v23  ;;  %v7935_v58 = vadd.f32 %v18518_v5, %v18382_v25 }
 0x27d   : > { %v9470_v20 = vsel %vm8446_vm4, %v7934_v2, %v8958_v3  ;;  %vm8188_vm5 = vcmp.ge.f32.partialorder %v7676_v1, 0.0  ;;  %v8700_v32 = vmul.f32 0.1, %v7676_v1  ;;  %vm8444_vm6 = vcmp.ge.f32.partialorder %v7932_v41, 0.0  ;;  %v18583_v7 = vpop.f32.mrf.mxu0  ;;  %v18586_v17 = vpop.f32.mrf.mxu1 }
 0x27e   : > { %v8956_v55 = vmul.f32 0.1, %v7932_v41  ;;  %15260 = vst [vmem:[%s16669_s29 + $0x6d0] sm:$0xff] %v14856_v56   ;;  %vm8191_vm7 = vcmp.ge.f32.partialorder %v7679_v33, 0.0  ;;  %v8703_v30 = vmul.f32 0.1, %v7679_v33  ;;  %v7677_v25 = vadd.f32 %v18518_v5, %v18386_v53 }
 0x27f   : > { %vm8447_vm8 = vcmp.ge.f32.partialorder %v7935_v58, 0.0  ;;  %v8959_v51 = vmul.f32 0.1, %v7935_v58  ;;  %v9212_v29 = vsel %vm8188_vm5, %v7676_v1, %v8700_v32  ;;  %v7933_v2 = vadd.f32 %v18518_v5, %v18388_v13  ;;  %v18592_v6 = vpop.f32.mrf.mxu0  ;;  %v18598_v1 = vpop.f32.mrf.mxu1 }
 0x280   : > { %v9468_v0 = vsel %vm8444_vm6, %v7932_v41, %v8956_v55  ;;  %v9215_v38 = vsel %vm8191_vm7, %v7679_v33, %v8703_v30  ;;  %v7682_v3 = vadd.f32 %v18518_v5, %v18391_v10  ;;  %v7938_v42 = vadd.f32 %v18518_v5, %v18397_v12 }
 0x281   : > { %v9471_v23 = vsel %vm8447_vm8, %v7935_v58, %v8959_v51  ;;  %v14231_v41 = vpack.c.bf16 %v9215_v38, %v9214_v4  ;;  %vm8189_vm9 = vcmp.ge.f32.partialorder %v7677_v25, 0.0  ;;  %v8701_v53 = vmul.f32 0.1, %v7677_v25  ;;  %v18600_v32 = vpop.f32.mrf.mxu0  ;;  %v18602_v55 = vpop.f32.mrf.mxu1 }
 0x282   : > { %v14871_v56 = vpack.c.bf16 %v9471_v23, %v9470_v20  ;;  %vm8445_vm10 = vcmp.ge.f32.partialorder %v7933_v2, 0.0  ;;  %v8957_v13 = vmul.f32 0.1, %v7933_v2  ;;  %vm8194_vm0 = vcmp.ge.f32.partialorder %v7682_v3, 0.0 }
 0x283   : > { %v8706_v33 = vmul.f32 0.1, %v7682_v3  ;;  %15135 = vst [vmem:[%s16669_s29 + $0x2e8] sm:$0xff] %v14231_v41   ;;  %v9213_v10 = vsel %vm8189_vm9, %v7677_v25, %v8701_v53  ;;  %vm8450_vm11 = vcmp.ge.f32.partialorder %v7938_v42, 0.0  ;;  %v8962_v12 = vmul.f32 0.1, %v7938_v42  ;;  %v18608_v20 = vpop.f32.mrf.mxu0  ;;  %v18612_v23 = vpop.f32.mrf.mxu1 }
 0x284   : > { %15263 = vst [vmem:[%s16669_s29 + $0x6e8] sm:$0xff] %v14871_v56   ;;  %v7680_v4 = vadd.f32 %v18518_v5, %v18403_v26  ;;  %19113 = vst [vmem:[#allocation3_spill] sm:$0xff] %v18608_v20  ;;  %v14226_v58 = vpack.c.bf16 %v9213_v10, %v9212_v29  ;;  %v9469_v30 = vsel %vm8445_vm10, %v7933_v2, %v8957_v13  ;;  %v19117_v13 = vld [vmem:[#allocation4_spill] sm:$0xff] }
 0x285   : > { %v9218_v51 = vsel %vm8194_vm0, %v7682_v3, %v8706_v33  ;;  %v7936_v38 = vadd.f32 %v18518_v5, %v18405_v40  ;;  %19114 = vst [vmem:[#allocation9_spill] sm:$0xff] %v18612_v23  ;;  %v14866_v41 = vpack.c.bf16 %v9469_v30, %v9468_v0  ;;  %v9474_v56 = vsel %vm8450_vm11, %v7938_v42, %v8962_v12  ;;  %v18614_v53 = vpop.f32.mrf.mxu0  ;;  %v18621_v3 = vpop.f32.mrf.mxu1 }
 0x286   : > { %vm8192_vm12 = vcmp.ge.f32.partialorder %v7680_v4, 0.0  ;;  %v8704_v25 = vmul.f32 0.1, %v7680_v4  ;;  %19115 = vst [vmem:[#allocation10_spill] sm:$0xff] %v18614_v53  ;;  %15134 = vst [vmem:[%s16669_s29 + $0x2e0] sm:$0xff] %v14226_v58   ;;  %v7683_v29 = vadd.f32 %v18518_v5, %v18407_v19  ;;  %v7939_v2 = vadd.f32 %v18518_v5, %v18413_v60 }
 0x287   : > { %vm8448_vm13 = vcmp.ge.f32.partialorder %v7936_v38, 0.0  ;;  %v8960_v26 = vmul.f32 0.1, %v7936_v38  ;;  %19116 = vst [vmem:[#allocation11_spill] sm:$0xff] %v18621_v3  ;;  %15262 = vst [vmem:[%s16669_s29 + $0x6e0] sm:$0xff] %v14866_v41   ;;  %v7681_v0 = vadd.f32 %v18518_v5, %v18417_v21  ;;  %v7937_v42 = vadd.f32 %v18518_v5, %v18419_v54  ;;  %v18630_v10 = vpop.f32.mrf.mxu0  ;;  %v18632_v60 = vpop.f32.mrf.mxu1 }
 0x288   : > { %v9216_v40 = vsel %vm8192_vm12, %v7680_v4, %v8704_v25  ;;  %v7686_v33 = vadd.f32 %v18518_v5, %v19117_v13  ;;  %19118 = vst [vmem:[#allocation4_spill] sm:$0xff] %v18630_v10  ;;  %vm8195_vm14 = vcmp.ge.f32.partialorder %v7683_v29, 0.0  ;;  %v8707_v19 = vmul.f32 0.1, %v7683_v29  ;;  %19119 = vst [vmem:[#allocation12_spill] sm:$0xff] %v18632_v60  ;;  %v19121_v10 = vld [vmem:[#allocation5_spill] sm:$0xff] }
 0x289   : > { %v9472_v12 = vsel %vm8448_vm13, %v7936_v38, %v8960_v26  ;;  %vm8451_vm15 = vcmp.ge.f32.partialorder %v7939_v2, 0.0  ;;  %v8963_v58 = vmul.f32 0.1, %v7939_v2  ;;  %vm8193_vm1 = vcmp.ge.f32.partialorder %v7681_v0, 0.0  ;;  %v18634_v30 = vpop.f32.mrf.mxu0  ;;  %v18636_v25 = vpop.f32.mrf.mxu1 }
 0x28a   : > { %v8705_v4 = vmul.f32 0.1, %v7681_v0  ;;  %vm8449_vm2 = vcmp.ge.f32.partialorder %v7937_v42, 0.0  ;;  %19120 = vst [vmem:[#allocation13_spill] sm:$0xff] %v18634_v30  ;;  %v9219_v21 = vsel %vm8195_vm14, %v7683_v29, %v8707_v19  ;;  %v8961_v54 = vmul.f32 0.1, %v7937_v42 }
 0x28b   : > { %vm8198_vm3 = vcmp.ge.f32.partialorder %v7686_v33, 0.0  ;;  %v8710_v41 = vmul.f32 0.1, %v7686_v33  ;;  %v14241_v13 = vpack.c.bf16 %v9219_v21, %v9218_v51  ;;  %v9475_v38 = vsel %vm8451_vm15, %v7939_v2, %v8963_v58  ;;  %v18640_v3 = vpop.f32.mrf.mxu0  ;;  %v18642_v19 = vpop.f32.mrf.mxu1  ;;  %v19122_v21 = vld [vmem:[#allocation6_spill] sm:$0xff] }
 0x28c   : > { %v9217_v26 = vsel %vm8193_vm1, %v7681_v0, %v8705_v4  ;;  %v7942_v60 = vadd.f32 %v18518_v5, %v19121_v10  ;;  %v14881_v53 = vpack.c.bf16 %v9475_v38, %v9474_v56  ;;  %v9473_v30 = vsel %vm8449_vm2, %v7937_v42, %v8961_v54  ;;  %v19123_v10 = vld [vmem:[#allocation7_spill] sm:$0xff] }
 0x28d   : > { %v14236_v23 = vpack.c.bf16 %v9217_v26, %v9216_v40  ;;  %v9222_v29 = vsel %vm8198_vm3, %v7686_v33, %v8710_v41  ;;  %15137 = vst [vmem:[%s16669_s29 + $0x2f8] sm:$0xff] %v14241_v13   ;;  %v14876_v20 = vpack.c.bf16 %v9473_v30, %v9472_v12  ;;  %v7684_v2 = vadd.f32 %v18518_v5, %v19122_v21  ;;  %v18647_v0 = vpop.f32.mrf.mxu0  ;;  %v18659_v12 = vpop.f32.mrf.mxu1 }
 0x28e   : > { %vm8454_vm4 = vcmp.ge.f32.partialorder %v7942_v60, 0.0  ;;  %v8966_v51 = vmul.f32 0.1, %v7942_v60  ;;  %15265 = vst [vmem:[%s16669_s29 + $0x6f8] sm:$0xff] %v14881_v53   ;;  %v7940_v56 = vadd.f32 %v18518_v5, %v19123_v10  ;;  %v7687_v40 = vadd.f32 %v18518_v5, %v18441_v34 }
 0x28f   : > { %15136 = vst [vmem:[%s16669_s29 + $0x2f0] sm:$0xff] %v14236_v23   ;;  %v7943_v42 = vadd.f32 %v18518_v5, %v18445_v61  ;;  %v7685_v33 = vadd.f32 %v18518_v5, %v18447_v63  ;;  %15264 = vst [vmem:[%s16669_s29 + $0x6f0] sm:$0xff] %v14876_v20   ;;  %vm8196_vm5 = vcmp.ge.f32.partialorder %v7684_v2, 0.0  ;;  %v8708_v4 = vmul.f32 0.1, %v7684_v2  ;;  %v18664_v53 = vpop.f32.mrf.mxu0  ;;  %v18666_v54 = vpop.f32.mrf.mxu1 }
 0x290   : > { %v9478_v58 = vsel %vm8454_vm4, %v7942_v60, %v8966_v51  ;;  %v7941_v23 = vadd.f32 %v18518_v5, %v18452_v44  ;;  %vm8452_vm6 = vcmp.ge.f32.partialorder %v7940_v56, 0.0  ;;  %v8964_v30 = vmul.f32 0.1, %v7940_v56 }
 0x291   : > { %vm8199_vm7 = vcmp.ge.f32.partialorder %v7687_v40, 0.0  ;;  %v8711_v34 = vmul.f32 0.1, %v7687_v40  ;;  %v9220_v61 = vsel %vm8196_vm5, %v7684_v2, %v8708_v4  ;;  %vm8455_vm8 = vcmp.ge.f32.partialorder %v7943_v42, 0.0  ;;  %v18668_v41 = vpop.f32.mrf.mxu0  ;;  %v18670_v44 = vpop.f32.mrf.mxu1 }
 0x292   : > { %v8967_v63 = vmul.f32 0.1, %v7943_v42  ;;  %vm8197_vm9 = vcmp.ge.f32.partialorder %v7685_v33, 0.0  ;;  %v9476_v20 = vsel %vm8452_vm6, %v7940_v56, %v8964_v30  ;;  %v8709_v13 = vmul.f32 0.1, %v7685_v33 }
 0x293   : > { %v9223_v60 = vsel %vm8199_vm7, %v7687_v40, %v8711_v34  ;;  %vm8453_vm10 = vcmp.ge.f32.partialorder %v7941_v23, 0.0  ;;  %v8965_v51 = vmul.f32 0.1, %v7941_v23  ;;  %v7690_v21 = vadd.f32 %v18518_v5, %v18464_v50  ;;  %v18674_v2 = vpop.f32.mrf.mxu0  ;;  %v18680_v30 = vpop.f32.mrf.mxu1 }
 0x294   : > { %v14251_v38 = vpack.c.bf16 %v9223_v60, %v9222_v29  ;;  %v9479_v26 = vsel %vm8455_vm8, %v7943_v42, %v8967_v63  ;;  %v9221_v4 = vsel %vm8197_vm9, %v7685_v33, %v8709_v13  ;;  %v7946_v56 = vadd.f32 %v18518_v5, %v18469_v59 }
 0x295   : > { %v14891_v10 = vpack.c.bf16 %v9479_v26, %v9478_v58  ;;  %v7688_v40 = vadd.f32 %v18518_v5, %v18471_v47  ;;  %v14246_v29 = vpack.c.bf16 %v9221_v4, %v9220_v61  ;;  %v9477_v42 = vsel %vm8453_vm10, %v7941_v23, %v8965_v51  ;;  %v18683_v50 = vpop.f32.mrf.mxu0  ;;  %v18686_v63 = vpop.f32.mrf.mxu1 }
 0x296   : > { %15139 = vst [vmem:[%s16669_s29 + $0x308] sm:$0xff] %v14251_v38   ;;  %vm8202_vm0 = vcmp.ge.f32.partialorder %v7690_v21, 0.0  ;;  %v8714_v34 = vmul.f32 0.1, %v7690_v21  ;;  %v14886_v58 = vpack.c.bf16 %v9477_v42, %v9476_v20  ;;  %vm8458_vm11 = vcmp.ge.f32.partialorder %v7946_v56, 0.0 }
 0x297   : > { %15267 = vst [vmem:[%s16669_s29 + $0x708] sm:$0xff] %v14891_v10   ;;  %v8970_v33 = vmul.f32 0.1, %v7946_v56  ;;  %vm8200_vm12 = vcmp.ge.f32.partialorder %v7688_v40, 0.0  ;;  %15138 = vst [vmem:[%s16669_s29 + $0x300] sm:$0xff] %v14246_v29   ;;  %v7944_v60 = vadd.f32 %v18518_v5, %v18473_v8  ;;  %v7691_v23 = vadd.f32 %v18518_v5, %v18475_v45  ;;  %v18693_v61 = vpop.f32.mrf.mxu0  ;;  %v18702_v51 = vpop.f32.mrf.mxu1 }
 0x298   : > { %v9226_v59 = vsel %vm8202_vm0, %v7690_v21, %v8714_v34  ;;  %v8712_v47 = vmul.f32 0.1, %v7688_v40  ;;  %15266 = vst [vmem:[%s16669_s29 + $0x700] sm:$0xff] %v14886_v58   ;;  %v7947_v20 = vadd.f32 %v18518_v5, %v18479_v22  ;;  %v7689_v38 = vadd.f32 %v18518_v5, %v18485_v36  ;;  %19124 = vst [vmem:[#allocation5_spill] sm:$0xff] %v18702_v51 }
 0x299   : > { %v9482_v13 = vsel %vm8458_vm11, %v7946_v56, %v8970_v33  ;;  %v7945_v26 = vadd.f32 %v18518_v5, %v18488_v52  ;;  %vm8456_vm13 = vcmp.ge.f32.partialorder %v7944_v60, 0.0  ;;  %v8968_v8 = vmul.f32 0.1, %v7944_v60  ;;  %v18704_v45 = vpop.f32.mrf.mxu0  ;;  %v18706_v56 = vpop.f32.mrf.mxu1 }
 0x29a   : > { %v9224_v21 = vsel %vm8200_vm12, %v7688_v40, %v8712_v47  ;;  %vm8203_vm14 = vcmp.ge.f32.partialorder %v7691_v23, 0.0  ;;  %19125 = vst [vmem:[#allocation6_spill] sm:$0xff] %v18704_v45  ;;  %v8715_v10 = vmul.f32 0.1, %v7691_v23  ;;  %vm8459_vm15 = vcmp.ge.f32.partialorder %v7947_v20, 0.0  ;;  %19126 = vst [vmem:[#allocation7_spill] sm:$0xff] %v18706_v56 }
 0x29b   : > { %v8971_v4 = vmul.f32 0.1, %v7947_v20  ;;  %vm8201_vm1 = vcmp.ge.f32.partialorder %v7689_v38, 0.0  ;;  %v9480_v22 = vsel %vm8456_vm13, %v7944_v60, %v8968_v8  ;;  %v8713_v29 = vmul.f32 0.1, %v7689_v38  ;;  %v18708_v52 = vpop.f32.mrf.mxu0  ;;  %v18714_v33 = vpop.f32.mrf.mxu1 }
 0x29c   : > { %vm8457_vm2 = vcmp.ge.f32.partialorder %v7945_v26, 0.0  ;;  %v8969_v36 = vmul.f32 0.1, %v7945_v26  ;;  %19127 = vst [vmem:[#allocation14_spill] sm:$0xff] %v18708_v52  ;;  %v9227_v40 = vsel %vm8203_vm14, %v7691_v23, %v8715_v10  ;;  %v7694_v34 = vadd.f32 %v18518_v5, %v18491_v39 }
 0x29d   : > { %v9483_v42 = vsel %vm8459_vm15, %v7947_v20, %v8971_v4  ;;  %v7950_v58 = vadd.f32 %v18518_v5, %v18498_v16  ;;  %v14261_v47 = vpack.c.bf16 %v9227_v40, %v9226_v59  ;;  %v9225_v8 = vsel %vm8201_vm1, %v7689_v38, %v8713_v29  ;;  %v18716_v23 = vpop.f32.mrf.mxu0 }
 0x29e   : > { %v14901_v60 = vpack.c.bf16 %v9483_v42, %v9482_v13  ;;  %v9481_v56 = vsel %vm8457_vm2, %v7945_v26, %v8969_v36  ;;  %v14256_v45 = vpack.c.bf16 %v9225_v8, %v9224_v21  ;;  %vm8206_vm3 = vcmp.ge.f32.partialorder %v7694_v34, 0.0  ;;  %v18724_v13 = vpop.f32.mrf.mxu1  ;;  %v19128_v26 = vld [vmem:[#allocation8_spill] sm:$0xff] }
 0x29f   : > { %v14896_v51 = vpack.c.bf16 %v9481_v56, %v9480_v22  ;;  %v8718_v52 = vmul.f32 0.1, %v7694_v34  ;;  %15141 = vst [vmem:[%s16669_s29 + $0x318] sm:$0xff] %v14261_v47   ;;  %vm8462_vm4 = vcmp.ge.f32.partialorder %v7950_v58, 0.0  ;;  %v8974_v39 = vmul.f32 0.1, %v7950_v58 }
 0x2a0   : > { %15269 = vst [vmem:[%s16669_s29 + $0x718] sm:$0xff] %v14901_v60   ;;  %v7692_v16 = vadd.f32 %v18518_v5, %v18507_v48  ;;  %v7948_v59 = vadd.f32 %v18518_v5, %v18509_v14  ;;  %15140 = vst [vmem:[%s16669_s29 + $0x310] sm:$0xff] %v14256_v45   ;;  %v7695_v38 = vadd.f32 %v18518_v5, %v18511_v57  ;;  %v18734_v45 = vpop.f32.mrf.mxu0  ;;  %v18736_v29 = vpop.f32.mrf.mxu1 }
 0x2a1   : > { %15268 = vst [vmem:[%s16669_s29 + $0x710] sm:$0xff] %v14896_v51   ;;  %v9230_v20 = vsel %vm8206_vm3, %v7694_v34, %v8718_v52  ;;  %v7951_v21 = vadd.f32 %v18518_v5, %v19128_v26  ;;  %v7693_v10 = vadd.f32 %v18518_v5, %v18524_v37  ;;  %v9486_v4 = vsel %vm8462_vm4, %v7950_v58, %v8974_v39 }
 0x2a2   : > { %vm8204_vm5 = vcmp.ge.f32.partialorder %v7692_v16, 0.0  ;;  %v8716_v48 = vmul.f32 0.1, %v7692_v16  ;;  %vm8460_vm6 = vcmp.ge.f32.partialorder %v7948_v59, 0.0  ;;  %v8972_v56 = vmul.f32 0.1, %v7948_v59 }
 0x2a3   : > { %vm8207_vm7 = vcmp.ge.f32.partialorder %v7695_v38, 0.0  ;;  %v8719_v14 = vmul.f32 0.1, %v7695_v38  ;;  %vm8463_vm8 = vcmp.ge.f32.partialorder %v7951_v21, 0.0  ;;  %v8975_v22 = vmul.f32 0.1, %v7951_v21 }
 0x2a4   : > { %v9228_v51 = vsel %vm8204_vm5, %v7692_v16, %v8716_v48  ;;  %vm8205_vm9 = vcmp.ge.f32.partialorder %v7693_v10, 0.0  ;;  %v8717_v57 = vmul.f32 0.1, %v7693_v10  ;;  %v9484_v36 = vsel %vm8460_vm6, %v7948_v59, %v8972_v56  ;;  %v18744_v16 = vpop.f32.mrf.mxu0 }
 0x2a5   : > { %v9231_v52 = vsel %vm8207_vm7, %v7695_v38, %v8719_v14  ;;  %v7949_v37 = vadd.f32 %v18518_v5, %v18526_v43  ;;  %v7698_v40 = vadd.f32 %v18518_v5, %v18528_v27  ;;  %v9487_v34 = vsel %vm8463_vm8, %v7951_v21, %v8975_v22  ;;  %v18747_v27 = vpop.f32.mrf.mxu1 }
 0x2a6   : > { %v14271_v42 = vpack.c.bf16 %v9231_v52, %v9230_v20  ;;  %v9229_v58 = vsel %vm8205_vm9, %v7693_v10, %v8717_v57  ;;  %v7954_v47 = vadd.f32 %v18518_v5, %v18536_v18  ;;  %v14911_v60 = vpack.c.bf16 %v9487_v34, %v9486_v4 }
 0x2a7   : > { %v14266_v8 = vpack.c.bf16 %v9229_v58, %v9228_v51  ;;  %vm8461_vm10 = vcmp.ge.f32.partialorder %v7949_v37, 0.0  ;;  %v8973_v39 = vmul.f32 0.1, %v7949_v37  ;;  %vm8210_vm0 = vcmp.ge.f32.partialorder %v7698_v40, 0.0  ;;  %v18759_v51 = vpop.f32.mrf.mxu0  ;;  %v18762_v22 = vpop.f32.mrf.mxu1 }
 0x2a8   : > { %15143 = vst [vmem:[%s16669_s29 + $0x328] sm:$0xff] %v14271_v42   ;;  %v8722_v43 = vmul.f32 0.1, %v7698_v40  ;;  %vm8466_vm11 = vcmp.ge.f32.partialorder %v7954_v47, 0.0  ;;  %v8978_v59 = vmul.f32 0.1, %v7954_v47  ;;  %v7696_v18 = vadd.f32 %v18518_v5, %v18546_v28 }
 0x2a9   : > { %15271 = vst [vmem:[%s16669_s29 + $0x728] sm:$0xff] %v14911_v60   ;;  %15142 = vst [vmem:[%s16669_s29 + $0x320] sm:$0xff] %v14266_v8   ;;  %v9485_v20 = vsel %vm8461_vm10, %v7949_v37, %v8973_v39  ;;  %v7952_v38 = vadd.f32 %v18518_v5, %v18548_v46  ;;  %v7699_v26 = vadd.f32 %v18518_v5, %v18550_v49  ;;  %v18772_v60 = vpop.f32.mrf.mxu0 }
 0x2aa   : > { %v14906_v21 = vpack.c.bf16 %v9485_v20, %v9484_v36  ;;  %v9234_v10 = vsel %vm8210_vm0, %v7698_v40, %v8722_v43  ;;  %v9490_v4 = vsel %vm8466_vm11, %v7954_v47, %v8978_v59  ;;  %v7955_v48 = vadd.f32 %v18518_v5, %v18552_v35 }
 0x2ab   : > { %vm8208_vm12 = vcmp.ge.f32.partialorder %v7696_v18, 0.0  ;;  %v8720_v56 = vmul.f32 0.1, %v7696_v18  ;;  %vm8464_vm13 = vcmp.ge.f32.partialorder %v7952_v38, 0.0  ;;  %v8976_v14 = vmul.f32 0.1, %v7952_v38 }
 0x2ac   : > { %15270 = vst [vmem:[%s16669_s29 + $0x720] sm:$0xff] %v14906_v21   ;;  %vm8211_vm14 = vcmp.ge.f32.partialorder %v7699_v26, 0.0  ;;  %v8723_v28 = vmul.f32 0.1, %v7699_v26  ;;  %vm8467_vm15 = vcmp.ge.f32.partialorder %v7955_v48, 0.0  ;;  %v7697_v36 = vadd.f32 %v18518_v5, %v18558_v31 }
 0x2ad   : > { %v8979_v46 = vmul.f32 0.1, %v7955_v48  ;;  %v9232_v49 = vsel %vm8208_vm12, %v7696_v18, %v8720_v56  ;;  %v9488_v57 = vsel %vm8464_vm13, %v7952_v38, %v8976_v14  ;;  %v7953_v35 = vadd.f32 %v18518_v5, %v18562_v62  ;;  %v18774_v62 = vpop.f32.mrf.mxu1 }
 0x2ae   : > { %v9235_v52 = vsel %vm8211_vm14, %v7699_v26, %v8723_v28  ;;  %v7702_v40 = vadd.f32 %v18518_v5, %v18564_v15  ;;  %v7958_v42 = vadd.f32 %v18518_v5, %v18567_v9  ;;  %vm8209_vm1 = vcmp.ge.f32.partialorder %v7697_v36, 0.0 }
 0x2af   : > { %v9491_v37 = vsel %vm8467_vm15, %v7955_v48, %v8979_v46  ;;  %v14281_v34 = vpack.c.bf16 %v9235_v52, %v9234_v10  ;;  %v8721_v47 = vmul.f32 0.1, %v7697_v36  ;;  %vm8465_vm2 = vcmp.ge.f32.partialorder %v7953_v35, 0.0  ;;  %v18782_v10 = vpop.f32.mrf.mxu0  ;;  %v18789_v56 = vpop.f32.mrf.mxu1 }
 0x2b0   : > { %v14921_v58 = vpack.c.bf16 %v9491_v37, %v9490_v4  ;;  %v8977_v31 = vmul.f32 0.1, %v7953_v35  ;;  %vm8214_vm3 = vcmp.ge.f32.partialorder %v7702_v40, 0.0  ;;  %v8726_v8 = vmul.f32 0.1, %v7702_v40 }
 0x2b1   : > { %15145 = vst [vmem:[%s16669_s29 + $0x338] sm:$0xff] %v14281_v34   ;;  %v9233_v39 = vsel %vm8209_vm1, %v7697_v36, %v8721_v47  ;;  %vm8470_vm4 = vcmp.ge.f32.partialorder %v7958_v42, 0.0  ;;  %v8982_v15 = vmul.f32 0.1, %v7958_v42  ;;  %v7700_v9 = vadd.f32 %v18518_v5, %v18577_v24  ;;  %v18798_v36 = vpop.f32.mrf.mxu0 }
 0x2b2   : > { %15273 = vst [vmem:[%s16669_s29 + $0x738] sm:$0xff] %v14921_v58   ;;  %v14276_v43 = vpack.c.bf16 %v9233_v39, %v9232_v49  ;;  %v9489_v59 = vsel %vm8465_vm2, %v7953_v35, %v8977_v31  ;;  %v9238_v20 = vsel %vm8214_vm3, %v7702_v40, %v8726_v8  ;;  %v7956_v18 = vadd.f32 %v18518_v5, %v18581_v11 }
 0x2b3   : > { %v14916_v38 = vpack.c.bf16 %v9489_v59, %v9488_v57  ;;  %v9494_v26 = vsel %vm8470_vm4, %v7958_v42, %v8982_v15  ;;  %vm8212_vm5 = vcmp.ge.f32.partialorder %v7700_v9, 0.0  ;;  %v8724_v21 = vmul.f32 0.1, %v7700_v9  ;;  %v19129_v15 = vld [vmem:[#allocation3_spill] sm:$0xff]  ;;  %v19130_v59 = vld [vmem:[#allocation9_spill] sm:$0xff] }
 0x2b4   : > { %15144 = vst [vmem:[%s16669_s29 + $0x330] sm:$0xff] %v14276_v43   ;;  %vm8468_vm6 = vcmp.ge.f32.partialorder %v7956_v18, 0.0  ;;  %v8980_v4 = vmul.f32 0.1, %v7956_v18  ;;  %v7703_v48 = vadd.f32 %v18518_v5, %v18583_v7  ;;  %v7959_v24 = vadd.f32 %v18518_v5, %v18586_v17  ;;  %v18807_v43 = vpop.f32.mrf.mxu0 }
 0x2b5   : > { %15272 = vst [vmem:[%s16669_s29 + $0x730] sm:$0xff] %v14916_v38   ;;  %v9236_v14 = vsel %vm8212_vm5, %v7700_v9, %v8724_v21  ;;  %v7701_v11 = vadd.f32 %v18518_v5, %v18592_v6  ;;  %v7957_v28 = vadd.f32 %v18518_v5, %v18598_v1  ;;  %v7706_v46 = vadd.f32 %v18518_v5, %v18600_v32  ;;  %v18800_v1 = vpop.f32.mrf.mxu1  ;;  %v19132_v38 = vld [vmem:[#allocation11_spill] sm:$0xff]  ;;  %v19133_v21 = vld [vmem:[#allocation4_spill] sm:$0xff] }
 0x2b6   : > { %v9492_v49 = vsel %vm8468_vm6, %v7956_v18, %v8980_v4  ;;  %vm8215_vm7 = vcmp.ge.f32.partialorder %v7703_v48, 0.0  ;;  %v8727_v57 = vmul.f32 0.1, %v7703_v48  ;;  %vm8471_vm8 = vcmp.ge.f32.partialorder %v7959_v24, 0.0 }
 0x2b7   : > { %v8983_v7 = vmul.f32 0.1, %v7959_v24  ;;  %vm8213_vm9 = vcmp.ge.f32.partialorder %v7701_v11, 0.0  ;;  %v8725_v17 = vmul.f32 0.1, %v7701_v11  ;;  %vm8469_vm10 = vcmp.ge.f32.partialorder %v7957_v28, 0.0 }
 0x2b8   : > { %v9239_v35 = vsel %vm8215_vm7, %v7703_v48, %v8727_v57  ;;  %v8981_v52 = vmul.f32 0.1, %v7957_v28  ;;  %vm8218_vm0 = vcmp.ge.f32.partialorder %v7706_v46, 0.0  ;;  %v8730_v6 = vmul.f32 0.1, %v7706_v46  ;;  %v18819_v48 = vpop.f32.mrf.mxu1 }
 0x2b9   : > { %v14291_v32 = vpack.c.bf16 %v9239_v35, %v9238_v20  ;;  %v9495_v37 = vsel %vm8471_vm8, %v7959_v24, %v8983_v7  ;;  %v9237_v40 = vsel %vm8213_vm9, %v7701_v11, %v8725_v17  ;;  %v7962_v42 = vadd.f32 %v18518_v5, %v18602_v55  ;;  %v19131_v55 = vld [vmem:[#allocation10_spill] sm:$0xff]  ;;  %v19134_v11 = vld [vmem:[#allocation12_spill] sm:$0xff]  ;;  %v18824_v17 = vpop.f32.mrf.mxu0 }
 0x2ba   : > { %v14931_v34 = vpack.c.bf16 %v9495_v37, %v9494_v26  ;;  %v14286_v58 = vpack.c.bf16 %v9237_v40, %v9236_v14  ;;  %v9493_v47 = vsel %vm8469_vm10, %v7957_v28, %v8981_v52  ;;  %v9242_v31 = vsel %vm8218_vm0, %v7706_v46, %v8730_v6 }
 0x2bb   : > { %15147 = vst [vmem:[%s16669_s29 + $0x348] sm:$0xff] %v14291_v32   ;;  %v14926_v8 = vpack.c.bf16 %v9493_v47, %v9492_v49  ;;  %vm8474_vm11 = vcmp.ge.f32.partialorder %v7962_v42, 0.0  ;;  %v8986_v39 = vmul.f32 0.1, %v7962_v42  ;;  %v7704_v9 = vadd.f32 %v18518_v5, %v19129_v15  ;;  %v18826_v32 = vpop.f32.mrf.mxu1 }
 0x2bc   : > { %15275 = vst [vmem:[%s16669_s29 + $0x748] sm:$0xff] %v14931_v34   ;;  %15146 = vst [vmem:[%s16669_s29 + $0x340] sm:$0xff] %v14286_v58   ;;  %v7960_v20 = vadd.f32 %v18518_v5, %v19130_v59  ;;  %v7707_v18 = vadd.f32 %v18518_v5, %v19131_v55  ;;  %v7963_v26 = vadd.f32 %v18518_v5, %v19132_v38  ;;  %v19135_v34 = vld [vmem:[#allocation13_spill] sm:$0xff] }
 0x2bd   : > { %v7705_v4 = vadd.f32 %v18518_v5, %v19133_v21  ;;  %15274 = vst [vmem:[%s16669_s29 + $0x740] sm:$0xff] %v14926_v8   ;;  %v9498_v24 = vsel %vm8474_vm11, %v7962_v42, %v8986_v39  ;;  %vm8216_vm12 = vcmp.ge.f32.partialorder %v7704_v9, 0.0  ;;  %v8728_v14 = vmul.f32 0.1, %v7704_v9  ;;  %v18838_v38 = vpop.f32.mrf.mxu1 }
 0x2be   : > { %v7961_v28 = vadd.f32 %v18518_v5, %v19134_v11  ;;  %vm8472_vm13 = vcmp.ge.f32.partialorder %v7960_v20, 0.0  ;;  %v8984_v46 = vmul.f32 0.1, %v7960_v20  ;;  %vm8219_vm14 = vcmp.ge.f32.partialorder %v7707_v18, 0.0 }
 0x2bf   : > { %v8731_v49 = vmul.f32 0.1, %v7707_v18  ;;  %v9240_v57 = vsel %vm8216_vm12, %v7704_v9, %v8728_v14  ;;  %vm8475_vm15 = vcmp.ge.f32.partialorder %v7963_v26, 0.0  ;;  %v8987_v7 = vmul.f32 0.1, %v7963_v26 }
 0x2c0   : > { %vm8217_vm1 = vcmp.ge.f32.partialorder %v7705_v4, 0.0  ;;  %v9496_v35 = vsel %vm8472_vm13, %v7960_v20, %v8984_v46  ;;  %v8729_v6 = vmul.f32 0.1, %v7705_v4  ;;  %vm8473_vm2 = vcmp.ge.f32.partialorder %v7961_v28, 0.0  ;;  %v18835_v20 = vpop.f32.mrf.mxu0 }
 0x2c1   : > { %v9243_v52 = vsel %vm8219_vm14, %v7707_v18, %v8731_v49  ;;  %v9499_v40 = vsel %vm8475_vm15, %v7963_v26, %v8987_v7  ;;  %v8985_v42 = vmul.f32 0.1, %v7961_v28  ;;  %v7710_v58 = vadd.f32 %v18518_v5, %v19135_v34 }
 0x2c2   : > { %v14301_v37 = vpack.c.bf16 %v9243_v52, %v9242_v31  ;;  %v14941_v47 = vpack.c.bf16 %v9499_v40, %v9498_v24  ;;  %v9241_v8 = vsel %vm8217_vm1, %v7705_v4, %v8729_v6  ;;  %v7966_v39 = vadd.f32 %v18518_v5, %v18636_v25  ;;  %v18852_v49 = vpop.f32.mrf.mxu0 }
 0x2c3   : > { %v7708_v15 = vadd.f32 %v18518_v5, %v18640_v3  ;;  %v14296_v9 = vpack.c.bf16 %v9241_v8, %v9240_v57  ;;  %v9497_v59 = vsel %vm8473_vm2, %v7961_v28, %v8985_v42  ;;  %vm8222_vm3 = vcmp.ge.f32.partialorder %v7710_v58, 0.0  ;;  %v18854_v57 = vpop.f32.mrf.mxu1 }
 0x2c4   : > { %15149 = vst [vmem:[%s16669_s29 + $0x358] sm:$0xff] %v14301_v37   ;;  %v8734_v31 = vmul.f32 0.1, %v7710_v58  ;;  %15277 = vst [vmem:[%s16669_s29 + $0x758] sm:$0xff] %v14941_v47   ;;  %v14936_v55 = vpack.c.bf16 %v9497_v59, %v9496_v35  ;;  %vm8478_vm4 = vcmp.ge.f32.partialorder %v7966_v39, 0.0  ;;  %v7964_v3 = vadd.f32 %v18518_v5, %v18642_v19 }
 0x2c5   : > { %v8990_v18 = vmul.f32 0.1, %v7966_v39  ;;  %vm8220_vm5 = vcmp.ge.f32.partialorder %v7708_v15, 0.0  ;;  %15148 = vst [vmem:[%s16669_s29 + $0x350] sm:$0xff] %v14296_v9   ;;  %v8732_v26 = vmul.f32 0.1, %v7708_v15  ;;  %v7711_v21 = vadd.f32 %v18518_v5, %v18647_v0 }
 0x2c6   : > { %v9246_v25 = vsel %vm8222_vm3, %v7710_v58, %v8734_v31  ;;  %15276 = vst [vmem:[%s16669_s29 + $0x750] sm:$0xff] %v14936_v55   ;;  %v7967_v24 = vadd.f32 %v18518_v5, %v18659_v12  ;;  %v7709_v14 = vadd.f32 %v18518_v5, %v18664_v53  ;;  %v7965_v11 = vadd.f32 %v18518_v5, %v18666_v54  ;;  %v18860_v58 = vpop.f32.mrf.mxu0 }
 0x2c7   : > { %v9502_v4 = vsel %vm8478_vm4, %v7966_v39, %v8990_v18  ;;  %v9244_v28 = vsel %vm8220_vm5, %v7708_v15, %v8732_v26  ;;  %vm8476_vm6 = vcmp.ge.f32.partialorder %v7964_v3, 0.0  ;;  %v8988_v46 = vmul.f32 0.1, %v7964_v3  ;;  %v18862_v15 = vpop.f32.mrf.mxu1 }
 0x2c8   : > { %vm8223_vm7 = vcmp.ge.f32.partialorder %v7711_v21, 0.0  ;;  %v8735_v19 = vmul.f32 0.1, %v7711_v21  ;;  %vm8479_vm8 = vcmp.ge.f32.partialorder %v7967_v24, 0.0  ;;  %v8991_v0 = vmul.f32 0.1, %v7967_v24 }
 0x2c9   : > { %vm8221_vm9 = vcmp.ge.f32.partialorder %v7709_v14, 0.0  ;;  %v9500_v7 = vsel %vm8476_vm6, %v7964_v3, %v8988_v46  ;;  %v8733_v12 = vmul.f32 0.1, %v7709_v14  ;;  %vm8477_vm10 = vcmp.ge.f32.partialorder %v7965_v11, 0.0 }
 0x2ca   : > { %v8989_v53 = vmul.f32 0.1, %v7965_v11  ;;  %v9247_v35 = vsel %vm8223_vm7, %v7711_v21, %v8735_v19  ;;  %v9503_v54 = vsel %vm8479_vm8, %v7967_v24, %v8991_v0  ;;  %v7714_v52 = vadd.f32 %v18518_v5, %v18668_v41  ;;  %v18880_v21 = vpop.f32.mrf.mxu1 }
 0x2cb   : > { %v7970_v6 = vadd.f32 %v18518_v5, %v18670_v44  ;;  %v14311_v37 = vpack.c.bf16 %v9247_v35, %v9246_v25  ;;  %v14951_v40 = vpack.c.bf16 %v9503_v54, %v9502_v4  ;;  %v9245_v42 = vsel %vm8221_vm9, %v7709_v14, %v8733_v12  ;;  %v18889_v12 = vld [vmem:[%s19104_s2] ss:$0 sm:$0xff] }
 0x2cc   : > { %v9501_v34 = vsel %vm8477_vm10, %v7965_v11, %v8989_v53  ;;  %v14306_v47 = vpack.c.bf16 %v9245_v42, %v9244_v28  ;;  %vm8226_vm0 = vcmp.ge.f32.partialorder %v7714_v52, 0.0  ;;  %v8738_v39 = vmul.f32 0.1, %v7714_v52  ;;  %v19137_v28 = vld [vmem:[#allocation6_spill] sm:$0xff]  ;;  %v19138_v53 = vld [vmem:[#allocation7_spill] sm:$0xff] }
 0x2cd   : > { %v14946_v8 = vpack.c.bf16 %v9501_v34, %v9500_v7  ;;  %15151 = vst [vmem:[%s16669_s29 + $0x368] sm:$0xff] %v14311_v37   ;;  %15279 = vst [vmem:[%s16669_s29 + $0x768] sm:$0xff] %v14951_v40   ;;  %vm8482_vm11 = vcmp.ge.f32.partialorder %v7970_v6, 0.0  ;;  %v8994_v41 = vmul.f32 0.1, %v7970_v6  ;;  %v7712_v44 = vadd.f32 %v18518_v5, %v18674_v2  ;;  %v18878_v2 = vpop.f32.mrf.mxu0 }
 0x2ce   : > { %v7968_v9 = vadd.f32 %v18518_v5, %v18680_v30  ;;  %15150 = vst [vmem:[%s16669_s29 + $0x360] sm:$0xff] %v14306_v47   ;;  %v9250_v59 = vsel %vm8226_vm0, %v7714_v52, %v8738_v39  ;;  %v7715_v31 = vadd.f32 %v18518_v5, %v18683_v50  ;;  %v7971_v55 = vadd.f32 %v18518_v5, %v18686_v63  ;;  %v19139_v47 = vld [vmem:[#allocation14_spill] sm:$0xff] }
 0x2cf   : > { %15278 = vst [vmem:[%s16669_s29 + $0x760] sm:$0xff] %v14946_v8   ;;  %v7713_v18 = vadd.f32 %v18518_v5, %v18693_v61  ;;  %v9506_v25 = vsel %vm8482_vm11, %v7970_v6, %v8994_v41  ;;  %vm8224_vm12 = vcmp.ge.f32.partialorder %v7712_v44, 0.0  ;;  %v8736_v26 = vmul.f32 0.1, %v7712_v44  ;;  %v19136_v61 = vld [vmem:[#allocation5_spill] sm:$0xff]  ;;  %v18893_v54 = vpop.f32.mrf.mxu0 }
 0x2d0   : > { %vm8480_vm13 = vcmp.ge.f32.partialorder %v7968_v9, 0.0  ;;  %v8992_v3 = vmul.f32 0.1, %v7968_v9  ;;  %vm8227_vm14 = vcmp.ge.f32.partialorder %v7715_v31, 0.0  ;;  %v8739_v30 = vmul.f32 0.1, %v7715_v31 }
 0x2d1   : > { %vm8483_vm15 = vcmp.ge.f32.partialorder %v7971_v55, 0.0  ;;  %v9248_v4 = vsel %vm8224_vm12, %v7712_v44, %v8736_v26  ;;  %v8995_v50 = vmul.f32 0.1, %v7971_v55  ;;  %vm8225_vm1 = vcmp.ge.f32.partialorder %v7713_v18, 0.0 }
 0x2d2   : > { %v8737_v24 = vmul.f32 0.1, %v7713_v18  ;;  %v9504_v63 = vsel %vm8480_vm13, %v7968_v9, %v8992_v3  ;;  %v9251_v14 = vsel %vm8227_vm14, %v7715_v31, %v8739_v30  ;;  %v7969_v11 = vadd.f32 %v18518_v5, %v19136_v61 }
 0x2d3   : > { %v7718_v46 = vadd.f32 %v18518_v5, %v19137_v28  ;;  %v14321_v19 = vpack.c.bf16 %v9251_v14, %v9250_v59  ;;  %v9507_v0 = vsel %vm8483_vm15, %v7971_v55, %v8995_v50  ;;  %v7974_v35 = vadd.f32 %v18889_v12, %v19138_v53  ;;  %v18895_v5 = vpop.f32.mrf.mxu1  ;;  %v18908_v55 = vpop.f32.mrf.mxu0 }
 0x2d4   : > { %v9249_v7 = vsel %vm8225_vm1, %v7713_v18, %v8737_v24  ;;  %v14961_v52 = vpack.c.bf16 %v9507_v0, %v9506_v25  ;;  %vm8481_vm2 = vcmp.ge.f32.partialorder %v7969_v11, 0.0  ;;  %v8993_v37 = vmul.f32 0.1, %v7969_v11 }
 0x2d5   : > { %v14316_v6 = vpack.c.bf16 %v9249_v7, %v9248_v4  ;;  %15153 = vst [vmem:[%s16669_s29 + $0x378] sm:$0xff] %v14321_v19   ;;  %vm8230_vm3 = vcmp.ge.f32.partialorder %v7718_v46, 0.0  ;;  %v8742_v40 = vmul.f32 0.1, %v7718_v46  ;;  %vm8486_vm4 = vcmp.ge.f32.partialorder %v7974_v35, 0.0  ;;  %v18910_v26 = vpop.f32.mrf.mxu1  ;;  %v18921_v61 = vpop.f32.mrf.mxu0 }
 0x2d6   : > { %v8998_v42 = vmul.f32 0.1, %v7974_v35  ;;  %15281 = vst [vmem:[%s16669_s29 + $0x778] sm:$0xff] %v14961_v52   ;;  %v9505_v34 = vsel %vm8481_vm2, %v7969_v11, %v8993_v37  ;;  %v7716_v8 = vadd.f32 %v18889_v12, %v19139_v47  ;;  %v7972_v39 = vadd.f32 %v18889_v12, %v18714_v33 }
 0x2d7   : > { %15152 = vst [vmem:[%s16669_s29 + $0x370] sm:$0xff] %v14316_v6   ;;  %v7719_v41 = vadd.f32 %v18889_v12, %v18716_v23  ;;  %v14956_v44 = vpack.c.bf16 %v9505_v34, %v9504_v63  ;;  %v9254_v9 = vsel %vm8230_vm3, %v7718_v46, %v8742_v40  ;;  %v7975_v31 = vadd.f32 %v18889_v12, %v18724_v13  ;;  %v18931_v6 = vpop.f32.mrf.mxu0 }
 0x2d8   : > { %v9510_v59 = vsel %vm8486_vm4, %v7974_v35, %v8998_v42  ;;  %vm8228_vm5 = vcmp.ge.f32.partialorder %v7716_v8, 0.0  ;;  %v8740_v18 = vmul.f32 0.1, %v7716_v8  ;;  %vm8484_vm6 = vcmp.ge.f32.partialorder %v7972_v39, 0.0 }
 0x2d9   : > { %v8996_v25 = vmul.f32 0.1, %v7972_v39  ;;  %15280 = vst [vmem:[%s16669_s29 + $0x770] sm:$0xff] %v14956_v44   ;;  %vm8231_vm7 = vcmp.ge.f32.partialorder %v7719_v41, 0.0  ;;  %v8743_v33 = vmul.f32 0.1, %v7719_v41  ;;  %v7717_v4 = vadd.f32 %v18889_v12, %v18734_v45  ;;  %v18923_v45 = vpop.f32.mrf.mxu1 }
 0x2da   : > { %vm8487_vm8 = vcmp.ge.f32.partialorder %v7975_v31, 0.0  ;;  %v8999_v3 = vmul.f32 0.1, %v7975_v31  ;;  %v9252_v23 = vsel %vm8228_vm5, %v7716_v8, %v8740_v18  ;;  %v7973_v13 = vadd.f32 %v18889_v12, %v18736_v29 }
 0x2db   : > { %v9508_v30 = vsel %vm8484_vm6, %v7972_v39, %v8996_v25  ;;  %v9255_v50 = vsel %vm8231_vm7, %v7719_v41, %v8743_v33  ;;  %v7722_v63 = vadd.f32 %v18889_v12, %v18744_v16  ;;  %v7978_v14 = vadd.f32 %v18889_v12, %v18747_v27  ;;  %v18933_v34 = vpop.f32.mrf.mxu1 }
 0x2dc   : > { %v9511_v24 = vsel %vm8487_vm8, %v7975_v31, %v8999_v3  ;;  %v14331_v11 = vpack.c.bf16 %v9255_v50, %v9254_v9  ;;  %vm8229_vm9 = vcmp.ge.f32.partialorder %v7717_v4, 0.0  ;;  %v8741_v46 = vmul.f32 0.1, %v7717_v4  ;;  %v18947_v31 = vpop.f32.mrf.mxu0 }
 0x2dd   : > { %v14971_v28 = vpack.c.bf16 %v9511_v24, %v9510_v59  ;;  %vm8485_vm10 = vcmp.ge.f32.partialorder %v7973_v13, 0.0  ;;  %v8997_v19 = vmul.f32 0.1, %v7973_v13  ;;  %vm8234_vm0 = vcmp.ge.f32.partialorder %v7722_v63, 0.0  ;;  %v18949_v18 = vpop.f32.mrf.mxu1 }
 0x2de   : > { %v8746_v29 = vmul.f32 0.1, %v7722_v63  ;;  %15155 = vst [vmem:[%s16669_s29 + $0x388] sm:$0xff] %v14331_v11   ;;  %v9253_v0 = vsel %vm8229_vm9, %v7717_v4, %v8741_v46  ;;  %vm8490_vm11 = vcmp.ge.f32.partialorder %v7978_v14, 0.0  ;;  %v9002_v16 = vmul.f32 0.1, %v7978_v14  ;;  %v18953_v24 = vpop.f32.mrf.mxu0 }
 0x2df   : > { %15283 = vst [vmem:[%s16669_s29 + $0x788] sm:$0xff] %v14971_v28   ;;  %v7720_v27 = vadd.f32 %v18889_v12, %v18759_v51  ;;  %v14326_v7 = vpack.c.bf16 %v9253_v0, %v9252_v23  ;;  %v9509_v53 = vsel %vm8485_vm10, %v7973_v13, %v8997_v19  ;;  %v7976_v52 = vadd.f32 %v18889_v12, %v18762_v22  ;;  %v18958_v28 = vpop.f32.mrf.mxu1 }
 0x2e0   : > { %v9258_v35 = vsel %vm8234_vm0, %v7722_v63, %v8746_v29  ;;  %v14966_v37 = vpack.c.bf16 %v9509_v53, %v9508_v30  ;;  %v9514_v40 = vsel %vm8490_vm11, %v7978_v14, %v9002_v16  ;;  %v7723_v51 = vadd.f32 %v18889_v12, %v18772_v60 }
 0x2e1   : > { %vm8232_vm12 = vcmp.ge.f32.partialorder %v7720_v27, 0.0  ;;  %v8744_v42 = vmul.f32 0.1, %v7720_v27  ;;  %15154 = vst [vmem:[%s16669_s29 + $0x380] sm:$0xff] %v14326_v7   ;;  %vm8488_vm13 = vcmp.ge.f32.partialorder %v7976_v52, 0.0  ;;  %v7979_v8 = vadd.f32 %v18889_v12, %v18774_v62  ;;  %v18973_v7 = vpop.f32.mrf.mxu0 }
 0x2e2   : > { %v9000_v47 = vmul.f32 0.1, %v7976_v52  ;;  %15282 = vst [vmem:[%s16669_s29 + $0x780] sm:$0xff] %v14966_v37   ;;  %v7721_v22 = vadd.f32 %v18889_v12, %v18782_v10  ;;  %v7977_v41 = vadd.f32 %v18889_v12, %v18789_v56  ;;  %v7726_v44 = vadd.f32 %v18889_v12, %v18798_v36 }
 0x2e3   : > { %v9256_v39 = vsel %vm8232_vm12, %v7720_v27, %v8744_v42  ;;  %vm8235_vm14 = vcmp.ge.f32.partialorder %v7723_v51, 0.0  ;;  %v8747_v59 = vmul.f32 0.1, %v7723_v51  ;;  %vm8491_vm15 = vcmp.ge.f32.partialorder %v7979_v8, 0.0 }
 0x2e4   : > { %v9512_v9 = vsel %vm8488_vm13, %v7976_v52, %v9000_v47  ;;  %v9003_v60 = vmul.f32 0.1, %v7979_v8  ;;  %vm8233_vm1 = vcmp.ge.f32.partialorder %v7721_v22, 0.0  ;;  %v8745_v62 = vmul.f32 0.1, %v7721_v22 }
 0x2e5   : > { %vm8489_vm2 = vcmp.ge.f32.partialorder %v7977_v41, 0.0  ;;  %v9259_v10 = vsel %vm8235_vm14, %v7723_v51, %v8747_v59  ;;  %v9001_v25 = vmul.f32 0.1, %v7977_v41  ;;  %vm8238_vm3 = vcmp.ge.f32.partialorder %v7726_v44, 0.0 }
 0x2e6   : > { %v8750_v56 = vmul.f32 0.1, %v7726_v44  ;;  %v14341_v33 = vpack.c.bf16 %v9259_v10, %v9258_v35  ;;  %v9515_v36 = vsel %vm8491_vm15, %v7979_v8, %v9003_v60  ;;  %v9257_v3 = vsel %vm8233_vm1, %v7721_v22, %v8745_v62  ;;  %v18983_v22 = vpop.f32.mrf.mxu0 }
 0x2e7   : > { %v7982_v23 = vadd.f32 %v18889_v12, %v18800_v1  ;;  %v14981_v30 = vpack.c.bf16 %v9515_v36, %v9514_v40  ;;  %v14336_v4 = vpack.c.bf16 %v9257_v3, %v9256_v39  ;;  %v9513_v13 = vsel %vm8489_vm2, %v7977_v41, %v9001_v25 }
 0x2e8   : > { %v9262_v50 = vsel %vm8238_vm3, %v7726_v44, %v8750_v56  ;;  %15157 = vst [vmem:[%s16669_s29 + $0x398] sm:$0xff] %v14341_v33   ;;  %v14976_v63 = vpack.c.bf16 %v9513_v13, %v9512_v9  ;;  %v7724_v11 = vadd.f32 %v18889_v12, %v18807_v43  ;;  %v7980_v1 = vadd.f32 %v18889_v12, %v18819_v48  ;;  %v19001_v3 = vpop.f32.mrf.mxu0 }
 0x2e9   : > { %vm8494_vm4 = vcmp.ge.f32.partialorder %v7982_v23, 0.0  ;;  %v9006_v14 = vmul.f32 0.1, %v7982_v23  ;;  %15285 = vst [vmem:[%s16669_s29 + $0x798] sm:$0xff] %v14981_v30   ;;  %15156 = vst [vmem:[%s16669_s29 + $0x390] sm:$0xff] %v14336_v4   ;;  %v7727_v46 = vadd.f32 %v18889_v12, %v18824_v17  ;;  %v7983_v19 = vadd.f32 %v18889_v12, %v18826_v32  ;;  %v18975_v32 = vpop.f32.mrf.mxu1 }
 0x2ea   : > { %v7725_v29 = vadd.f32 %v18889_v12, %v18835_v20  ;;  %15284 = vst [vmem:[%s16669_s29 + $0x790] sm:$0xff] %v14976_v63   ;;  %vm8236_vm5 = vcmp.ge.f32.partialorder %v7724_v11, 0.0  ;;  %v8748_v43 = vmul.f32 0.1, %v7724_v11  ;;  %v7981_v16 = vadd.f32 %v18889_v12, %v18838_v38 }
 0x2eb   : > { %v9518_v0 = vsel %vm8494_vm4, %v7982_v23, %v9006_v14  ;;  %vm8492_vm6 = vcmp.ge.f32.partialorder %v7980_v1, 0.0  ;;  %v9004_v27 = vmul.f32 0.1, %v7980_v1  ;;  %vm8239_vm7 = vcmp.ge.f32.partialorder %v7727_v46, 0.0  ;;  %v18986_v59 = vpop.f32.mrf.mxu1 }
 0x2ec   : > { %v8751_v48 = vmul.f32 0.1, %v7727_v46  ;;  %v9260_v17 = vsel %vm8236_vm5, %v7724_v11, %v8748_v43  ;;  %vm8495_vm8 = vcmp.ge.f32.partialorder %v7983_v19, 0.0  ;;  %v9007_v53 = vmul.f32 0.1, %v7983_v19  ;;  %v19009_v11 = vpop.f32.mrf.mxu0 }
 0x2ed   : > { %vm8237_vm9 = vcmp.ge.f32.partialorder %v7725_v29, 0.0  ;;  %v9516_v20 = vsel %vm8492_vm6, %v7980_v1, %v9004_v27  ;;  %v8749_v52 = vmul.f32 0.1, %v7725_v29  ;;  %vm8493_vm10 = vcmp.ge.f32.partialorder %v7981_v16, 0.0 }
 0x2ee   : > { %v9263_v35 = vsel %vm8239_vm7, %v7727_v46, %v8751_v48  ;;  %v9519_v38 = vsel %vm8495_vm8, %v7983_v19, %v9007_v53  ;;  %v9005_v40 = vmul.f32 0.1, %v7981_v16  ;;  %v7730_v42 = vadd.f32 %v18889_v12, %v18852_v49 }
 0x2ef   : > { %v14351_v37 = vpack.c.bf16 %v9263_v35, %v9262_v50  ;;  %v14991_v47 = vpack.c.bf16 %v9519_v38, %v9518_v0  ;;  %v9261_v51 = vsel %vm8237_vm9, %v7725_v29, %v8749_v52  ;;  %v7986_v8 = vadd.f32 %v18889_v12, %v18854_v57  ;;  %v19027_v52 = vpop.f32.mrf.mxu0 }
 0x2f0   : > { %v7728_v39 = vadd.f32 %v18889_v12, %v18860_v58  ;;  %v14346_v41 = vpack.c.bf16 %v9261_v51, %v9260_v17  ;;  %v9517_v44 = vsel %vm8493_vm10, %v7981_v16, %v9005_v40  ;;  %vm8242_vm0 = vcmp.ge.f32.partialorder %v7730_v42, 0.0 }
 0x2f1   : > { %15159 = vst [vmem:[%s16669_s29 + $0x3a8] sm:$0xff] %v14351_v37   ;;  %v8754_v9 = vmul.f32 0.1, %v7730_v42  ;;  %15287 = vst [vmem:[%s16669_s29 + $0x7a8] sm:$0xff] %v14991_v47   ;;  %v14986_v49 = vpack.c.bf16 %v9517_v44, %v9516_v20  ;;  %vm8498_vm11 = vcmp.ge.f32.partialorder %v7986_v8, 0.0  ;;  %v7984_v58 = vadd.f32 %v18889_v12, %v18862_v15  ;;  %v19003_v15 = vpop.f32.mrf.mxu1 }
 0x2f2   : > { %v9010_v60 = vmul.f32 0.1, %v7986_v8  ;;  %vm8240_vm12 = vcmp.ge.f32.partialorder %v7728_v39, 0.0  ;;  %15158 = vst [vmem:[%s16669_s29 + $0x3a0] sm:$0xff] %v14346_v41   ;;  %v8752_v62 = vmul.f32 0.1, %v7728_v39  ;;  %v7731_v10 = vadd.f32 %v18889_v12, %v18878_v2 }
 0x2f3   : > { %v9266_v57 = vsel %vm8242_vm0, %v7730_v42, %v8754_v9  ;;  %15286 = vst [vmem:[%s16669_s29 + $0x7a0] sm:$0xff] %v14986_v49   ;;  %v7987_v56 = vadd.f32 %v18889_v12, %v18880_v21  ;;  %v7729_v33 = vadd.f32 %v18889_v12, %v18893_v54  ;;  %v7985_v36 = vadd.f32 %v18889_v12, %v18895_v5  ;;  %v19011_v0 = vpop.f32.mrf.mxu1 }
 0x2f4   : > { %v9522_v25 = vsel %vm8498_vm11, %v7986_v8, %v9010_v60  ;;  %v9264_v23 = vsel %vm8240_vm12, %v7728_v39, %v8752_v62  ;;  %vm8496_vm13 = vcmp.ge.f32.partialorder %v7984_v58, 0.0  ;;  %v9008_v30 = vmul.f32 0.1, %v7984_v58  ;;  %v19035_v39 = vpop.f32.mrf.mxu0 }
 0x2f5   : > { %vm8243_vm14 = vcmp.ge.f32.partialorder %v7731_v10, 0.0  ;;  %v8755_v2 = vmul.f32 0.1, %v7731_v10  ;;  %vm8499_vm15 = vcmp.ge.f32.partialorder %v7987_v56, 0.0  ;;  %v9011_v4 = vmul.f32 0.1, %v7987_v56  ;;  %v19029_v38 = vpop.f32.mrf.mxu1 }
 0x2f6   : > { %vm8241_vm1 = vcmp.ge.f32.partialorder %v7729_v33, 0.0  ;;  %v9520_v13 = vsel %vm8496_vm13, %v7984_v58, %v9008_v30  ;;  %v8753_v21 = vmul.f32 0.1, %v7729_v33  ;;  %vm8497_vm2 = vcmp.ge.f32.partialorder %v7985_v36, 0.0 }
 0x2f7   : > { %v9009_v54 = vmul.f32 0.1, %v7985_v36  ;;  %v9267_v50 = vsel %vm8243_vm14, %v7731_v10, %v8755_v2  ;;  %v9523_v5 = vsel %vm8499_vm15, %v7987_v56, %v9011_v4  ;;  %v7734_v63 = vadd.f32 %v18889_v12, %v18908_v55  ;;  %v19039_v60 = vpop.f32.mrf.mxu1 }
 0x2f8   : > { %v7990_v14 = vadd.f32 %v18889_v12, %v18910_v26  ;;  %v14361_v1 = vpack.c.bf16 %v9267_v50, %v9266_v57  ;;  %v15001_v46 = vpack.c.bf16 %v9523_v5, %v9522_v25  ;;  %v9265_v19 = vsel %vm8241_vm1, %v7729_v33, %v8753_v21  ;;  %v4894_v33 = vpop.f32.mrf.mxu0 }
 0x2f9   : > { %v9521_v29 = vsel %vm8497_vm2, %v7985_v36, %v9009_v54  ;;  %v14356_v43 = vpack.c.bf16 %v9265_v19, %v9264_v23  ;;  %vm8246_vm3 = vcmp.ge.f32.partialorder %v7734_v63, 0.0  ;;  %v8758_v27 = vmul.f32 0.1, %v7734_v63  ;;  %v5918_v2 = vpop.f32.mrf.mxu1 }
 0x2fa   : > { %v14996_v16 = vpack.c.bf16 %v9521_v29, %v9520_v13  ;;  %15161 = vst [vmem:[%s16669_s29 + $0x3b8] sm:$0xff] %v14361_v1   ;;  %15289 = vst [vmem:[%s16669_s29 + $0x7b8] sm:$0xff] %v15001_v46   ;;  %vm8502_vm4 = vcmp.ge.f32.partialorder %v7990_v14, 0.0  ;;  %v9014_v55 = vmul.f32 0.1, %v7990_v14  ;;  %v7732_v26 = vadd.f32 %v18889_v12, %v18921_v61 }
 0x2fb   : > { %v7988_v48 = vadd.f32 %v18889_v12, %v18923_v45  ;;  %15160 = vst [vmem:[%s16669_s29 + $0x3b0] sm:$0xff] %v14356_v43   ;;  %v9270_v17 = vsel %vm8246_vm3, %v7734_v63, %v8758_v27  ;;  %v7735_v53 = vadd.f32 %v18889_v12, %v18931_v6  ;;  %v7991_v20 = vadd.f32 %v18889_v12, %v18933_v34  ;;  %v16070_v46 = vpop.f32.mrf.mxu1 }
 0x2fc   : > { %15288 = vst [vmem:[%s16669_s29 + $0x7b0] sm:$0xff] %v14996_v16   ;;  %v7733_v35 = vadd.f32 %v18889_v12, %v18947_v31  ;;  %v9526_v37 = vsel %vm8502_vm4, %v7990_v14, %v9014_v55  ;;  %vm8244_vm5 = vcmp.ge.f32.partialorder %v7732_v26, 0.0  ;;  %v8756_v61 = vmul.f32 0.1, %v7732_v26 }
 0x2fd   : > { %vm8500_vm6 = vcmp.ge.f32.partialorder %v7988_v48, 0.0  ;;  %v9012_v45 = vmul.f32 0.1, %v7988_v48  ;;  %vm8247_vm7 = vcmp.ge.f32.partialorder %v7735_v53, 0.0  ;;  %v8759_v40 = vmul.f32 0.1, %v7735_v53 }
 0x2fe   : > { %vm8503_vm8 = vcmp.ge.f32.partialorder %v7991_v20, 0.0  ;;  %v9268_v42 = vsel %vm8244_vm5, %v7732_v26, %v8756_v61  ;;  %v9015_v6 = vmul.f32 0.1, %v7991_v20  ;;  %vm8245_vm9 = vcmp.ge.f32.partialorder %v7733_v35, 0.0 }
 0x2ff   : > { %v8757_v34 = vmul.f32 0.1, %v7733_v35  ;;  %v9524_v47 = vsel %vm8500_vm6, %v7988_v48, %v9012_v45  ;;  %v9271_v51 = vsel %vm8247_vm7, %v7735_v53, %v8759_v40  ;;  %v7989_v31 = vadd.f32 %v18889_v12, %v18949_v18  ;;  %v5931_v53 = vpop.f32.mrf.mxu1 }
 0x300   : > { %v7738_v8 = vadd.f32 %v18889_v12, %v18953_v24  ;;  %v14371_v41 = vpack.c.bf16 %v9271_v51, %v9270_v17  ;;  %v9527_v44 = vsel %vm8503_vm8, %v7991_v20, %v9015_v6  ;;  %v7994_v49 = vadd.f32 %v18889_v12, %v18958_v28 }
 0x301   : > { %v9269_v9 = vsel %vm8245_vm9, %v7733_v35, %v8757_v34  ;;  %v15011_v57 = vpack.c.bf16 %v9527_v44, %v9526_v37  ;;  %vm8501_vm10 = vcmp.ge.f32.partialorder %v7989_v31, 0.0  ;;  %v9013_v58 = vmul.f32 0.1, %v7989_v31 }
 0x302   : > { %v14366_v62 = vpack.c.bf16 %v9269_v9, %v9268_v42  ;;  %15163 = vst [vmem:[%s16669_s29 + $0x3c8] sm:$0xff] %v14371_v41   ;;  %vm8250_vm0 = vcmp.ge.f32.partialorder %v7738_v8, 0.0  ;;  %v8762_v18 = vmul.f32 0.1, %v7738_v8  ;;  %vm8506_vm11 = vcmp.ge.f32.partialorder %v7994_v49, 0.0 }
 0x303   : > { %v9018_v24 = vmul.f32 0.1, %v7994_v49  ;;  %15291 = vst [vmem:[%s16669_s29 + $0x7c8] sm:$0xff] %v15011_v57   ;;  %v9525_v10 = vsel %vm8501_vm10, %v7989_v31, %v9013_v58  ;;  %v7736_v25 = vadd.f32 %v18889_v12, %v18973_v7  ;;  %v7992_v28 = vadd.f32 %v18889_v12, %v18975_v32  ;;  %v16071_v31 = vpop.f32.mrf.mxu1 }
 0x304   : > { %15162 = vst [vmem:[%s16669_s29 + $0x3c0] sm:$0xff] %v14366_v62   ;;  %v7739_v56 = vadd.f32 %v18889_v12, %v18983_v22  ;;  %v15006_v36 = vpack.c.bf16 %v9525_v10, %v9524_v47  ;;  %v9274_v23 = vsel %vm8250_vm0, %v7738_v8, %v8762_v18  ;;  %v7995_v30 = vadd.f32 %v18889_v12, %v18986_v59  ;;  %v15814_v59 = vpop.f32.mrf.mxu0 }
 0x305   : > { %v9530_v4 = vsel %vm8506_vm11, %v7994_v49, %v9018_v24  ;;  %vm8248_vm12 = vcmp.ge.f32.partialorder %v7736_v25, 0.0  ;;  %v8760_v13 = vmul.f32 0.1, %v7736_v25  ;;  %vm8504_vm13 = vcmp.ge.f32.partialorder %v7992_v28, 0.0 }
 0x306   : > { %15290 = vst [vmem:[%s16669_s29 + $0x7c0] sm:$0xff] %v15006_v36   ;;  %vm8251_vm14 = vcmp.ge.f32.partialorder %v7739_v56, 0.0  ;;  %v8763_v7 = vmul.f32 0.1, %v7739_v56  ;;  %vm8507_vm15 = vcmp.ge.f32.partialorder %v7995_v30, 0.0  ;;  %v7737_v22 = vadd.f32 %v18889_v12, %v19001_v3 }
 0x307   : > { %v9019_v21 = vmul.f32 0.1, %v7995_v30  ;;  %v9272_v32 = vsel %vm8248_vm12, %v7736_v25, %v8760_v13  ;;  %v9016_v54 = vmul.f32 0.1, %v7992_v28  ;;  %v7993_v50 = vadd.f32 %v18889_v12, %v19003_v15 }
 0x308   : > { %v9275_v5 = vsel %vm8251_vm14, %v7739_v56, %v8763_v7  ;;  %v7742_v14 = vadd.f32 %v18889_v12, %v19009_v11  ;;  %v7998_v1 = vadd.f32 %v18889_v12, %v19011_v0  ;;  %vm8249_vm1 = vcmp.ge.f32.partialorder %v7737_v22, 0.0  ;;  %v4907_v0 = vpop.f32.mrf.mxu0 }
 0x309   : > { %v9531_v63 = vsel %vm8507_vm15, %v7995_v30, %v9019_v21  ;;  %v14381_v19 = vpack.c.bf16 %v9275_v5, %v9274_v23  ;;  %v8761_v43 = vmul.f32 0.1, %v7737_v22  ;;  %vm8505_vm2 = vcmp.ge.f32.partialorder %v7993_v50, 0.0 }
 0x30a   : > { %v15021_v29 = vpack.c.bf16 %v9531_v63, %v9530_v4  ;;  %v9017_v3 = vmul.f32 0.1, %v7993_v50  ;;  %vm8254_vm3 = vcmp.ge.f32.partialorder %v7742_v14, 0.0  ;;  %v8766_v16 = vmul.f32 0.1, %v7742_v14  ;;  %v15815_v34 = vpop.f32.mrf.mxu0 }
 0x30b   : > { %15165 = vst [vmem:[%s16669_s29 + $0x3d8] sm:$0xff] %v14381_v19   ;;  %v9273_v15 = vsel %vm8249_vm1, %v7737_v22, %v8761_v43  ;;  %vm8510_vm4 = vcmp.ge.f32.partialorder %v7998_v1, 0.0  ;;  %v9022_v27 = vmul.f32 0.1, %v7998_v1  ;;  %v7740_v11 = vadd.f32 %v18889_v12, %v19027_v52 }
 0x30c   : > { %15293 = vst [vmem:[%s16669_s29 + $0x7d8] sm:$0xff] %v15021_v29   ;;  %v9528_v55 = vsel %vm8504_vm13, %v7992_v28, %v9016_v54  ;;  %v14376_v26 = vpack.c.bf16 %v9273_v15, %v9272_v32  ;;  %v9529_v48 = vsel %vm8505_vm2, %v7993_v50, %v9017_v3  ;;  %v7996_v17 = vadd.f32 %v18889_v12, %v19029_v38  ;;  %v4910_v18 = vpop.f32.mrf.mxu0  ;;  %v5934_v28 = vpop.f32.mrf.mxu1 }
 0x30d   : > { %v15016_v20 = vpack.c.bf16 %v9529_v48, %v9528_v55  ;;  %v9278_v35 = vsel %vm8254_vm3, %v7742_v14, %v8766_v16  ;;  %vm8252_vm5 = vcmp.ge.f32.partialorder %v7740_v11, 0.0  ;;  %v8764_v37 = vmul.f32 0.1, %v7740_v11 }
 0x30e   : > { %15164 = vst [vmem:[%s16669_s29 + $0x3d0] sm:$0xff] %v14376_v26   ;;  %v9534_v61 = vsel %vm8510_vm4, %v7998_v1, %v9022_v27  ;;  %v9020_v45 = vmul.f32 0.1, %v7996_v17  ;;  %v7743_v52 = vadd.f32 %v18889_v12, %v19035_v39  ;;  %v7999_v40 = vadd.f32 %v18889_v12, %v19039_v60 }
 0x30f   : > { %15292 = vst [vmem:[%s16669_s29 + $0x7d0] sm:$0xff] %v15016_v20   ;;  %vm8508_vm6 = vcmp.ge.f32.partialorder %v7996_v17, 0.0  ;;  %v7741_v42 = vadd.f32 %v18889_v12, %v4894_v33  ;;  %v7997_v38 = vadd.f32 %v18889_v12, %v5918_v2  ;;  %v7746_v6 = vadd.f32 %v18889_v12, %v15814_v59 }
 0x310   : > { %v9276_v47 = vsel %vm8252_vm5, %v7740_v11, %v8764_v37  ;;  %vm8255_vm7 = vcmp.ge.f32.partialorder %v7743_v52, 0.0  ;;  %v8767_v51 = vmul.f32 0.1, %v7743_v52  ;;  %vm8511_vm8 = vcmp.ge.f32.partialorder %v7999_v40, 0.0 }
 0x311   : > { %v9023_v8 = vmul.f32 0.1, %v7999_v40  ;;  %vm8253_vm9 = vcmp.ge.f32.partialorder %v7741_v42, 0.0  ;;  %v8765_v39 = vmul.f32 0.1, %v7741_v42  ;;  %vm8509_vm10 = vcmp.ge.f32.partialorder %v7997_v38, 0.0 }
 0x312   : > { %v9532_v41 = vsel %vm8508_vm6, %v7996_v17, %v9020_v45  ;;  %v9279_v44 = vsel %vm8255_vm7, %v7743_v52, %v8767_v51  ;;  %v9021_v9 = vmul.f32 0.1, %v7997_v38  ;;  %v8770_v49 = vmul.f32 0.1, %v7746_v6 }
 0x313   : > { %v14391_v60 = vpack.c.bf16 %v9279_v44, %v9278_v35  ;;  %v9535_v57 = vsel %vm8511_vm8, %v7999_v40, %v9023_v8  ;;  %v9277_v62 = vsel %vm8253_vm9, %v7741_v42, %v8765_v39  ;;  %v8002_v58 = vadd.f32 %v18889_v12, %v16070_v46 }
 0x314   : > { %v15031_v24 = vpack.c.bf16 %v9535_v57, %v9534_v61  ;;  %v14386_v10 = vpack.c.bf16 %v9277_v62, %v9276_v47  ;;  %v9533_v25 = vsel %vm8509_vm10, %v7997_v38, %v9021_v9  ;;  %vm8258_vm0 = vcmp.ge.f32.partialorder %v7746_v6, 0.0 }
 0x315   : > { %15167 = vst [vmem:[%s16669_s29 + $0x3e8] sm:$0xff] %v14391_v60   ;;  %v15026_v56 = vpack.c.bf16 %v9533_v25, %v9532_v41  ;;  %v7744_v33 = vadd.f32 %v18889_v12, %v4907_v0  ;;  %v8000_v36 = vadd.f32 %v18889_v12, %v5931_v53  ;;  %v7747_v23 = vadd.f32 %v18889_v12, %v15815_v34 }
 0x316   : > { %15295 = vst [vmem:[%s16669_s29 + $0x7e8] sm:$0xff] %v15031_v24   ;;  %15166 = vst [vmem:[%s16669_s29 + $0x3e0] sm:$0xff] %v14386_v10   ;;  %v8003_v30 = vadd.f32 %v18889_v12, %v16071_v31  ;;  %v7745_v2 = vadd.f32 %v18889_v12, %v4910_v18  ;;  %v9282_v4 = vsel %vm8258_vm0, %v7746_v6, %v8770_v49  ;;  %vm8514_vm11 = vcmp.ge.f32.partialorder %v8002_v58, 0.0 }
 0x317   : > { %15294 = vst [vmem:[%s16669_s29 + $0x7e0] sm:$0xff] %v15026_v56   ;;  %v9026_v13 = vmul.f32 0.1, %v8002_v58  ;;  %v8001_v7 = vadd.f32 %v18889_v12, %v5934_v28  ;;  %vm8256_vm12 = vcmp.ge.f32.partialorder %v7744_v33, 0.0  ;;  %v8768_v21 = vmul.f32 0.1, %v7744_v33 }
 0x318   : > { %vm8259_vm13 = vcmp.ge.f32.partialorder %v7747_v23, 0.0  ;;  %v8771_v32 = vmul.f32 0.1, %v7747_v23  ;;  %v9024_v54 = vmul.f32 0.1, %v8000_v36  ;;  %vm8515_vm14 = vcmp.ge.f32.partialorder %v8003_v30, 0.0 }
 0x319   : > { %v9027_v22 = vmul.f32 0.1, %v8003_v30  ;;  %vm8257_vm15 = vcmp.ge.f32.partialorder %v7745_v2, 0.0  ;;  %vm8512_vm1 = vcmp.ge.f32.partialorder %v8000_v36, 0.0  ;;  %v8769_v59 = vmul.f32 0.1, %v7745_v2 }
 0x31a   : > { %v9283_v50 = vsel %vm8259_vm13, %v7747_v23, %v8771_v32  ;;  %vm8513_vm2 = vcmp.ge.f32.partialorder %v8001_v7, 0.0  ;;  %v9538_v5 = vsel %vm8514_vm11, %v8002_v58, %v9026_v13  ;;  %v9025_v12 = vmul.f32 0.1, %v8001_v7 }
 0x31b   : > { %v14401_v63 = vpack.c.bf16 %v9283_v50, %v9282_v4  ;;  %v9539_v14 = vsel %vm8515_vm14, %v8003_v30, %v9027_v22  ;;  %v9280_v1 = vsel %vm8256_vm12, %v7744_v33, %v8768_v21  ;;  %v9281_v19 = vsel %vm8257_vm15, %v7745_v2, %v8769_v59 }
 0x31c   : > { %v15041_v46 = vpack.c.bf16 %v9539_v14, %v9538_v5  ;;  %v9536_v29 = vsel %vm8512_vm1, %v8000_v36, %v9024_v54  ;;  %v14396_v43 = vpack.c.bf16 %v9281_v19, %v9280_v1  ;;  %v9537_v3 = vsel %vm8513_vm2, %v8001_v7, %v9025_v12 }
 0x31d   : > { %15169 = vst [vmem:[%s16669_s29 + $0x3f8] sm:$0xff] %v14401_v63   ;;  %v15036_v16 = vpack.c.bf16 %v9537_v3, %v9536_v29 }
 0x31e   : > { %15297 = vst [vmem:[%s16669_s29 + $0x7f8] sm:$0xff] %v15041_v46   ;;  %15168 = vst [vmem:[%s16669_s29 + $0x3f0] sm:$0xff] %v14396_v43  }
 0x31f   : > { %15296 = vst [vmem:[%s16669_s29 + $0x7f0] sm:$0xff] %v15036_v16  }
 0x320 PF: > { %s13_s14 = sadd.s32 1, %s16386_s14   ;;  %s19140_s12 = smov %s16382_s13 }
 0x321   : > { %p10_p5 = scmp.ge.s32.totalorder %s13_s14, 4   ;;  %s19141_s13 = smov %s19143_s15 }
 0x323   :  { %12 = sbr.rel (!%p10_p5) target bundleno = 2 (0x2), region = 76 }

</bundles_post_ra>
